<compile_context>
chip_gen: v5e
topology: v5e:2x2
jax: 0.10.0
libtpu: 0.0.40
codegen_flags: <defaults>
</compile_context>

<pallas_src>
import functools

import jax
import jax.numpy as jnp
from jax import lax
from jax.experimental import pallas as pl
from jax.experimental.pallas import tpu as pltpu


def _round_up(x, m):
    return (x + m - 1) // m * m


def _vmem_limit(needed_bytes):
    """Per-generation VMEM request: ~2x the working set, clamped to
    [16 MiB, 3/4 of physical VMEM] (the 3/4 cap is what matters on v7x)."""
    try:
        cap = int(pltpu.get_tpu_info().vmem_capacity_bytes)
    except Exception:
        cap = 64 * 1024 * 1024
    lo = 16 * 1024 * 1024
    hi = (3 * cap) // 4
    return int(min(hi, max(lo, 2 * needed_bytes)))


# ----------------------------- LSTM layer kernel -----------------------------
def _lstm_layer_kernel(len_ref, x_ref, wih_ref, whh_ref, b_ref,
                       out_ref, h_ref, c_ref, gx_ref):
    Tc, Bt, Dp = x_ref.shape
    Hp = whh_ref.shape[0]
    t0 = pl.program_id(1) * Tc

    @pl.when(pl.program_id(1) == 0)
    def _():
        h_ref[...] = jnp.zeros_like(h_ref)
        c_ref[...] = jnp.zeros_like(c_ref)

    # Hoisted input projection: ONE (Tc*Bt, Dp) @ (Dp, 4Hp) bf16 MXU matmul per
    # chunk with f32 accumulate; bias added once.  Stored flat so the per-step
    # read is an aligned (Bt, 4Hp) slab.
    x_flat = x_ref[...].reshape(Tc * Bt, Dp)
    gx_ref[...] = (jnp.dot(x_flat, wih_ref[...],
                           preferred_element_type=jnp.float32) + b_ref[...])

    lens = len_ref[...]           # (Bt, 1) int32
    whh = whh_ref[...]            # bf16, hoisted load, reused every step

    def step(i, carry):
        h = h_ref[...]            # f32, resident output block (no vreg carry)
        c = c_ref[...]
        row0 = pl.multiple_of(i * Bt, 8)
        # Only the recurrent matmul stays inside the sequential (unrolled) loop.
        gates = (gx_ref[pl.ds(row0, Bt), :]
                 + jnp.dot(h.astype(jnp.bfloat16), whh,
                           preferred_element_type=jnp.float32))
        # Gate column order is (i, f, o, g): one sigmoid over 3*Hp lanes,
        # one tanh over Hp lanes; every slice is 128-lane aligned.
        sig = jax.nn.sigmoid(gates[:, :3 * Hp])
        g_g = jnp.tanh(gates[:, 3 * Hp:])
        i_g = sig[:, 0 * Hp:1 * Hp]
        f_g = sig[:, 1 * Hp:2 * Hp]
        o_g = sig[:, 2 * Hp:3 * Hp]
        c_new = f_g * c + i_g * g_g
        h_new = o_g * jnp.tanh(c_new)
        valid = lens > (t0 + i)                          # (Bt, 1)
        h_ref[...] = jnp.where(valid, h_new, h)
        c_ref[...] = jnp.where(valid, c_new, c)
        # packed-sequence semantics: padded positions are zero in the output.
        out_ref[i] = jnp.where(valid, h_new, 0.0).astype(out_ref.dtype)
        return carry

    lax.fori_loop(0, Tc, step, 0, unroll=True)


def lstm_layer(x_tbd, lengths_b1, w_ih_t, w_hh_t, bias_14h, *,
               t_chunk=32, b_tile=8):
    """x_tbd: (T, B_pad, D_pad) bf16.  Weights already transposed/reordered/padded
    and cast to bf16 (bias stays f32)."""
    T, B, Dp = x_tbd.shape
    Hp = w_hh_t.shape[0]
    Tc = min(t_chunk, T)
    Tp = _round_up(T, Tc)
    if Tp != T:
        x_tbd = jnp.concatenate(
            [x_tbd, jnp.zeros((Tp - T, B, Dp), x_tbd.dtype)], axis=0)
    Bt = min(b_tile, B)
    assert B % Bt == 0

    # Working set estimate (bytes) for the vmem_limit request.
    need = (2 * Tc * Bt * Dp * 2          # x chunk, double-buffered, bf16
            + 2 * Tc * Bt * Hp * 2        # out chunk, double-buffered, bf16
            + Dp * 4 * Hp * 2             # W_ih^T (single-buffered)
            + Hp * 4 * Hp * 2             # W_hh^T (single-buffered)
            + 4 * Hp * 4                  # bias
            + 2 * 2 * Bt * Hp * 4         # resident h, c blocks
            + Tc * Bt * 4 * Hp * 4        # gx scratch (f32)
            + 2 * Bt * 128 * 4)           # lengths (lane-padded)

    out, h, c = pl.pallas_call(
        _lstm_layer_kernel,
        out_shape=(jax.ShapeDtypeStruct((Tp, B, Hp), jnp.bfloat16),
                   jax.ShapeDtypeStruct((B, Hp), jnp.float32),
                   jax.ShapeDtypeStruct((B, Hp), jnp.float32)),
        grid=(B // Bt, Tp // Tc),
        in_specs=[pl.BlockSpec((Bt, 1), lambda b, t: (b, 0)),          # lengths
                  pl.BlockSpec((Tc, Bt, Dp), lambda b, t: (t, b, 0)),  # x chunk
                  pl.BlockSpec((Dp, 4 * Hp), lambda b, t: (0, 0),      # W_ih^T
                               pipeline_mode=pl.Buffered(1)),
                  pl.BlockSpec((Hp, 4 * Hp), lambda b, t: (0, 0),      # W_hh^T
                               pipeline_mode=pl.Buffered(1)),
                  pl.BlockSpec((1, 4 * Hp), lambda b, t: (0, 0),       # bias
                               pipeline_mode=pl.Buffered(1))],
        out_specs=(pl.BlockSpec((Tc, Bt, Hp), lambda b, t: (t, b, 0)),
                   pl.BlockSpec((Bt, Hp), lambda b, t: (b, 0)),        # h resident
                   pl.BlockSpec((Bt, Hp), lambda b, t: (b, 0))),       # c resident
        scratch_shapes=[pltpu.VMEM((Tc * Bt, 4 * Hp), jnp.float32)],
        compiler_params=pltpu.CompilerParams(
            dimension_semantics=("parallel", "arbitrary"),
            vmem_limit_bytes=_vmem_limit(need)),
    )(lengths_b1, x_tbd, w_ih_t, w_hh_t, bias_14h)
    return out[:T], h, c


# ------------------------------- fc (Linear) kernel ---------------------------
def _fc_kernel(x_ref, w_ref, b_ref, o_ref):
    o_ref[...] = (jnp.dot(x_ref[...], w_ref[...],
                          preferred_element_type=jnp.float32) + b_ref[...])


def fc_apply(x_2d, w_t, b_1v, *, tile_m=256, tile_n=2048):
    """x_2d: (M, K) bf16, w_t: (K_pad, V) bf16, b_1v: (1, V) f32 -> (M, V) f32."""
    M, K = x_2d.shape
    V = w_t.shape[1]
    tm = min(tile_m, _round_up(M, 16))
    tn = min(tile_n, _round_up(V, 128))
    Mp = _round_up(M, tm)
    Vp = _round_up(V, tn)
    Kp = _round_up(K, 128)
    x_p = jnp.zeros((Mp, Kp), jnp.bfloat16).at[:M, :K].set(
        x_2d.astype(jnp.bfloat16))
    w_p = jnp.zeros((Kp, Vp), jnp.bfloat16).at[:K, :V].set(
        w_t.astype(jnp.bfloat16))
    b_p = jnp.zeros((1, Vp), jnp.float32).at[:, :V].set(b_1v)

    need = (2 * tm * Kp * 2 + 2 * Kp * tn * 2 + 2 * 8 * tn * 4 + 2 * tm * tn * 4)
    out = pl.pallas_call(
        _fc_kernel,
        out_shape=jax.ShapeDtypeStruct((Mp, Vp), jnp.float32),
        grid=(Mp // tm, Vp // tn),
        in_specs=[pl.BlockSpec((tm, Kp), lambda i, j: (i, 0)),
                  pl.BlockSpec((Kp, tn), lambda i, j: (0, j)),
                  pl.BlockSpec((1, tn), lambda i, j: (0, j))],
        out_specs=pl.BlockSpec((tm, tn), lambda i, j: (i, j)),
        compiler_params=pltpu.CompilerParams(
            dimension_semantics=("parallel", "parallel"),
            vmem_limit_bytes=_vmem_limit(need)),
    )(x_p, w_p, b_p)
    return out[:M, :V]


# --------------------------- weight prep (hoisted, one-time) -------------------
def _prep_lstm_weights(w_ih, w_hh, b_ih, b_hh, d_pad, h_pad):
    """PyTorch layout (4H, D)/(4H, H), gate row order (i, f, g, o).
    Returns transposed, column-gate-reordered (i, f, o, g), lane-padded weights:
    bf16 (d_pad, 4*h_pad), bf16 (h_pad, 4*h_pad), f32 (1, 4*h_pad)."""
    H = w_hh.shape[1]
    D = w_ih.shape[1]
    bias = (b_ih + b_hh).astype(jnp.float32)
    order = (0, 1, 3, 2)                                    # i, f, o, g
    w_ih_p = jnp.zeros((d_pad, 4 * h_pad), jnp.float32)
    w_hh_p = jnp.zeros((h_pad, 4 * h_pad), jnp.float32)
    bias_p = jnp.zeros((1, 4 * h_pad), jnp.float32)
    for dst, src in enumerate(order):
        w_ih_p = w_ih_p.at[:D, dst * h_pad:dst * h_pad + H].set(
            w_ih[src * H:(src + 1) * H].T)
        w_hh_p = w_hh_p.at[:H, dst * h_pad:dst * h_pad + H].set(
            w_hh[src * H:(src + 1) * H].T)
        bias_p = bias_p.at[0, dst * h_pad:dst * h_pad + H].set(
            bias[src * H:(src + 1) * H])
    return (w_ih_p.astype(jnp.bfloat16), w_hh_p.astype(jnp.bfloat16), bias_p)


def prepare_params(params, num_layers, hidden_dim):
    """One-time prep (hoisted out of the forward): pad, reorder gates, transpose,
    cast MXU operands to bf16."""
    E = params["embedding"].shape[1]
    V = params["fc_w"].shape[0]
    E_pad = _round_up(E, 128)
    H_pad = _round_up(hidden_dim, 128)
    prepped = {
        "embedding": params["embedding"].astype(jnp.float32),
        "fc_b": params["fc_b"].reshape(1, -1).astype(jnp.float32),
        "fc_w_t": jnp.zeros((H_pad, V), jnp.float32)
                     .at[:hidden_dim, :].set(params["fc_w"].T)
                     .astype(jnp.bfloat16),
    }
    in_pad = E_pad
    for layer in range(num_layers):
        w_ih_p, w_hh_p, b_p = _prep_lstm_weights(
            params[f"w_ih_{layer}"], params[f"w_hh_{layer}"],
            params[f"b_ih_{layer}"], params[f"b_hh_{layer}"], in_pad, H_pad)
        prepped[f"w_ih_{layer}"] = w_ih_p
        prepped[f"w_hh_{layer}"] = w_hh_p
        prepped[f"b_{layer}"] = b_p
        in_pad = H_pad
    return prepped


# ------------------------------- model forward --------------------------------
def lstm_model_forward(prepped, input_seq, lengths, num_layers, hidden_dim):
    B, T = input_seq.shape
    E = prepped["embedding"].shape[1]
    V = prepped["fc_w_t"].shape[1]
    B_pad = _round_up(B, 8)
    E_pad = _round_up(E, 128)
    H_pad = _round_up(hidden_dim, 128)

    # frozen embedding lookup (glue, plain JAX gather); dropout = identity (eval).
    emb = jnp.take(prepped["embedding"], input_seq, axis=0)         # (B, T, E)
    x = jnp.transpose(emb, (1, 0, 2))                               # (T, B, E)
    x = jnp.zeros((T, B_pad, E_pad), jnp.bfloat16).at[:, :B, :E].set(
        x.astype(jnp.bfloat16))
    lens = jnp.zeros((B_pad, 1), jnp.int32).at[:B, 0].set(lengths.astype(jnp.int32))

    # TODO(synk): fuse consecutive LSTM layers into one kernel (run layer-2's
    # recurrence on layer-1's chunk while it is still in VMEM) to remove the
    # inter-layer (T, B_pad, H_pad) HBM round trip; kept as separate calls here.
    h_list, c_list = [], []
    for layer in range(num_layers):
        x, h, c = lstm_layer(x, lens, prepped[f"w_ih_{layer}"],
                             prepped[f"w_hh_{layer}"], prepped[f"b_{layer}"])
        # inter-layer LSTM dropout -> identity in eval mode.
        h_list.append(h[:B, :hidden_dim])
        c_list.append(c[:B, :hidden_dim])

    # FC only over real batch rows (don't burn MXU flops / logits writeback on
    # all-zero padded rows).  Padded H lanes are exact zeros on both operands.
    x_real = x[:, :B, :]                                            # (T, B, H_pad)
    logits_flat = fc_apply(x_real.reshape(T * B, H_pad),
                           prepped["fc_w_t"], prepped["fc_b"])
    logits = logits_flat.reshape(T, B, V)
    logits = jnp.transpose(logits, (1, 0, 2))                       # (B, T, V)
    h_n = jnp.stack(h_list, axis=0)                                 # (L, B, H)
    c_n = jnp.stack(c_list, axis=0)
    return logits, (h_n, c_n)


# ------------------------------ pure-JAX reference -----------------------------
def _ref_forward(params, input_seq, lengths, num_layers, hidden_dim):
    emb = jnp.take(params["embedding"], input_seq, axis=0)
    B, T, _ = emb.shape
    H = hidden_dim
    hi = lax.Precision.HIGHEST
    x = emb
    h_list, c_list = [], []
    for layer in range(num_layers):
        w_ih = params[f"w_ih_{layer}"]
        w_hh = params[f"w_hh_{layer}"]
        b = params[f"b_ih_{layer}"] + params[f"b_hh_{layer}"]

        def step(carry, xt_t, w_ih=w_ih, w_hh=w_hh, b=b):
            h, c = carry
            xt, t = xt_t
            gates = (jnp.dot(xt, w_ih.T, precision=hi)
                     + jnp.dot(h, w_hh.T, precision=hi) + b)
            i_g = jax.nn.sigmoid(gates[:, :H])
            f_g = jax.nn.sigmoid(gates[:, H:2 * H])
            g_g = jnp.tanh(gates[:, 2 * H:3 * H])
            o_g = jax.nn.sigmoid(gates[:, 3 * H:])
            c_new = f_g * c + i_g * g_g
            h_new = o_g * jnp.tanh(c_new)
            valid = (lengths > t)[:, None]
            h2 = jnp.where(valid, h_new, h)
            c2 = jnp.where(valid, c_new, c)
            out = jnp.where(valid, h_new, 0.0)
            return (h2, c2), out

        (h, c), outs = lax.scan(
            step, (jnp.zeros((B, H), jnp.float32), jnp.zeros((B, H), jnp.float32)),
            (jnp.transpose(x, (1, 0, 2)), jnp.arange(T)))
        x = jnp.transpose(outs, (1, 0, 2))
        h_list.append(h)
        c_list.append(c)
    logits = jnp.dot(x, params["fc_w"].T, precision=hi) + params["fc_b"]
    return logits, (jnp.stack(h_list, 0), jnp.stack(c_list, 0))


# ------------------------------------ main -------------------------------------
def init_params(key, vocab_size, embedding_dim, hidden_dim, num_layers):
    keys = jax.random.split(key, 3 + 4 * num_layers)
    bound = 1.0 / jnp.sqrt(hidden_dim)
    params = {
        "embedding": jax.random.normal(keys[0], (vocab_size, embedding_dim),
                                       jnp.float32),
        "fc_w": jax.random.uniform(keys[1], (vocab_size, hidden_dim),
                                   jnp.float32, -bound, bound),
        "fc_b": jax.random.uniform(keys[2], (vocab_size,),
                                   jnp.float32, -bound, bound),
    }
    kidx = 3
    for layer in range(num_layers):
        in_dim = embedding_dim if layer == 0 else hidden_dim
        params[f"w_ih_{layer}"] = jax.random.uniform(
            keys[kidx + 0], (4 * hidden_dim, in_dim), jnp.float32, -bound, bound)
        params[f"w_hh_{layer}"] = jax.random.uniform(
            keys[kidx + 1], (4 * hidden_dim, hidden_dim), jnp.float32, -bound, bound)
        params[f"b_ih_{layer}"] = jax.random.uniform(
            keys[kidx + 2], (4 * hidden_dim,), jnp.float32, -bound, bound)
        params[f"b_hh_{layer}"] = jax.random.uniform(
            keys[kidx + 3], (4 * hidden_dim,), jnp.float32, -bound, bound)
        kidx += 4
    return params


if __name__ == "__main__":
    vocab_size, embedding_dim, hidden_dim, num_layers = 64, 32, 32, 2
    B, T = 2, 8

    key = jax.random.PRNGKey(0)
    k_param, k_seq = jax.random.split(key)
    params = init_params(k_param, vocab_size, embedding_dim, hidden_dim, num_layers)

    input_seq = jax.random.randint(k_seq, (B, T), 0, vocab_size, dtype=jnp.int32)
    # max(lengths) == T so pad_packed_sequence's trimmed length equals T
    # (keeps static shapes for the kernels).
    lengths = jnp.array([T, 5], dtype=jnp.int32)

    # One-time weight prep (hoisted out of the per-call forward), jitted forward.
    prepped = prepare_params(params, num_layers, hidden_dim)
    fwd = jax.jit(functools.partial(lstm_model_forward,
                                    num_layers=num_layers, hidden_dim=hidden_dim))

    logits, (h_n, c_n) = fwd(prepped, input_seq, lengths)
    jax.block_until_ready((logits, h_n, c_n))

    assert logits.shape == (B, T, vocab_size)
    assert h_n.shape == (num_layers, B, hidden_dim)
    assert c_n.shape == (num_layers, B, hidden_dim)

    ref_logits, (ref_h, ref_c) = _ref_forward(params, input_seq, lengths,
                                              num_layers, hidden_dim)
    # bf16 MXU operands + bf16 inter-layer activations vs f32 HIGHEST reference.
    assert jnp.allclose(logits, ref_logits, atol=2e-2, rtol=2e-2)
    assert jnp.allclose(h_n, ref_h, atol=2e-2, rtol=2e-2)
    assert jnp.allclose(c_n, ref_c, atol=2e-2, rtol=2e-2)

    # TODO(synk): dropout (training mode) has no deterministic PyTorch-matching
    # equivalent here; eval-mode (identity) semantics are implemented.
    print("KERNEL_OK")
</pallas_src>

<mosaic_0001>
module attributes {stable_mosaic.version = 11 : i64} {
  func.func @_lstm_layer_kernel(%arg0: i32, %arg1: i32, %arg2: memref<8x1xi32, #tpu.memory_space<vmem>>, %arg3: memref<8x8x128xbf16, #tpu.memory_space<vmem>>, %arg4: memref<128x512xbf16, #tpu.memory_space<vmem>>, %arg5: memref<128x512xbf16, #tpu.memory_space<vmem>>, %arg6: memref<1x512xf32, #tpu.memory_space<vmem>>, %arg7: memref<8x8x128xbf16, #tpu.memory_space<vmem>>, %arg8: memref<8x128xf32, #tpu.memory_space<vmem>>, %arg9: memref<8x128xf32, #tpu.memory_space<vmem>>, %arg10: memref<64x512xf32, #tpu.memory_space<vmem>>) attributes {dimension_semantics = [#tpu.dimension_semantics<parallel>, #tpu.dimension_semantics<arbitrary>], iteration_bounds = array<i64: 1, 1>, scalar_prefetch = 0 : i64, scratch_operands = 1 : i64, tpu.core_type = #tpu.core_type<tc>, window_params = [{transform_indices = @transform_0, window_bounds = array<i64: 8, 1>}, {transform_indices = @transform_1, window_bounds = array<i64: 8, 8, 128>}, {pipeline_mode = #tpu.pipeline_mode<synchronous>, transform_indices = @transform_2, window_bounds = array<i64: 128, 512>}, {pipeline_mode = #tpu.pipeline_mode<synchronous>, transform_indices = @transform_3, window_bounds = array<i64: 128, 512>}, {pipeline_mode = #tpu.pipeline_mode<synchronous>, transform_indices = @transform_4, window_bounds = array<i64: 1, 512>}, {transform_indices = @transform_5, window_bounds = array<i64: 8, 8, 128>}, {transform_indices = @transform_6, window_bounds = array<i64: 8, 128>}, {transform_indices = @transform_7, window_bounds = array<i64: 8, 128>}]} {
    %c8_i32 = arith.constant 8 : i32
    %0 = arith.muli %arg1, %c8_i32 : i32
    %c0_i32 = arith.constant 0 : i32
    %1 = arith.cmpi eq, %arg1, %c0_i32 : i32
    %2 = arith.extui %1 : i1 to i32
    %c0_i32_0 = arith.constant 0 : i32
    %3 = arith.cmpi ne, %2, %c0_i32_0 : i32
    scf.if %3 {
      %cst_135 = arith.constant 0.000000e+00 : f32
      %374 = vector.broadcast %cst_135 : f32 to vector<8x128xf32>
      %c0_136 = arith.constant 0 : index
      %c0_137 = arith.constant 0 : index
      %375 = vector.load %arg8[%c0_136, %c0_137] : memref<8x128xf32, #tpu.memory_space<vmem>>, vector<8x128xf32>
      tpu.vector_store %arg8[%c0_136, %c0_137], %374 {strides = array<i32>} : memref<8x128xf32, #tpu.memory_space<vmem>>, vector<8x128xf32>,
      %cst_138 = arith.constant 0.000000e+00 : f32
      %376 = vector.broadcast %cst_138 : f32 to vector<8x128xf32>
      %c0_139 = arith.constant 0 : index
      %c0_140 = arith.constant 0 : index
      %377 = vector.load %arg9[%c0_139, %c0_140] : memref<8x128xf32, #tpu.memory_space<vmem>>, vector<8x128xf32>
      tpu.vector_store %arg9[%c0_139, %c0_140], %376 {strides = array<i32>} : memref<8x128xf32, #tpu.memory_space<vmem>>, vector<8x128xf32>,
    } else {
    }
    %c0 = arith.constant 0 : index
    %c0_1 = arith.constant 0 : index
    %c0_2 = arith.constant 0 : index
    %4 = vector.load %arg3[%c0, %c0_1, %c0_2] : memref<8x8x128xbf16, #tpu.memory_space<vmem>>, vector<8x8x128xbf16>
    %5 = vector.shape_cast %4 : vector<8x8x128xbf16> to vector<64x128xbf16>
    %c0_3 = arith.constant 0 : index
    %c0_4 = arith.constant 0 : index
    %6 = vector.load %arg4[%c0_3, %c0_4] : memref<128x512xbf16, #tpu.memory_space<vmem>>, vector<128x512xbf16>
    %cst = arith.constant dense<0.000000e+00> : vector<64x512xf32>
    %7 = tpu.matmul %5, %6, %cst {dimension_numbers = #tpu.dot_dimension_numbers<[1], [0], [0], [1], [0, 0, 1, 1], [], []>} : vector<64x128xbf16>, vector<128x512xbf16>, vector<64x512xf32> -> vector<64x512xf32>
    %c0_5 = arith.constant 0 : index
    %c0_6 = arith.constant 0 : index
    %8 = vector.load %arg6[%c0_5, %c0_6] : memref<1x512xf32, #tpu.memory_space<vmem>>, vector<1x512xf32>
    %9 = vector.broadcast %8 : vector<1x512xf32> to vector<64x512xf32>
    %10 = arith.addf %7, %9 : vector<64x512xf32>
    %c0_7 = arith.constant 0 : index
    %c0_8 = arith.constant 0 : index
    %11 = vector.load %arg10[%c0_7, %c0_8] : memref<64x512xf32, #tpu.memory_space<vmem>>, vector<64x512xf32>
    tpu.vector_store %arg10[%c0_7, %c0_8], %10 {strides = array<i32>} : memref<64x512xf32, #tpu.memory_space<vmem>>, vector<64x512xf32>,
    %c0_9 = arith.constant 0 : index
    %c0_10 = arith.constant 0 : index
    %12 = vector.load %arg2[%c0_9, %c0_10] : memref<8x1xi32, #tpu.memory_space<vmem>>, vector<8x1xi32>
    %c0_11 = arith.constant 0 : index
    %c0_12 = arith.constant 0 : index
    %13 = vector.load %arg5[%c0_11, %c0_12] : memref<128x512xbf16, #tpu.memory_space<vmem>>, vector<128x512xbf16>
    %c0_i32_13 = arith.constant 0 : i32
    %c0_14 = arith.constant 0 : index
    %c0_15 = arith.constant 0 : index
    %14 = vector.load %arg8[%c0_14, %c0_15] : memref<8x128xf32, #tpu.memory_space<vmem>>, vector<8x128xf32>
    %c0_16 = arith.constant 0 : index
    %c0_17 = arith.constant 0 : index
    %15 = vector.load %arg9[%c0_16, %c0_17] : memref<8x128xf32, #tpu.memory_space<vmem>>, vector<8x128xf32>
    %c8_i32_18 = arith.constant 8 : i32
    %16 = arith.muli %c0_i32_13, %c8_i32_18 : i32
    %17 = tpu.assume_multiple %16, 8 : i32
    %18 = arith.index_cast %17 : i32 to index
    %c0_19 = arith.constant 0 : index
    %19 = vector.load %arg10[%18, %c0_19] : memref<64x512xf32, #tpu.memory_space<vmem>>, vector<8x512xf32>
    %20 = arith.truncf %14 : vector<8x128xf32> to vector<8x128xbf16>
    %cst_20 = arith.constant dense<0.000000e+00> : vector<8x512xf32>
    %21 = tpu.matmul %20, %13, %cst_20 {dimension_numbers = #tpu.dot_dimension_numbers<[1], [0], [0], [1], [0, 0, 1, 1], [], []>} : vector<8x128xbf16>, vector<128x512xbf16>, vector<8x512xf32> -> vector<8x512xf32>
    %22 = arith.addf %19, %21 : vector<8x512xf32>
    %23 = vector.extract_strided_slice %22 {offsets = [0, 0], sizes = [8, 384], strides = [1, 1]} : vector<8x512xf32> to vector<8x384xf32>
    %24 = arith.negf %23 : vector<8x384xf32>
    %25 = math.exp %24 : vector<8x384xf32>
    %cst_21 = arith.constant 1.000000e+00 : f32
    %26 = vector.broadcast %cst_21 : f32 to vector<8x384xf32>
    %27 = arith.addf %26, %25 : vector<8x384xf32>
    %28 = arith.divf %26, %27 : vector<8x384xf32>
    %29 = vector.extract_strided_slice %22 {offsets = [0, 384], sizes = [8, 128], strides = [1, 1]} : vector<8x512xf32> to vector<8x128xf32>
    %30 = math.tanh %29 : vector<8x128xf32>
    %31 = vector.extract_strided_slice %28 {offsets = [0, 0], sizes = [8, 128], strides = [1, 1]} : vector<8x384xf32> to vector<8x128xf32>
    %32 = vector.extract_strided_slice %28 {offsets = [0, 128], sizes = [8, 128], strides = [1, 1]} : vector<8x384xf32> to vector<8x128xf32>
    %33 = vector.extract_strided_slice %28 {offsets = [0, 256], sizes = [8, 128], strides = [1, 1]} : vector<8x384xf32> to vector<8x128xf32>
    %34 = arith.mulf %32, %15 : vector<8x128xf32>
    %35 = arith.mulf %31, %30 : vector<8x128xf32>
    %36 = arith.addf %34, %35 : vector<8x128xf32>
    %37 = math.tanh %36 : vector<8x128xf32>
    %38 = arith.mulf %33, %37 : vector<8x128xf32>
    %39 = arith.addi %0, %c0_i32_13 : i32
    %40 = vector.broadcast %39 : i32 to vector<8x1xi32>
    %41 = arith.cmpi sgt, %12, %40 : vector<8x1xi32>
    %42 = vector.shape_cast %41 : vector<8x1xi1> to vector<8x1xi1>
    %43 = vector.broadcast %42 : vector<8x1xi1> to vector<8x128xi1>
    %44 = arith.select %43, %38, %14 : vector<8x128xi1>, vector<8x128xf32>
    %c0_22 = arith.constant 0 : index
    %c0_23 = arith.constant 0 : index
    %45 = vector.load %arg8[%c0_22, %c0_23] : memref<8x128xf32, #tpu.memory_space<vmem>>, vector<8x128xf32>
    tpu.vector_store %arg8[%c0_22, %c0_23], %44 {strides = array<i32>} : memref<8x128xf32, #tpu.memory_space<vmem>>, vector<8x128xf32>,
    %46 = vector.shape_cast %41 : vector<8x1xi1> to vector<8x1xi1>
    %47 = vector.broadcast %46 : vector<8x1xi1> to vector<8x128xi1>
    %48 = arith.select %47, %36, %15 : vector<8x128xi1>, vector<8x128xf32>
    %c0_24 = arith.constant 0 : index
    %c0_25 = arith.constant 0 : index
    %49 = vector.load %arg9[%c0_24, %c0_25] : memref<8x128xf32, #tpu.memory_space<vmem>>, vector<8x128xf32>
    tpu.vector_store %arg9[%c0_24, %c0_25], %48 {strides = array<i32>} : memref<8x128xf32, #tpu.memory_space<vmem>>, vector<8x128xf32>,
    %cst_26 = arith.constant 0.000000e+00 : f32
    %50 = vector.shape_cast %41 : vector<8x1xi1> to vector<8x1xi1>
    %51 = vector.broadcast %50 : vector<8x1xi1> to vector<8x128xi1>
    %52 = vector.broadcast %cst_26 : f32 to vector<8x128xf32>
    %53 = arith.select %51, %38, %52 : vector<8x128xi1>, vector<8x128xf32>
    %54 = arith.truncf %53 : vector<8x128xf32> to vector<8x128xbf16>
    %55 = arith.index_cast %c0_i32_13 : i32 to index
    %c0_27 = arith.constant 0 : index
    %c0_28 = arith.constant 0 : index
    %56 = vector.load %arg7[%55, %c0_27, %c0_28] : memref<8x8x128xbf16, #tpu.memory_space<vmem>>, vector<1x8x128xbf16>
    %57 = vector.shape_cast %56 : vector<1x8x128xbf16> to vector<8x128xbf16>
    %58 = vector.shape_cast %54 : vector<8x128xbf16> to vector<1x8x128xbf16>
    tpu.vector_store %arg7[%55, %c0_27, %c0_28], %58 {strides = array<i32>} : memref<8x8x128xbf16, #tpu.memory_space<vmem>>, vector<1x8x128xbf16>,
    %c1_i32 = arith.constant 1 : i32
    %c0_29 = arith.constant 0 : index
    %c0_30 = arith.constant 0 : index
    %59 = vector.load %arg8[%c0_29, %c0_30] : memref<8x128xf32, #tpu.memory_space<vmem>>, vector<8x128xf32>
    %c0_31 = arith.constant 0 : index
    %c0_32 = arith.constant 0 : index
    %60 = vector.load %arg9[%c0_31, %c0_32] : memref<8x128xf32, #tpu.memory_space<vmem>>, vector<8x128xf32>
    %c8_i32_33 = arith.constant 8 : i32
    %61 = arith.muli %c1_i32, %c8_i32_33 : i32
    %62 = tpu.assume_multiple %61, 8 : i32
    %63 = arith.index_cast %62 : i32 to index
    %c0_34 = arith.constant 0 : index
    %64 = vector.load %arg10[%63, %c0_34] : memref<64x512xf32, #tpu.memory_space<vmem>>, vector<8x512xf32>
    %65 = arith.truncf %59 : vector<8x128xf32> to vector<8x128xbf16>
    %cst_35 = arith.constant dense<0.000000e+00> : vector<8x512xf32>
    %66 = tpu.matmul %65, %13, %cst_35 {dimension_numbers = #tpu.dot_dimension_numbers<[1], [0], [0], [1], [0, 0, 1, 1], [], []>} : vector<8x128xbf16>, vector<128x512xbf16>, vector<8x512xf32> -> vector<8x512xf32>
    %67 = arith.addf %64, %66 : vector<8x512xf32>
    %68 = vector.extract_strided_slice %67 {offsets = [0, 0], sizes = [8, 384], strides = [1, 1]} : vector<8x512xf32> to vector<8x384xf32>
    %69 = arith.negf %68 : vector<8x384xf32>
    %70 = math.exp %69 : vector<8x384xf32>
    %cst_36 = arith.constant 1.000000e+00 : f32
    %71 = vector.broadcast %cst_36 : f32 to vector<8x384xf32>
    %72 = arith.addf %71, %70 : vector<8x384xf32>
    %73 = arith.divf %71, %72 : vector<8x384xf32>
    %74 = vector.extract_strided_slice %67 {offsets = [0, 384], sizes = [8, 128], strides = [1, 1]} : vector<8x512xf32> to vector<8x128xf32>
    %75 = math.tanh %74 : vector<8x128xf32>
    %76 = vector.extract_strided_slice %73 {offsets = [0, 0], sizes = [8, 128], strides = [1, 1]} : vector<8x384xf32> to vector<8x128xf32>
    %77 = vector.extract_strided_slice %73 {offsets = [0, 128], sizes = [8, 128], strides = [1, 1]} : vector<8x384xf32> to vector<8x128xf32>
    %78 = vector.extract_strided_slice %73 {offsets = [0, 256], sizes = [8, 128], strides = [1, 1]} : vector<8x384xf32> to vector<8x128xf32>
    %79 = arith.mulf %77, %60 : vector<8x128xf32>
    %80 = arith.mulf %76, %75 : vector<8x128xf32>
    %81 = arith.addf %79, %80 : vector<8x128xf32>
    %82 = math.tanh %81 : vector<8x128xf32>
    %83 = arith.mulf %78, %82 : vector<8x128xf32>
    %84 = arith.addi %0, %c1_i32 : i32
    %85 = vector.broadcast %84 : i32 to vector<8x1xi32>
    %86 = arith.cmpi sgt, %12, %85 : vector<8x1xi32>
    %87 = vector.shape_cast %86 : vector<8x1xi1> to vector<8x1xi1>
    %88 = vector.broadcast %87 : vector<8x1xi1> to vector<8x128xi1>
    %89 = arith.select %88, %83, %59 : vector<8x128xi1>, vector<8x128xf32>
    %c0_37 = arith.constant 0 : index
    %c0_38 = arith.constant 0 : index
    %90 = vector.load %arg8[%c0_37, %c0_38] : memref<8x128xf32, #tpu.memory_space<vmem>>, vector<8x128xf32>
    tpu.vector_store %arg8[%c0_37, %c0_38], %89 {strides = array<i32>} : memref<8x128xf32, #tpu.memory_space<vmem>>, vector<8x128xf32>,
    %91 = vector.shape_cast %86 : vector<8x1xi1> to vector<8x1xi1>
    %92 = vector.broadcast %91 : vector<8x1xi1> to vector<8x128xi1>
    %93 = arith.select %92, %81, %60 : vector<8x128xi1>, vector<8x128xf32>
    %c0_39 = arith.constant 0 : index
    %c0_40 = arith.constant 0 : index
    %94 = vector.load %arg9[%c0_39, %c0_40] : memref<8x128xf32, #tpu.memory_space<vmem>>, vector<8x128xf32>
    tpu.vector_store %arg9[%c0_39, %c0_40], %93 {strides = array<i32>} : memref<8x128xf32, #tpu.memory_space<vmem>>, vector<8x128xf32>,
    %cst_41 = arith.constant 0.000000e+00 : f32
    %95 = vector.shape_cast %86 : vector<8x1xi1> to vector<8x1xi1>
    %96 = vector.broadcast %95 : vector<8x1xi1> to vector<8x128xi1>
    %97 = vector.broadcast %cst_41 : f32 to vector<8x128xf32>
    %98 = arith.select %96, %83, %97 : vector<8x128xi1>, vector<8x128xf32>
    %99 = arith.truncf %98 : vector<8x128xf32> to vector<8x128xbf16>
    %100 = arith.index_cast %c1_i32 : i32 to index
    %c0_42 = arith.constant 0 : index
    %c0_43 = arith.constant 0 : index
    %101 = vector.load %arg7[%100, %c0_42, %c0_43] : memref<8x8x128xbf16, #tpu.memory_space<vmem>>, vector<1x8x128xbf16>
    %102 = vector.shape_cast %101 : vector<1x8x128xbf16> to vector<8x128xbf16>
    %103 = vector.shape_cast %99 : vector<8x128xbf16> to vector<1x8x128xbf16>
    tpu.vector_store %arg7[%100, %c0_42, %c0_43], %103 {strides = array<i32>} : memref<8x8x128xbf16, #tpu.memory_space<vmem>>, vector<1x8x128xbf16>,
    %c2_i32 = arith.constant 2 : i32
    %c0_44 = arith.constant 0 : index
    %c0_45 = arith.constant 0 : index
    %104 = vector.load %arg8[%c0_44, %c0_45] : memref<8x128xf32, #tpu.memory_space<vmem>>, vector<8x128xf32>
    %c0_46 = arith.constant 0 : index
    %c0_47 = arith.constant 0 : index
    %105 = vector.load %arg9[%c0_46, %c0_47] : memref<8x128xf32, #tpu.memory_space<vmem>>, vector<8x128xf32>
    %c8_i32_48 = arith.constant 8 : i32
    %106 = arith.muli %c2_i32, %c8_i32_48 : i32
    %107 = tpu.assume_multiple %106, 8 : i32
    %108 = arith.index_cast %107 : i32 to index
    %c0_49 = arith.constant 0 : index
    %109 = vector.load %arg10[%108, %c0_49] : memref<64x512xf32, #tpu.memory_space<vmem>>, vector<8x512xf32>
    %110 = arith.truncf %104 : vector<8x128xf32> to vector<8x128xbf16>
    %cst_50 = arith.constant dense<0.000000e+00> : vector<8x512xf32>
    %111 = tpu.matmul %110, %13, %cst_50 {dimension_numbers = #tpu.dot_dimension_numbers<[1], [0], [0], [1], [0, 0, 1, 1], [], []>} : vector<8x128xbf16>, vector<128x512xbf16>, vector<8x512xf32> -> vector<8x512xf32>
    %112 = arith.addf %109, %111 : vector<8x512xf32>
    %113 = vector.extract_strided_slice %112 {offsets = [0, 0], sizes = [8, 384], strides = [1, 1]} : vector<8x512xf32> to vector<8x384xf32>
    %114 = arith.negf %113 : vector<8x384xf32>
    %115 = math.exp %114 : vector<8x384xf32>
    %cst_51 = arith.constant 1.000000e+00 : f32
    %116 = vector.broadcast %cst_51 : f32 to vector<8x384xf32>
    %117 = arith.addf %116, %115 : vector<8x384xf32>
    %118 = arith.divf %116, %117 : vector<8x384xf32>
    %119 = vector.extract_strided_slice %112 {offsets = [0, 384], sizes = [8, 128], strides = [1, 1]} : vector<8x512xf32> to vector<8x128xf32>
    %120 = math.tanh %119 : vector<8x128xf32>
    %121 = vector.extract_strided_slice %118 {offsets = [0, 0], sizes = [8, 128], strides = [1, 1]} : vector<8x384xf32> to vector<8x128xf32>
    %122 = vector.extract_strided_slice %118 {offsets = [0, 128], sizes = [8, 128], strides = [1, 1]} : vector<8x384xf32> to vector<8x128xf32>
    %123 = vector.extract_strided_slice %118 {offsets = [0, 256], sizes = [8, 128], strides = [1, 1]} : vector<8x384xf32> to vector<8x128xf32>
    %124 = arith.mulf %122, %105 : vector<8x128xf32>
    %125 = arith.mulf %121, %120 : vector<8x128xf32>
    %126 = arith.addf %124, %125 : vector<8x128xf32>
    %127 = math.tanh %126 : vector<8x128xf32>
    %128 = arith.mulf %123, %127 : vector<8x128xf32>
    %129 = arith.addi %0, %c2_i32 : i32
    %130 = vector.broadcast %129 : i32 to vector<8x1xi32>
    %131 = arith.cmpi sgt, %12, %130 : vector<8x1xi32>
    %132 = vector.shape_cast %131 : vector<8x1xi1> to vector<8x1xi1>
    %133 = vector.broadcast %132 : vector<8x1xi1> to vector<8x128xi1>
    %134 = arith.select %133, %128, %104 : vector<8x128xi1>, vector<8x128xf32>
    %c0_52 = arith.constant 0 : index
    %c0_53 = arith.constant 0 : index
    %135 = vector.load %arg8[%c0_52, %c0_53] : memref<8x128xf32, #tpu.memory_space<vmem>>, vector<8x128xf32>
    tpu.vector_store %arg8[%c0_52, %c0_53], %134 {strides = array<i32>} : memref<8x128xf32, #tpu.memory_space<vmem>>, vector<8x128xf32>,
    %136 = vector.shape_cast %131 : vector<8x1xi1> to vector<8x1xi1>
    %137 = vector.broadcast %136 : vector<8x1xi1> to vector<8x128xi1>
    %138 = arith.select %137, %126, %105 : vector<8x128xi1>, vector<8x128xf32>
    %c0_54 = arith.constant 0 : index
    %c0_55 = arith.constant 0 : index
    %139 = vector.load %arg9[%c0_54, %c0_55] : memref<8x128xf32, #tpu.memory_space<vmem>>, vector<8x128xf32>
    tpu.vector_store %arg9[%c0_54, %c0_55], %138 {strides = array<i32>} : memref<8x128xf32, #tpu.memory_space<vmem>>, vector<8x128xf32>,
    %cst_56 = arith.constant 0.000000e+00 : f32
    %140 = vector.shape_cast %131 : vector<8x1xi1> to vector<8x1xi1>
    %141 = vector.broadcast %140 : vector<8x1xi1> to vector<8x128xi1>
    %142 = vector.broadcast %cst_56 : f32 to vector<8x128xf32>
    %143 = arith.select %141, %128, %142 : vector<8x128xi1>, vector<8x128xf32>
    %144 = arith.truncf %143 : vector<8x128xf32> to vector<8x128xbf16>
    %145 = arith.index_cast %c2_i32 : i32 to index
    %c0_57 = arith.constant 0 : index
    %c0_58 = arith.constant 0 : index
    %146 = vector.load %arg7[%145, %c0_57, %c0_58] : memref<8x8x128xbf16, #tpu.memory_space<vmem>>, vector<1x8x128xbf16>
    %147 = vector.shape_cast %146 : vector<1x8x128xbf16> to vector<8x128xbf16>
    %148 = vector.shape_cast %144 : vector<8x128xbf16> to vector<1x8x128xbf16>
    tpu.vector_store %arg7[%145, %c0_57, %c0_58], %148 {strides = array<i32>} : memref<8x8x128xbf16, #tpu.memory_space<vmem>>, vector<1x8x128xbf16>,
    %c3_i32 = arith.constant 3 : i32
    %c0_59 = arith.constant 0 : index
    %c0_60 = arith.constant 0 : index
    %149 = vector.load %arg8[%c0_59, %c0_60] : memref<8x128xf32, #tpu.memory_space<vmem>>, vector<8x128xf32>
    %c0_61 = arith.constant 0 : index
    %c0_62 = arith.constant 0 : index
    %150 = vector.load %arg9[%c0_61, %c0_62] : memref<8x128xf32, #tpu.memory_space<vmem>>, vector<8x128xf32>
    %c8_i32_63 = arith.constant 8 : i32
    %151 = arith.muli %c3_i32, %c8_i32_63 : i32
    %152 = tpu.assume_multiple %151, 8 : i32
    %153 = arith.index_cast %152 : i32 to index
    %c0_64 = arith.constant 0 : index
    %154 = vector.load %arg10[%153, %c0_64] : memref<64x512xf32, #tpu.memory_space<vmem>>, vector<8x512xf32>
    %155 = arith.truncf %149 : vector<8x128xf32> to vector<8x128xbf16>
    %cst_65 = arith.constant dense<0.000000e+00> : vector<8x512xf32>
    %156 = tpu.matmul %155, %13, %cst_65 {dimension_numbers = #tpu.dot_dimension_numbers<[1], [0], [0], [1], [0, 0, 1, 1], [], []>} : vector<8x128xbf16>, vector<128x512xbf16>, vector<8x512xf32> -> vector<8x512xf32>
    %157 = arith.addf %154, %156 : vector<8x512xf32>
    %158 = vector.extract_strided_slice %157 {offsets = [0, 0], sizes = [8, 384], strides = [1, 1]} : vector<8x512xf32> to vector<8x384xf32>
    %159 = arith.negf %158 : vector<8x384xf32>
    %160 = math.exp %159 : vector<8x384xf32>
    %cst_66 = arith.constant 1.000000e+00 : f32
    %161 = vector.broadcast %cst_66 : f32 to vector<8x384xf32>
    %162 = arith.addf %161, %160 : vector<8x384xf32>
    %163 = arith.divf %161, %162 : vector<8x384xf32>
    %164 = vector.extract_strided_slice %157 {offsets = [0, 384], sizes = [8, 128], strides = [1, 1]} : vector<8x512xf32> to vector<8x128xf32>
    %165 = math.tanh %164 : vector<8x128xf32>
    %166 = vector.extract_strided_slice %163 {offsets = [0, 0], sizes = [8, 128], strides = [1, 1]} : vector<8x384xf32> to vector<8x128xf32>
    %167 = vector.extract_strided_slice %163 {offsets = [0, 128], sizes = [8, 128], strides = [1, 1]} : vector<8x384xf32> to vector<8x128xf32>
    %168 = vector.extract_strided_slice %163 {offsets = [0, 256], sizes = [8, 128], strides = [1, 1]} : vector<8x384xf32> to vector<8x128xf32>
    %169 = arith.mulf %167, %150 : vector<8x128xf32>
    %170 = arith.mulf %166, %165 : vector<8x128xf32>
    %171 = arith.addf %169, %170 : vector<8x128xf32>
    %172 = math.tanh %171 : vector<8x128xf32>
    %173 = arith.mulf %168, %172 : vector<8x128xf32>
    %174 = arith.addi %0, %c3_i32 : i32
    %175 = vector.broadcast %174 : i32 to vector<8x1xi32>
    %176 = arith.cmpi sgt, %12, %175 : vector<8x1xi32>
    %177 = vector.shape_cast %176 : vector<8x1xi1> to vector<8x1xi1>
    %178 = vector.broadcast %177 : vector<8x1xi1> to vector<8x128xi1>
    %179 = arith.select %178, %173, %149 : vector<8x128xi1>, vector<8x128xf32>
    %c0_67 = arith.constant 0 : index
    %c0_68 = arith.constant 0 : index
    %180 = vector.load %arg8[%c0_67, %c0_68] : memref<8x128xf32, #tpu.memory_space<vmem>>, vector<8x128xf32>
    tpu.vector_store %arg8[%c0_67, %c0_68], %179 {strides = array<i32>} : memref<8x128xf32, #tpu.memory_space<vmem>>, vector<8x128xf32>,
    %181 = vector.shape_cast %176 : vector<8x1xi1> to vector<8x1xi1>
    %182 = vector.broadcast %181 : vector<8x1xi1> to vector<8x128xi1>
    %183 = arith.select %182, %171, %150 : vector<8x128xi1>, vector<8x128xf32>
    %c0_69 = arith.constant 0 : index
    %c0_70 = arith.constant 0 : index
    %184 = vector.load %arg9[%c0_69, %c0_70] : memref<8x128xf32, #tpu.memory_space<vmem>>, vector<8x128xf32>
    tpu.vector_store %arg9[%c0_69, %c0_70], %183 {strides = array<i32>} : memref<8x128xf32, #tpu.memory_space<vmem>>, vector<8x128xf32>,
    %cst_71 = arith.constant 0.000000e+00 : f32
    %185 = vector.shape_cast %176 : vector<8x1xi1> to vector<8x1xi1>
    %186 = vector.broadcast %185 : vector<8x1xi1> to vector<8x128xi1>
    %187 = vector.broadcast %cst_71 : f32 to vector<8x128xf32>
    %188 = arith.select %186, %173, %187 : vector<8x128xi1>, vector<8x128xf32>
    %189 = arith.truncf %188 : vector<8x128xf32> to vector<8x128xbf16>
    %190 = arith.index_cast %c3_i32 : i32 to index
    %c0_72 = arith.constant 0 : index
    %c0_73 = arith.constant 0 : index
    %191 = vector.load %arg7[%190, %c0_72, %c0_73] : memref<8x8x128xbf16, #tpu.memory_space<vmem>>, vector<1x8x128xbf16>
    %192 = vector.shape_cast %191 : vector<1x8x128xbf16> to vector<8x128xbf16>
    %193 = vector.shape_cast %189 : vector<8x128xbf16> to vector<1x8x128xbf16>
    tpu.vector_store %arg7[%190, %c0_72, %c0_73], %193 {strides = array<i32>} : memref<8x8x128xbf16, #tpu.memory_space<vmem>>, vector<1x8x128xbf16>,
    %c4_i32 = arith.constant 4 : i32
    %c0_74 = arith.constant 0 : index
    %c0_75 = arith.constant 0 : index
    %194 = vector.load %arg8[%c0_74, %c0_75] : memref<8x128xf32, #tpu.memory_space<vmem>>, vector<8x128xf32>
    %c0_76 = arith.constant 0 : index
    %c0_77 = arith.constant 0 : index
    %195 = vector.load %arg9[%c0_76, %c0_77] : memref<8x128xf32, #tpu.memory_space<vmem>>, vector<8x128xf32>
    %c8_i32_78 = arith.constant 8 : i32
    %196 = arith.muli %c4_i32, %c8_i32_78 : i32
    %197 = tpu.assume_multiple %196, 8 : i32
    %198 = arith.index_cast %197 : i32 to index
    %c0_79 = arith.constant 0 : index
    %199 = vector.load %arg10[%198, %c0_79] : memref<64x512xf32, #tpu.memory_space<vmem>>, vector<8x512xf32>
    %200 = arith.truncf %194 : vector<8x128xf32> to vector<8x128xbf16>
    %cst_80 = arith.constant dense<0.000000e+00> : vector<8x512xf32>
    %201 = tpu.matmul %200, %13, %cst_80 {dimension_numbers = #tpu.dot_dimension_numbers<[1], [0], [0], [1], [0, 0, 1, 1], [], []>} : vector<8x128xbf16>, vector<128x512xbf16>, vector<8x512xf32> -> vector<8x512xf32>
    %202 = arith.addf %199, %201 : vector<8x512xf32>
    %203 = vector.extract_strided_slice %202 {offsets = [0, 0], sizes = [8, 384], strides = [1, 1]} : vector<8x512xf32> to vector<8x384xf32>
    %204 = arith.negf %203 : vector<8x384xf32>
    %205 = math.exp %204 : vector<8x384xf32>
    %cst_81 = arith.constant 1.000000e+00 : f32
    %206 = vector.broadcast %cst_81 : f32 to vector<8x384xf32>
    %207 = arith.addf %206, %205 : vector<8x384xf32>
    %208 = arith.divf %206, %207 : vector<8x384xf32>
    %209 = vector.extract_strided_slice %202 {offsets = [0, 384], sizes = [8, 128], strides = [1, 1]} : vector<8x512xf32> to vector<8x128xf32>
    %210 = math.tanh %209 : vector<8x128xf32>
    %211 = vector.extract_strided_slice %208 {offsets = [0, 0], sizes = [8, 128], strides = [1, 1]} : vector<8x384xf32> to vector<8x128xf32>
    %212 = vector.extract_strided_slice %208 {offsets = [0, 128], sizes = [8, 128], strides = [1, 1]} : vector<8x384xf32> to vector<8x128xf32>
    %213 = vector.extract_strided_slice %208 {offsets = [0, 256], sizes = [8, 128], strides = [1, 1]} : vector<8x384xf32> to vector<8x128xf32>
    %214 = arith.mulf %212, %195 : vector<8x128xf32>
    %215 = arith.mulf %211, %210 : vector<8x128xf32>
    %216 = arith.addf %214, %215 : vector<8x128xf32>
    %217 = math.tanh %216 : vector<8x128xf32>
    %218 = arith.mulf %213, %217 : vector<8x128xf32>
    %219 = arith.addi %0, %c4_i32 : i32
    %220 = vector.broadcast %219 : i32 to vector<8x1xi32>
    %221 = arith.cmpi sgt, %12, %220 : vector<8x1xi32>
    %222 = vector.shape_cast %221 : vector<8x1xi1> to vector<8x1xi1>
    %223 = vector.broadcast %222 : vector<8x1xi1> to vector<8x128xi1>
    %224 = arith.select %223, %218, %194 : vector<8x128xi1>, vector<8x128xf32>
    %c0_82 = arith.constant 0 : index
    %c0_83 = arith.constant 0 : index
    %225 = vector.load %arg8[%c0_82, %c0_83] : memref<8x128xf32, #tpu.memory_space<vmem>>, vector<8x128xf32>
    tpu.vector_store %arg8[%c0_82, %c0_83], %224 {strides = array<i32>} : memref<8x128xf32, #tpu.memory_space<vmem>>, vector<8x128xf32>,
    %226 = vector.shape_cast %221 : vector<8x1xi1> to vector<8x1xi1>
    %227 = vector.broadcast %226 : vector<8x1xi1> to vector<8x128xi1>
    %228 = arith.select %227, %216, %195 : vector<8x128xi1>, vector<8x128xf32>
    %c0_84 = arith.constant 0 : index
    %c0_85 = arith.constant 0 : index
    %229 = vector.load %arg9[%c0_84, %c0_85] : memref<8x128xf32, #tpu.memory_space<vmem>>, vector<8x128xf32>
    tpu.vector_store %arg9[%c0_84, %c0_85], %228 {strides = array<i32>} : memref<8x128xf32, #tpu.memory_space<vmem>>, vector<8x128xf32>,
    %cst_86 = arith.constant 0.000000e+00 : f32
    %230 = vector.shape_cast %221 : vector<8x1xi1> to vector<8x1xi1>
    %231 = vector.broadcast %230 : vector<8x1xi1> to vector<8x128xi1>
    %232 = vector.broadcast %cst_86 : f32 to vector<8x128xf32>
    %233 = arith.select %231, %218, %232 : vector<8x128xi1>, vector<8x128xf32>
    %234 = arith.truncf %233 : vector<8x128xf32> to vector<8x128xbf16>
    %235 = arith.index_cast %c4_i32 : i32 to index
    %c0_87 = arith.constant 0 : index
    %c0_88 = arith.constant 0 : index
    %236 = vector.load %arg7[%235, %c0_87, %c0_88] : memref<8x8x128xbf16, #tpu.memory_space<vmem>>, vector<1x8x128xbf16>
    %237 = vector.shape_cast %236 : vector<1x8x128xbf16> to vector<8x128xbf16>
    %238 = vector.shape_cast %234 : vector<8x128xbf16> to vector<1x8x128xbf16>
    tpu.vector_store %arg7[%235, %c0_87, %c0_88], %238 {strides = array<i32>} : memref<8x8x128xbf16, #tpu.memory_space<vmem>>, vector<1x8x128xbf16>,
    %c5_i32 = arith.constant 5 : i32
    %c0_89 = arith.constant 0 : index
    %c0_90 = arith.constant 0 : index
    %239 = vector.load %arg8[%c0_89, %c0_90] : memref<8x128xf32, #tpu.memory_space<vmem>>, vector<8x128xf32>
    %c0_91 = arith.constant 0 : index
    %c0_92 = arith.constant 0 : index
    %240 = vector.load %arg9[%c0_91, %c0_92] : memref<8x128xf32, #tpu.memory_space<vmem>>, vector<8x128xf32>
    %c8_i32_93 = arith.constant 8 : i32
    %241 = arith.muli %c5_i32, %c8_i32_93 : i32
    %242 = tpu.assume_multiple %241, 8 : i32
    %243 = arith.index_cast %242 : i32 to index
    %c0_94 = arith.constant 0 : index
    %244 = vector.load %arg10[%243, %c0_94] : memref<64x512xf32, #tpu.memory_space<vmem>>, vector<8x512xf32>
    %245 = arith.truncf %239 : vector<8x128xf32> to vector<8x128xbf16>
    %cst_95 = arith.constant dense<0.000000e+00> : vector<8x512xf32>
    %246 = tpu.matmul %245, %13, %cst_95 {dimension_numbers = #tpu.dot_dimension_numbers<[1], [0], [0], [1], [0, 0, 1, 1], [], []>} : vector<8x128xbf16>, vector<128x512xbf16>, vector<8x512xf32> -> vector<8x512xf32>
    %247 = arith.addf %244, %246 : vector<8x512xf32>
    %248 = vector.extract_strided_slice %247 {offsets = [0, 0], sizes = [8, 384], strides = [1, 1]} : vector<8x512xf32> to vector<8x384xf32>
    %249 = arith.negf %248 : vector<8x384xf32>
    %250 = math.exp %249 : vector<8x384xf32>
    %cst_96 = arith.constant 1.000000e+00 : f32
    %251 = vector.broadcast %cst_96 : f32 to vector<8x384xf32>
    %252 = arith.addf %251, %250 : vector<8x384xf32>
    %253 = arith.divf %251, %252 : vector<8x384xf32>
    %254 = vector.extract_strided_slice %247 {offsets = [0, 384], sizes = [8, 128], strides = [1, 1]} : vector<8x512xf32> to vector<8x128xf32>
    %255 = math.tanh %254 : vector<8x128xf32>
    %256 = vector.extract_strided_slice %253 {offsets = [0, 0], sizes = [8, 128], strides = [1, 1]} : vector<8x384xf32> to vector<8x128xf32>
    %257 = vector.extract_strided_slice %253 {offsets = [0, 128], sizes = [8, 128], strides = [1, 1]} : vector<8x384xf32> to vector<8x128xf32>
    %258 = vector.extract_strided_slice %253 {offsets = [0, 256], sizes = [8, 128], strides = [1, 1]} : vector<8x384xf32> to vector<8x128xf32>
    %259 = arith.mulf %257, %240 : vector<8x128xf32>
    %260 = arith.mulf %256, %255 : vector<8x128xf32>
    %261 = arith.addf %259, %260 : vector<8x128xf32>
    %262 = math.tanh %261 : vector<8x128xf32>
    %263 = arith.mulf %258, %262 : vector<8x128xf32>
    %264 = arith.addi %0, %c5_i32 : i32
    %265 = vector.broadcast %264 : i32 to vector<8x1xi32>
    %266 = arith.cmpi sgt, %12, %265 : vector<8x1xi32>
    %267 = vector.shape_cast %266 : vector<8x1xi1> to vector<8x1xi1>
    %268 = vector.broadcast %267 : vector<8x1xi1> to vector<8x128xi1>
    %269 = arith.select %268, %263, %239 : vector<8x128xi1>, vector<8x128xf32>
    %c0_97 = arith.constant 0 : index
    %c0_98 = arith.constant 0 : index
    %270 = vector.load %arg8[%c0_97, %c0_98] : memref<8x128xf32, #tpu.memory_space<vmem>>, vector<8x128xf32>
    tpu.vector_store %arg8[%c0_97, %c0_98], %269 {strides = array<i32>} : memref<8x128xf32, #tpu.memory_space<vmem>>, vector<8x128xf32>,
    %271 = vector.shape_cast %266 : vector<8x1xi1> to vector<8x1xi1>
    %272 = vector.broadcast %271 : vector<8x1xi1> to vector<8x128xi1>
    %273 = arith.select %272, %261, %240 : vector<8x128xi1>, vector<8x128xf32>
    %c0_99 = arith.constant 0 : index
    %c0_100 = arith.constant 0 : index
    %274 = vector.load %arg9[%c0_99, %c0_100] : memref<8x128xf32, #tpu.memory_space<vmem>>, vector<8x128xf32>
    tpu.vector_store %arg9[%c0_99, %c0_100], %273 {strides = array<i32>} : memref<8x128xf32, #tpu.memory_space<vmem>>, vector<8x128xf32>,
    %cst_101 = arith.constant 0.000000e+00 : f32
    %275 = vector.shape_cast %266 : vector<8x1xi1> to vector<8x1xi1>
    %276 = vector.broadcast %275 : vector<8x1xi1> to vector<8x128xi1>
    %277 = vector.broadcast %cst_101 : f32 to vector<8x128xf32>
    %278 = arith.select %276, %263, %277 : vector<8x128xi1>, vector<8x128xf32>
    %279 = arith.truncf %278 : vector<8x128xf32> to vector<8x128xbf16>
    %280 = arith.index_cast %c5_i32 : i32 to index
    %c0_102 = arith.constant 0 : index
    %c0_103 = arith.constant 0 : index
    %281 = vector.load %arg7[%280, %c0_102, %c0_103] : memref<8x8x128xbf16, #tpu.memory_space<vmem>>, vector<1x8x128xbf16>
    %282 = vector.shape_cast %281 : vector<1x8x128xbf16> to vector<8x128xbf16>
    %283 = vector.shape_cast %279 : vector<8x128xbf16> to vector<1x8x128xbf16>
    tpu.vector_store %arg7[%280, %c0_102, %c0_103], %283 {strides = array<i32>} : memref<8x8x128xbf16, #tpu.memory_space<vmem>>, vector<1x8x128xbf16>,
    %c6_i32 = arith.constant 6 : i32
    %c0_104 = arith.constant 0 : index
    %c0_105 = arith.constant 0 : index
    %284 = vector.load %arg8[%c0_104, %c0_105] : memref<8x128xf32, #tpu.memory_space<vmem>>, vector<8x128xf32>
    %c0_106 = arith.constant 0 : index
    %c0_107 = arith.constant 0 : index
    %285 = vector.load %arg9[%c0_106, %c0_107] : memref<8x128xf32, #tpu.memory_space<vmem>>, vector<8x128xf32>
    %c8_i32_108 = arith.constant 8 : i32
    %286 = arith.muli %c6_i32, %c8_i32_108 : i32
    %287 = tpu.assume_multiple %286, 8 : i32
    %288 = arith.index_cast %287 : i32 to index
    %c0_109 = arith.constant 0 : index
    %289 = vector.load %arg10[%288, %c0_109] : memref<64x512xf32, #tpu.memory_space<vmem>>, vector<8x512xf32>
    %290 = arith.truncf %284 : vector<8x128xf32> to vector<8x128xbf16>
    %cst_110 = arith.constant dense<0.000000e+00> : vector<8x512xf32>
    %291 = tpu.matmul %290, %13, %cst_110 {dimension_numbers = #tpu.dot_dimension_numbers<[1], [0], [0], [1], [0, 0, 1, 1], [], []>} : vector<8x128xbf16>, vector<128x512xbf16>, vector<8x512xf32> -> vector<8x512xf32>
    %292 = arith.addf %289, %291 : vector<8x512xf32>
    %293 = vector.extract_strided_slice %292 {offsets = [0, 0], sizes = [8, 384], strides = [1, 1]} : vector<8x512xf32> to vector<8x384xf32>
    %294 = arith.negf %293 : vector<8x384xf32>
    %295 = math.exp %294 : vector<8x384xf32>
    %cst_111 = arith.constant 1.000000e+00 : f32
    %296 = vector.broadcast %cst_111 : f32 to vector<8x384xf32>
    %297 = arith.addf %296, %295 : vector<8x384xf32>
    %298 = arith.divf %296, %297 : vector<8x384xf32>
    %299 = vector.extract_strided_slice %292 {offsets = [0, 384], sizes = [8, 128], strides = [1, 1]} : vector<8x512xf32> to vector<8x128xf32>
    %300 = math.tanh %299 : vector<8x128xf32>
    %301 = vector.extract_strided_slice %298 {offsets = [0, 0], sizes = [8, 128], strides = [1, 1]} : vector<8x384xf32> to vector<8x128xf32>
    %302 = vector.extract_strided_slice %298 {offsets = [0, 128], sizes = [8, 128], strides = [1, 1]} : vector<8x384xf32> to vector<8x128xf32>
    %303 = vector.extract_strided_slice %298 {offsets = [0, 256], sizes = [8, 128], strides = [1, 1]} : vector<8x384xf32> to vector<8x128xf32>
    %304 = arith.mulf %302, %285 : vector<8x128xf32>
    %305 = arith.mulf %301, %300 : vector<8x128xf32>
    %306 = arith.addf %304, %305 : vector<8x128xf32>
    %307 = math.tanh %306 : vector<8x128xf32>
    %308 = arith.mulf %303, %307 : vector<8x128xf32>
    %309 = arith.addi %0, %c6_i32 : i32
    %310 = vector.broadcast %309 : i32 to vector<8x1xi32>
    %311 = arith.cmpi sgt, %12, %310 : vector<8x1xi32>
    %312 = vector.shape_cast %311 : vector<8x1xi1> to vector<8x1xi1>
    %313 = vector.broadcast %312 : vector<8x1xi1> to vector<8x128xi1>
    %314 = arith.select %313, %308, %284 : vector<8x128xi1>, vector<8x128xf32>
    %c0_112 = arith.constant 0 : index
    %c0_113 = arith.constant 0 : index
    %315 = vector.load %arg8[%c0_112, %c0_113] : memref<8x128xf32, #tpu.memory_space<vmem>>, vector<8x128xf32>
    tpu.vector_store %arg8[%c0_112, %c0_113], %314 {strides = array<i32>} : memref<8x128xf32, #tpu.memory_space<vmem>>, vector<8x128xf32>,
    %316 = vector.shape_cast %311 : vector<8x1xi1> to vector<8x1xi1>
    %317 = vector.broadcast %316 : vector<8x1xi1> to vector<8x128xi1>
    %318 = arith.select %317, %306, %285 : vector<8x128xi1>, vector<8x128xf32>
    %c0_114 = arith.constant 0 : index
    %c0_115 = arith.constant 0 : index
    %319 = vector.load %arg9[%c0_114, %c0_115] : memref<8x128xf32, #tpu.memory_space<vmem>>, vector<8x128xf32>
    tpu.vector_store %arg9[%c0_114, %c0_115], %318 {strides = array<i32>} : memref<8x128xf32, #tpu.memory_space<vmem>>, vector<8x128xf32>,
    %cst_116 = arith.constant 0.000000e+00 : f32
    %320 = vector.shape_cast %311 : vector<8x1xi1> to vector<8x1xi1>
    %321 = vector.broadcast %320 : vector<8x1xi1> to vector<8x128xi1>
    %322 = vector.broadcast %cst_116 : f32 to vector<8x128xf32>
    %323 = arith.select %321, %308, %322 : vector<8x128xi1>, vector<8x128xf32>
    %324 = arith.truncf %323 : vector<8x128xf32> to vector<8x128xbf16>
    %325 = arith.index_cast %c6_i32 : i32 to index
    %c0_117 = arith.constant 0 : index
    %c0_118 = arith.constant 0 : index
    %326 = vector.load %arg7[%325, %c0_117, %c0_118] : memref<8x8x128xbf16, #tpu.memory_space<vmem>>, vector<1x8x128xbf16>
    %327 = vector.shape_cast %326 : vector<1x8x128xbf16> to vector<8x128xbf16>
    %328 = vector.shape_cast %324 : vector<8x128xbf16> to vector<1x8x128xbf16>
    tpu.vector_store %arg7[%325, %c0_117, %c0_118], %328 {strides = array<i32>} : memref<8x8x128xbf16, #tpu.memory_space<vmem>>, vector<1x8x128xbf16>,
    %c7_i32 = arith.constant 7 : i32
    %c0_119 = arith.constant 0 : index
    %c0_120 = arith.constant 0 : index
    %329 = vector.load %arg8[%c0_119, %c0_120] : memref<8x128xf32, #tpu.memory_space<vmem>>, vector<8x128xf32>
    %c0_121 = arith.constant 0 : index
    %c0_122 = arith.constant 0 : index
    %330 = vector.load %arg9[%c0_121, %c0_122] : memref<8x128xf32, #tpu.memory_space<vmem>>, vector<8x128xf32>
    %c8_i32_123 = arith.constant 8 : i32
    %331 = arith.muli %c7_i32, %c8_i32_123 : i32
    %332 = tpu.assume_multiple %331, 8 : i32
    %333 = arith.index_cast %332 : i32 to index
    %c0_124 = arith.constant 0 : index
    %334 = vector.load %arg10[%333, %c0_124] : memref<64x512xf32, #tpu.memory_space<vmem>>, vector<8x512xf32>
    %335 = arith.truncf %329 : vector<8x128xf32> to vector<8x128xbf16>
    %cst_125 = arith.constant dense<0.000000e+00> : vector<8x512xf32>
    %336 = tpu.matmul %335, %13, %cst_125 {dimension_numbers = #tpu.dot_dimension_numbers<[1], [0], [0], [1], [0, 0, 1, 1], [], []>} : vector<8x128xbf16>, vector<128x512xbf16>, vector<8x512xf32> -> vector<8x512xf32>
    %337 = arith.addf %334, %336 : vector<8x512xf32>
    %338 = vector.extract_strided_slice %337 {offsets = [0, 0], sizes = [8, 384], strides = [1, 1]} : vector<8x512xf32> to vector<8x384xf32>
    %339 = arith.negf %338 : vector<8x384xf32>
    %340 = math.exp %339 : vector<8x384xf32>
    %cst_126 = arith.constant 1.000000e+00 : f32
    %341 = vector.broadcast %cst_126 : f32 to vector<8x384xf32>
    %342 = arith.addf %341, %340 : vector<8x384xf32>
    %343 = arith.divf %341, %342 : vector<8x384xf32>
    %344 = vector.extract_strided_slice %337 {offsets = [0, 384], sizes = [8, 128], strides = [1, 1]} : vector<8x512xf32> to vector<8x128xf32>
    %345 = math.tanh %344 : vector<8x128xf32>
    %346 = vector.extract_strided_slice %343 {offsets = [0, 0], sizes = [8, 128], strides = [1, 1]} : vector<8x384xf32> to vector<8x128xf32>
    %347 = vector.extract_strided_slice %343 {offsets = [0, 128], sizes = [8, 128], strides = [1, 1]} : vector<8x384xf32> to vector<8x128xf32>
    %348 = vector.extract_strided_slice %343 {offsets = [0, 256], sizes = [8, 128], strides = [1, 1]} : vector<8x384xf32> to vector<8x128xf32>
    %349 = arith.mulf %347, %330 : vector<8x128xf32>
    %350 = arith.mulf %346, %345 : vector<8x128xf32>
    %351 = arith.addf %349, %350 : vector<8x128xf32>
    %352 = math.tanh %351 : vector<8x128xf32>
    %353 = arith.mulf %348, %352 : vector<8x128xf32>
    %354 = arith.addi %0, %c7_i32 : i32
    %355 = vector.broadcast %354 : i32 to vector<8x1xi32>
    %356 = arith.cmpi sgt, %12, %355 : vector<8x1xi32>
    %357 = vector.shape_cast %356 : vector<8x1xi1> to vector<8x1xi1>
    %358 = vector.broadcast %357 : vector<8x1xi1> to vector<8x128xi1>
    %359 = arith.select %358, %353, %329 : vector<8x128xi1>, vector<8x128xf32>
    %c0_127 = arith.constant 0 : index
    %c0_128 = arith.constant 0 : index
    %360 = vector.load %arg8[%c0_127, %c0_128] : memref<8x128xf32, #tpu.memory_space<vmem>>, vector<8x128xf32>
    tpu.vector_store %arg8[%c0_127, %c0_128], %359 {strides = array<i32>} : memref<8x128xf32, #tpu.memory_space<vmem>>, vector<8x128xf32>,
    %361 = vector.shape_cast %356 : vector<8x1xi1> to vector<8x1xi1>
    %362 = vector.broadcast %361 : vector<8x1xi1> to vector<8x128xi1>
    %363 = arith.select %362, %351, %330 : vector<8x128xi1>, vector<8x128xf32>
    %c0_129 = arith.constant 0 : index
    %c0_130 = arith.constant 0 : index
    %364 = vector.load %arg9[%c0_129, %c0_130] : memref<8x128xf32, #tpu.memory_space<vmem>>, vector<8x128xf32>
    tpu.vector_store %arg9[%c0_129, %c0_130], %363 {strides = array<i32>} : memref<8x128xf32, #tpu.memory_space<vmem>>, vector<8x128xf32>,
    %cst_131 = arith.constant 0.000000e+00 : f32
    %365 = vector.shape_cast %356 : vector<8x1xi1> to vector<8x1xi1>
    %366 = vector.broadcast %365 : vector<8x1xi1> to vector<8x128xi1>
    %367 = vector.broadcast %cst_131 : f32 to vector<8x128xf32>
    %368 = arith.select %366, %353, %367 : vector<8x128xi1>, vector<8x128xf32>
    %369 = arith.truncf %368 : vector<8x128xf32> to vector<8x128xbf16>
    %370 = arith.index_cast %c7_i32 : i32 to index
    %c0_132 = arith.constant 0 : index
    %c0_133 = arith.constant 0 : index
    %371 = vector.load %arg7[%370, %c0_132, %c0_133] : memref<8x8x128xbf16, #tpu.memory_space<vmem>>, vector<1x8x128xbf16>
    %372 = vector.shape_cast %371 : vector<1x8x128xbf16> to vector<8x128xbf16>
    %373 = vector.shape_cast %369 : vector<8x128xbf16> to vector<1x8x128xbf16>
    tpu.vector_store %arg7[%370, %c0_132, %c0_133], %373 {strides = array<i32>} : memref<8x8x128xbf16, #tpu.memory_space<vmem>>, vector<1x8x128xbf16>,
    %c8_i32_134 = arith.constant 8 : i32
    return
  }
  func.func @transform_0(%arg0: i32, %arg1: i32) -> (i32, i32) {
    %c0_i32 = arith.constant 0 : i32
    %c0_i32_0 = arith.constant 0 : i32
    return %arg0, %c0_i32 : i32, i32
  }
  func.func @transform_1(%arg0: i32, %arg1: i32) -> (i32, i32, i32) {
    %c0_i32 = arith.constant 0 : i32
    %c0_i32_0 = arith.constant 0 : i32
    return %arg1, %arg0, %c0_i32 : i32, i32, i32
  }
  func.func @transform_2(%arg0: i32, %arg1: i32) -> (i32, i32) {
    %c0_i32 = arith.constant 0 : i32
    %c0_i32_0 = arith.constant 0 : i32
    %c0_i32_1 = arith.constant 0 : i32
    return %c0_i32, %c0_i32_0 : i32, i32
  }
  func.func @transform_3(%arg0: i32, %arg1: i32) -> (i32, i32) {
    %c0_i32 = arith.constant 0 : i32
    %c0_i32_0 = arith.constant 0 : i32
    %c0_i32_1 = arith.constant 0 : i32
    return %c0_i32, %c0_i32_0 : i32, i32
  }
  func.func @transform_4(%arg0: i32, %arg1: i32) -> (i32, i32) {
    %c0_i32 = arith.constant 0 : i32
    %c0_i32_0 = arith.constant 0 : i32
    %c0_i32_1 = arith.constant 0 : i32
    return %c0_i32, %c0_i32_0 : i32, i32
  }
  func.func @transform_5(%arg0: i32, %arg1: i32) -> (i32, i32, i32) {
    %c0_i32 = arith.constant 0 : i32
    %c0_i32_0 = arith.constant 0 : i32
    return %arg1, %arg0, %c0_i32 : i32, i32, i32
  }
  func.func @transform_6(%arg0: i32, %arg1: i32) -> (i32, i32) {
    %c0_i32 = arith.constant 0 : i32
    %c0_i32_0 = arith.constant 0 : i32
    return %arg0, %c0_i32 : i32, i32
  }
  func.func @transform_7(%arg0: i32, %arg1: i32) -> (i32, i32) {
    %c0_i32 = arith.constant 0 : i32
    %c0_i32_0 = arith.constant 0 : i32
    return %arg0, %c0_i32 : i32, i32
  }
}

module attributes {stable_mosaic.version = 11 : i64} {
  func.func @_fc_kernel(%arg0: i32, %arg1: i32, %arg2: memref<16x128xbf16, #tpu.memory_space<vmem>>, %arg3: memref<128x128xbf16, #tpu.memory_space<vmem>>, %arg4: memref<1x128xf32, #tpu.memory_space<vmem>>, %arg5: memref<16x128xf32, #tpu.memory_space<vmem>>) attributes {dimension_semantics = [#tpu.dimension_semantics<parallel>, #tpu.dimension_semantics<parallel>], iteration_bounds = array<i64: 1, 1>, scalar_prefetch = 0 : i64, scratch_operands = 0 : i64, tpu.core_type = #tpu.core_type<tc>, window_params = [{transform_indices = @transform_0, window_bounds = array<i64: 16, 128>}, {transform_indices = @transform_1, window_bounds = array<i64: 128, 128>}, {transform_indices = @transform_2, window_bounds = array<i64: 1, 128>}, {transform_indices = @transform_3, window_bounds = array<i64: 16, 128>}]} {
    %c0 = arith.constant 0 : index
    %c0_0 = arith.constant 0 : index
    %0 = vector.load %arg2[%c0, %c0_0] : memref<16x128xbf16, #tpu.memory_space<vmem>>, vector<16x128xbf16>
    %c0_1 = arith.constant 0 : index
    %c0_2 = arith.constant 0 : index
    %1 = vector.load %arg3[%c0_1, %c0_2] : memref<128x128xbf16, #tpu.memory_space<vmem>>, vector<128x128xbf16>
    %cst = arith.constant dense<0.000000e+00> : vector<16x128xf32>
    %2 = tpu.matmul %0, %1, %cst {dimension_numbers = #tpu.dot_dimension_numbers<[1], [0], [0], [1], [0, 0, 1, 1], [], []>} : vector<16x128xbf16>, vector<128x128xbf16>, vector<16x128xf32> -> vector<16x128xf32>
    %c0_3 = arith.constant 0 : index
    %c0_4 = arith.constant 0 : index
    %3 = vector.load %arg4[%c0_3, %c0_4] : memref<1x128xf32, #tpu.memory_space<vmem>>, vector<1x128xf32>
    %4 = vector.broadcast %3 : vector<1x128xf32> to vector<16x128xf32>
    %5 = arith.addf %2, %4 : vector<16x128xf32>
    %c0_5 = arith.constant 0 : index
    %c0_6 = arith.constant 0 : index
    %6 = vector.load %arg5[%c0_5, %c0_6] : memref<16x128xf32, #tpu.memory_space<vmem>>, vector<16x128xf32>
    tpu.vector_store %arg5[%c0_5, %c0_6], %5 {strides = array<i32>} : memref<16x128xf32, #tpu.memory_space<vmem>>, vector<16x128xf32>,
    return
  }
  func.func @transform_0(%arg0: i32, %arg1: i32) -> (i32, i32) {
    %c0_i32 = arith.constant 0 : i32
    %c0_i32_0 = arith.constant 0 : i32
    return %arg0, %c0_i32 : i32, i32
  }
  func.func @transform_1(%arg0: i32, %arg1: i32) -> (i32, i32) {
    %c0_i32 = arith.constant 0 : i32
    %c0_i32_0 = arith.constant 0 : i32
    return %c0_i32, %arg1 : i32, i32
  }
  func.func @transform_2(%arg0: i32, %arg1: i32) -> (i32, i32) {
    %c0_i32 = arith.constant 0 : i32
    %c0_i32_0 = arith.constant 0 : i32
    return %c0_i32, %arg1 : i32, i32
  }
  func.func @transform_3(%arg0: i32, %arg1: i32) -> (i32, i32) {
    %c0_i32 = arith.constant 0 : i32
    return %arg0, %arg1 : i32, i32
  }
}

</mosaic_0001>

<bundles_post_ra>
// kernel: lstm_model_forward.5
= control target key start
LH: loop header
LB: loop body
LE: loop exit
PB: predicated region body
PF: predicated region fallthrough
CT: control target
= control target key end

     0   :  { %s212_s1 = inlined_call_operand.vmem [shape: bf16[128,128], index: 1, kind: input, shape index: {}]   ;;  %s213_s2 = inlined_call_operand.vmem [shape: f32[1,128], index: 2, kind: input, shape index: {}]   ;;  %s214_s0 = inlined_call_operand.vmem [shape: bf16[16,128], index: 0, kind: input, shape index: {}]   ;;  %s215_s3 = inlined_call_operand.vmem [shape: f32[16,128], index: 3, kind: output, shape index: {}]  }
   0x1   :  { %v154_v0 = vld [vmem:[%s212_s1 + $0x38] sm:$0xff]  ;;  %v153_v1 = vld [vmem:[%s212_s1 + $0x30] sm:$0xff]  ;;  %v152_v2 = vld [vmem:[%s212_s1 + $0x28] sm:$0xff] }
   0x2   :  { %90 = vmatpush.bf16.msra.mxu0 %v154_v0  ;;  %v151_v3 = vld [vmem:[%s212_s1 + $0x20] sm:$0xff]  ;;  %v150_v4 = vld [vmem:[%s212_s1 + $0x18] sm:$0xff]  ;;  %v149_v5 = vld [vmem:[%s212_s1 + $0x10] sm:$0xff] }
   0x3   :  { %v148_v6 = vld [vmem:[%s212_s1 + $0x8] sm:$0xff]  ;;  %v147_v7 = vld [vmem:[%s212_s1] sm:$0xff] }
   0x4   :  { %v146_v8 = vld [vmem:[%s214_s0] sm:$0xff] }
   0x5   :  { %v155_v9 = vld [vmem:[%s213_s2] ss:$0 sm:$0xff] }
   0x6   :  { %91 = vmatpush.bf16.msra.mxu0 %v153_v1 }
   0xa   :  { %92 = vmatpush.bf16.msra.mxu0 %v152_v2 }
   0xe   :  { %93 = vmatpush.bf16.msra.mxu0 %v151_v3 }
  0x12   :  { %94 = vmatpush.bf16.msra.mxu0 %v150_v4 }
  0x16   :  { %95 = vmatpush.bf16.msra.mxu0 %v149_v5 }
  0x1a   :  { %96 = vmatpush.bf16.msra.mxu0 %v148_v6 }
  0x1e   :  { %97 = vmatpush.bf16.msra.mxu0 %v147_v7 }
  0x21   :  { %98 = vmatmul.bf16.vlgmr.msra.gmra.mxu0 %v146_v8 }
  0x9e   :  { %v99_v10 = vpop.f32.mrf.mxu0 }
  0x9f   :  { %v100_v11 = vadd.f32 %v155_v9, %v99_v10 }
  0xa1   :  { %104 = vst [vmem:[%s215_s3] sm:$0xff] %v100_v11 }
  0xa6   :  { %v101_v12 = vpop.f32.mrf.mxu0 }
  0xa7   :  { %v102_v13 = vadd.f32 %v155_v9, %v101_v12 }
  0xa9   :  { %105 = vst [vmem:[%s215_s3 + $0x8] sm:$0xff] %v102_v13 }

// kernel: lstm_model_forward.3
= control target key start
LH: loop header
LB: loop body
LE: loop exit
PB: predicated region body
PF: predicated region fallthrough
CT: control target
= control target key end

     0   :  { %13 = vsyncpa [#allocation4], 0  ;;  %s3019_s0 = inlined_call_operand.vmem [shape: s32[8,1], index: 0, kind: input, shape index: {}]   ;;  %s3020_s1 = inlined_call_operand.vmem [shape: bf16[8,8,128], index: 1, kind: input, shape index: {}]   ;;  %s3021_s2 = inlined_call_operand.hbm [shape: bf16[128,512], index: 2, kind: input, shape index: {}]   ;;  %s3022_s3 = inlined_call_operand.hbm [shape: bf16[128,512], index: 3, kind: input, shape index: {}]   ;;  %s3023_s4 = inlined_call_operand.vmem [shape: f32[1,512], index: 4, kind: input, shape index: {}]   ;;  %s3024_s5 = inlined_call_operand.vmem [shape: bf16[8,8,128], index: 5, kind: output, shape index: {0}]   ;;  %s3025_s6 = inlined_call_operand.vmem [shape: f32[8,128], index: 6, kind: output, shape index: {1}]   ;;  %s3026_s7 = inlined_call_operand.vmem [shape: f32[8,128], index: 7, kind: output, shape index: {2}]  }
   0x1   :  { %s23_s26 = sshll.u32 %s3021_s2, 4  ;;  %s24_s26 = int_to_ptr.hbm [resolvable:$true] %s23_s26 }
   0x2   :  { %14 = vsyncpa [#allocation6], 0  ;;  %s2389_s27 = smov [#allocation3]   ;;  %s36_s8 = sshll.u32 %s3022_s3, 4  ;;  %s37_s8 = int_to_ptr.hbm [resolvable:$true] %s36_s8 }
   0x3   :  { %s25_s28 = sshll.u32 %s2389_s27, 4  ;;  %s2390_s9 = smov 256   ;;  %s26_s28 = int_to_ptr.vmem [resolvable:$true] %s25_s28 }
   0x4   :  { %s2391_s10 = smov 16   ;;  %s2392_s11 = smov [#allocation5]  }
   0x5   :  { %31 = dma.hbm_to_vmem [thread:$0]  %s24_s26, 4096, %s26_s28, [#allocation4], %s2390_s9, %s2390_s9, %s2391_s10  }
   0x6   :  { %s38_s12 = sshll.u32 %s2392_s11, 4  ;;  %s39_s12 = int_to_ptr.vmem [resolvable:$true] %s38_s12 }
   0x7   :  { %44 = dma.hbm_to_vmem [thread:$0]  %s37_s8, 4096, %s39_s12, [#allocation6], %s2390_s9, %s2390_s9, %s2391_s10  }
   0x8   :  { %2385 = dma.done.wait [#allocation4], 4096  }
   0x9   :  { %2386 = vsyncadd [#allocation4], 4294963200 }
   0xa   :  { %2387 = dma.done.wait [#allocation6], 4096  }
   0xb   :  { %2388 = vsyncadd [#allocation6], 4294963200  ;;  %v1946_v0 = vld [vmem:[#allocation3 + $0xe0] sm:$0xf]  ;;  %v2153_v1 = vld [vmem:[#allocation3 + $0xec] sm:$0xf0] }
   0xc   :  { %v2151_v2 = vld [vmem:[#allocation3 + $0xe4] sm:$0xf]  ;;  %v1947_v3 = vor.u32 %v2153_v1, %v1946_v0  ;;  %v1948_v4 = vld [vmem:[#allocation3 + $0xf0] sm:$0xf0]  ;;  %v1954_v5 = vld [vmem:[#allocation3 + $0xe8] sm:$0xf] }
   0xd   :  { %v2154_v6 = vld [vmem:[#allocation3 + $0xf4] sm:$0xf0]  ;;  %v1951_v7 = vor.u32 %v2151_v2, %v1948_v4  ;;  %v2152_v9 = vld [vmem:[#allocation3 + $0xec] sm:$0xf]  ;;  %v1956_v10 = vld [vmem:[#allocation3 + $0xf8] sm:$0xf0] }
   0xe   :  { %v1955_v8 = vor.u32 %v2154_v6, %v1954_v5  ;;  %v1930_v11 = vld [vmem:[#allocation3 + $0xc0] sm:$0xf]  ;;  %296 = vmatpush.bf16.msra.mxu0 %v1947_v3  ;;  %v1959_v12 = vor.u32 %v2152_v9, %v1956_v10  ;;  %v2149_v13 = vld [vmem:[#allocation3 + $0xcc] sm:$0xf0]  ;;  %v2147_v14 = vld [vmem:[#allocation3 + $0xc4] sm:$0xf] }
   0xf   :  { %v1932_v15 = vld [vmem:[#allocation3 + $0xd0] sm:$0xf0]  ;;  %325 = vmatpush.bf16.msra.mxu1 %v1951_v7  ;;  %v1931_v16 = vor.u32 %v2149_v13, %v1930_v11  ;;  %v1938_v18 = vld [vmem:[#allocation3 + $0xc8] sm:$0xf]  ;;  %v2150_v19 = vld [vmem:[#allocation3 + $0xd4] sm:$0xf0] }
  0x10   :  { %354 = vmatpush.bf16.msra.mxu2 %v1955_v8  ;;  %v1935_v17 = vor.u32 %v2147_v14, %v1932_v15  ;;  %v2148_v20 = vld [vmem:[#allocation3 + $0xcc] sm:$0xf]  ;;  %383 = vmatpush.bf16.msra.mxu3 %v1959_v12  ;;  %v1939_v21 = vor.u32 %v2150_v19, %v1938_v18  ;;  %v1940_v22 = vld [vmem:[#allocation3 + $0xd8] sm:$0xf0]  ;;  %v1914_v23 = vld [vmem:[#allocation3 + $0xa0] sm:$0xf] }
  0x11   :  { %v2145_v24 = vld [vmem:[#allocation3 + $0xac] sm:$0xf0]  ;;  %v1943_v25 = vor.u32 %v2148_v20, %v1940_v22  ;;  %v2143_v26 = vld [vmem:[#allocation3 + $0xa4] sm:$0xf]  ;;  %v1916_v27 = vld [vmem:[#allocation3 + $0xb0] sm:$0xf0] }
  0x12   :  { %v1922_v28 = vld [vmem:[#allocation3 + $0xa8] sm:$0xf]  ;;  %297 = vmatpush.bf16.msra.mxu0 %v1931_v16  ;;  %v1915_v29 = vor.u32 %v2145_v24, %v1914_v23  ;;  %v2146_v30 = vld [vmem:[#allocation3 + $0xb4] sm:$0xf0]  ;;  %v2144_v31 = vld [vmem:[#allocation3 + $0xac] sm:$0xf]  ;;  %v1919_v33 = vor.u32 %v2143_v26, %v1916_v27 }
  0x13   :  { %v1924_v32 = vld [vmem:[#allocation3 + $0xb8] sm:$0xf0]  ;;  %326 = vmatpush.bf16.msra.mxu1 %v1935_v17  ;;  %v1923_v34 = vor.u32 %v2146_v30, %v1922_v28  ;;  %v1898_v35 = vld [vmem:[#allocation3 + $0x80] sm:$0xf]  ;;  %v2141_v36 = vld [vmem:[#allocation3 + $0x8c] sm:$0xf0] }
  0x14   :  { %355 = vmatpush.bf16.msra.mxu2 %v1939_v21  ;;  %v2139_v37 = vld [vmem:[#allocation3 + $0x84] sm:$0xf]  ;;  %384 = vmatpush.bf16.msra.mxu3 %v1943_v25  ;;  %v1927_v38 = vor.u32 %v2144_v31, %v1924_v32  ;;  %v1900_v39 = vld [vmem:[#allocation3 + $0x90] sm:$0xf0]  ;;  %v1906_v40 = vld [vmem:[#allocation3 + $0x88] sm:$0xf]  ;;  %v1899_v44 = vor.u32 %v2141_v36, %v1898_v35 }
  0x15   :  { %v2142_v41 = vld [vmem:[#allocation3 + $0x94] sm:$0xf0]  ;;  %v2140_v42 = vld [vmem:[#allocation3 + $0x8c] sm:$0xf]  ;;  %v1908_v43 = vld [vmem:[#allocation3 + $0x98] sm:$0xf0]  ;;  %v1903_v45 = vor.u32 %v2139_v37, %v1900_v39 }
  0x16   :  { %298 = vmatpush.bf16.msra.mxu0 %v1915_v29  ;;  %v1907_v46 = vor.u32 %v2142_v41, %v1906_v40  ;;  %v1882_v47 = vld [vmem:[#allocation3 + $0x60] sm:$0xf]  ;;  %v2137_v48 = vld [vmem:[#allocation3 + $0x6c] sm:$0xf0]  ;;  %v2135_v49 = vld [vmem:[#allocation3 + $0x64] sm:$0xf]  ;;  %v1911_v50 = vor.u32 %v2140_v42, %v1908_v43 }
  0x17   :  { %327 = vmatpush.bf16.msra.mxu1 %v1919_v33  ;;  %v1884_v51 = vld [vmem:[#allocation3 + $0x70] sm:$0xf0]  ;;  %v1890_v52 = vld [vmem:[#allocation3 + $0x68] sm:$0xf]  ;;  %v2138_v53 = vld [vmem:[#allocation3 + $0x74] sm:$0xf0]  ;;  %v1883_v56 = vor.u32 %v2137_v48, %v1882_v47 }
  0x18   :  { %356 = vmatpush.bf16.msra.mxu2 %v1923_v34  ;;  %385 = vmatpush.bf16.msra.mxu3 %v1927_v38  ;;  %v2136_v54 = vld [vmem:[#allocation3 + $0x6c] sm:$0xf]  ;;  %v1892_v55 = vld [vmem:[#allocation3 + $0x78] sm:$0xf0]  ;;  %v1887_v57 = vor.u32 %v2135_v49, %v1884_v51  ;;  %v1891_v58 = vor.u32 %v2138_v53, %v1890_v52  ;;  %v1866_v59 = vld [vmem:[#allocation3 + $0x40] sm:$0xf] }
  0x19   :  { %v2133_v60 = vld [vmem:[#allocation3 + $0x4c] sm:$0xf0]  ;;  %v2131_v61 = vld [vmem:[#allocation3 + $0x44] sm:$0xf]  ;;  %v1895_v62 = vor.u32 %v2136_v54, %v1892_v55  ;;  %v1868_v63 = vld [vmem:[#allocation3 + $0x50] sm:$0xf0] }
  0x1a   :  { %299 = vmatpush.bf16.msra.mxu0 %v1899_v44  ;;  %v1874_v0 = vld [vmem:[#allocation3 + $0x48] sm:$0xf]  ;;  %v2134_v1 = vld [vmem:[#allocation3 + $0x54] sm:$0xf0]  ;;  %v2132_v2 = vld [vmem:[#allocation3 + $0x4c] sm:$0xf]  ;;  %v1867_v4 = vor.u32 %v2133_v60, %v1866_v59  ;;  %v1871_v5 = vor.u32 %v2131_v61, %v1868_v63 }
  0x1b   :  { %328 = vmatpush.bf16.msra.mxu1 %v1903_v45  ;;  %v1876_v3 = vld [vmem:[#allocation3 + $0x58] sm:$0xf0]  ;;  %v1875_v6 = vor.u32 %v2134_v1, %v1874_v0  ;;  %v1850_v7 = vld [vmem:[#allocation3 + $0x20] sm:$0xf]  ;;  %v2129_v8 = vld [vmem:[#allocation3 + $0x2c] sm:$0xf0] }
  0x1c   :  { %357 = vmatpush.bf16.msra.mxu2 %v1907_v46  ;;  %386 = vmatpush.bf16.msra.mxu3 %v1911_v50  ;;  %v2127_v9 = vld [vmem:[#allocation3 + $0x24] sm:$0xf]  ;;  %v1879_v10 = vor.u32 %v2132_v2, %v1876_v3  ;;  %v1852_v11 = vld [vmem:[#allocation3 + $0x30] sm:$0xf0]  ;;  %v1858_v12 = vld [vmem:[#allocation3 + $0x28] sm:$0xf]  ;;  %v1851_v16 = vor.u32 %v2129_v8, %v1850_v7 }
  0x1d   :  { %v2130_v13 = vld [vmem:[#allocation3 + $0x34] sm:$0xf0]  ;;  %v2128_v14 = vld [vmem:[#allocation3 + $0x2c] sm:$0xf]  ;;  %v1860_v15 = vld [vmem:[#allocation3 + $0x38] sm:$0xf0]  ;;  %v1855_v18 = vor.u32 %v2127_v9, %v1852_v11 }
  0x1e   :  { %300 = vmatpush.bf16.msra.mxu0 %v1883_v56  ;;  %v1834_v17 = vld [vmem:[#allocation3] sm:$0xf]  ;;  %v1859_v19 = vor.u32 %v2130_v13, %v1858_v12  ;;  %v2125_v20 = vld [vmem:[#allocation3 + $0xc] sm:$0xf0]  ;;  %v2123_v21 = vld [vmem:[#allocation3 + $0x4] sm:$0xf]  ;;  %v1863_v23 = vor.u32 %v2128_v14, %v1860_v15 }
  0x1f   :  { %329 = vmatpush.bf16.msra.mxu1 %v1887_v57  ;;  %v1836_v22 = vld [vmem:[#allocation3 + $0x10] sm:$0xf0]  ;;  %v1842_v24 = vld [vmem:[#allocation3 + $0x8] sm:$0xf]  ;;  %v2126_v25 = vld [vmem:[#allocation3 + $0x14] sm:$0xf0]  ;;  %v1835_v30 = vor.u32 %v2125_v20, %v1834_v17 }
  0x20   :  { %358 = vmatpush.bf16.msra.mxu2 %v1891_v58  ;;  %387 = vmatpush.bf16.msra.mxu3 %v1895_v62  ;;  %v2124_v26 = vld [vmem:[#allocation3 + $0xc] sm:$0xf]  ;;  %v1844_v27 = vld [vmem:[#allocation3 + $0x18] sm:$0xf0]  ;;  %v2074_v28 = vld [vmem:[#allocation5 + $0xe0] sm:$0xf]  ;;  %v1839_v33 = vor.u32 %v2123_v21, %v1836_v22  ;;  %v1843_v34 = vor.u32 %v2126_v25, %v1842_v24 }
  0x21   :  { %v2185_v29 = vld [vmem:[#allocation5 + $0xec] sm:$0xf0]  ;;  %v2183_v31 = vld [vmem:[#allocation5 + $0xe4] sm:$0xf]  ;;  %v2076_v32 = vld [vmem:[#allocation5 + $0xf0] sm:$0xf0]  ;;  %v1847_v36 = vor.u32 %v2124_v26, %v1844_v27 }
  0x22   :  { %301 = vmatpush.bf16.msra.mxu0 %v1867_v4  ;;  %v2119_v35 = vld [vmem:[%s3020_s1] sm:$0xff]  ;;  %v2444_v37 = vor.u32 %v2185_v29, %v2074_v28  ;;  %v2082_v38 = vld [vmem:[#allocation5 + $0xe8] sm:$0xf]  ;;  %v2186_v39 = vld [vmem:[#allocation5 + $0xf4] sm:$0xf0]  ;;  %v2446_v41 = vor.u32 %v2183_v31, %v2076_v32 }
  0x23   :  { %330 = vmatpush.bf16.msra.mxu1 %v1871_v5  ;;  %v2058_v40 = vld [vmem:[#allocation5 + $0xc0] sm:$0xf]  ;;  %v2181_v42 = vld [vmem:[#allocation5 + $0xcc] sm:$0xf0]  ;;  %v2184_v43 = vld [vmem:[#allocation5 + $0xec] sm:$0xf]  ;;  %v2448_v47 = vor.u32 %v2186_v39, %v2082_v38 }
  0x24   :  { %359 = vmatpush.bf16.msra.mxu2 %v1875_v6  ;;  %388 = vmatpush.bf16.msra.mxu3 %v1879_v10  ;;  %v2084_v44 = vld [vmem:[#allocation5 + $0xf8] sm:$0xf0]  ;;  %v2179_v45 = vld [vmem:[#allocation5 + $0xc4] sm:$0xf]  ;;  %v2060_v46 = vld [vmem:[#allocation5 + $0xd0] sm:$0xf0]  ;;  %v2451_v48 = vor.u32 %v2181_v42, %v2058_v40 }
  0x25   :  { %v2066_v49 = vld [vmem:[#allocation5 + $0xc8] sm:$0xf]  ;;  %v2182_v50 = vld [vmem:[#allocation5 + $0xd4] sm:$0xf0]  ;;  %v2453_v51 = vor.u32 %v2184_v43, %v2084_v44  ;;  %v2042_v52 = vld [vmem:[#allocation5 + $0xa0] sm:$0xf]  ;;  %v2456_v53 = vor.u32 %v2179_v45, %v2060_v46 }
  0x26   :  { %302 = vmatpush.bf16.msra.mxu0 %v1851_v16  ;;  %v2177_v54 = vld [vmem:[#allocation5 + $0xac] sm:$0xf0]  ;;  %v2180_v55 = vld [vmem:[#allocation5 + $0xcc] sm:$0xf]  ;;  %v2068_v56 = vld [vmem:[#allocation5 + $0xd8] sm:$0xf0]  ;;  %v2459_v59 = vor.u32 %v2182_v50, %v2066_v49 }
  0x27   :  { %331 = vmatpush.bf16.msra.mxu1 %v1855_v18  ;;  %v2175_v57 = vld [vmem:[#allocation5 + $0xa4] sm:$0xf]  ;;  %v2044_v58 = vld [vmem:[#allocation5 + $0xb0] sm:$0xf0]  ;;  %v2463_v60 = vor.u32 %v2177_v54, %v2042_v52  ;;  %v2050_v61 = vld [vmem:[#allocation5 + $0xa8] sm:$0xf]  ;;  %v2465_v63 = vor.u32 %v2180_v55, %v2068_v56 }
  0x28   :  { %360 = vmatpush.bf16.msra.mxu2 %v1859_v19  ;;  %389 = vmatpush.bf16.msra.mxu3 %v1863_v23  ;;  %v2178_v62 = vld [vmem:[#allocation5 + $0xb4] sm:$0xf0]  ;;  %v2026_v0 = vld [vmem:[#allocation5 + $0x80] sm:$0xf]  ;;  %v2468_v1 = vor.u32 %v2175_v57, %v2044_v58  ;;  %v2173_v2 = vld [vmem:[#allocation5 + $0x8c] sm:$0xf0] }
  0x29   :  { %v2176_v3 = vld [vmem:[#allocation5 + $0xac] sm:$0xf]  ;;  %v2052_v4 = vld [vmem:[#allocation5 + $0xb8] sm:$0xf0]  ;;  %v2171_v5 = vld [vmem:[#allocation5 + $0x84] sm:$0xf]  ;;  %v2471_v7 = vor.u32 %v2178_v62, %v2050_v61  ;;  %v2475_v8 = vor.u32 %v2173_v2, %v2026_v0 }
  0x2a   :  { %303 = vmatpush.bf16.msra.mxu0 %v1835_v30  ;;  %v2028_v6 = vld [vmem:[#allocation5 + $0x90] sm:$0xf0]  ;;  %v2034_v9 = vld [vmem:[#allocation5 + $0x88] sm:$0xf]  ;;  %v2174_v10 = vld [vmem:[#allocation5 + $0x94] sm:$0xf0]  ;;  %v2477_v11 = vor.u32 %v2176_v3, %v2052_v4 }
  0x2b   :  { %332 = vmatpush.bf16.msra.mxu1 %v1839_v33  ;;  %v2010_v12 = vld [vmem:[#allocation5 + $0x60] sm:$0xf]  ;;  %v2480_v13 = vor.u32 %v2171_v5, %v2028_v6  ;;  %v2169_v14 = vld [vmem:[#allocation5 + $0x6c] sm:$0xf0]  ;;  %v2172_v15 = vld [vmem:[#allocation5 + $0x8c] sm:$0xf]  ;;  %v2486_v20 = vor.u32 %v2174_v10, %v2034_v9 }
  0x2c   :  { %361 = vmatpush.bf16.msra.mxu2 %v1843_v34  ;;  %390 = vmatpush.bf16.msra.mxu3 %v1847_v36  ;;  %v2036_v16 = vld [vmem:[#allocation5 + $0x98] sm:$0xf0]  ;;  %v2167_v17 = vld [vmem:[#allocation5 + $0x64] sm:$0xf]  ;;  %v2012_v18 = vld [vmem:[#allocation5 + $0x70] sm:$0xf0]  ;;  %v2490_v21 = vor.u32 %v2169_v14, %v2010_v12 }
  0x2d   :  { %304 = vmatmul.bf16.vlgmr.msra.gmra.mxu0 %v2119_v35  ;;  %v2120_v19 = vld [vmem:[%s3020_s1 + $0x8] sm:$0xff]  ;;  %v2170_v23 = vld [vmem:[#allocation5 + $0x74] sm:$0xf0]  ;;  %v2492_v24 = vor.u32 %v2172_v15, %v2036_v16  ;;  %v1994_v25 = vld [vmem:[#allocation5 + $0x40] sm:$0xf]  ;;  %v2495_v26 = vor.u32 %v2167_v17, %v2012_v18  ;;  %v3027_v18 = vmov 0  }
  0x2e   :  { %647 = vmatpush.bf16.msrb.mxu0 %v2444_v37  ;;  %333 = vmatmul.bf16.vlgmr.msra.gmra.mxu1 %v2119_v35  ;;  %v2018_v22 = vld [vmem:[#allocation5 + $0x68] sm:$0xf]  ;;  %v2165_v27 = vld [vmem:[#allocation5 + $0x4c] sm:$0xf0]  ;;  %v2168_v28 = vld [vmem:[#allocation5 + $0x6c] sm:$0xf] }
  0x2f   :  { %660 = vmatpush.bf16.msrb.mxu1 %v2446_v41  ;;  %362 = vmatmul.bf16.vlgmr.msra.gmra.mxu2 %v2119_v35  ;;  %v2020_v29 = vld [vmem:[#allocation5 + $0x78] sm:$0xf0]  ;;  %v2163_v30 = vld [vmem:[#allocation5 + $0x44] sm:$0xf]  ;;  %v1996_v31 = vld [vmem:[#allocation5 + $0x50] sm:$0xf0]  ;;  %v2498_v32 = vor.u32 %v2170_v23, %v2018_v22  ;;  %v2502_v33 = vor.u32 %v2165_v27, %v1994_v25 }
  0x30   :  { %391 = vmatmul.bf16.vlgmr.msra.gmra.mxu3 %v2119_v35  ;;  %673 = vmatpush.bf16.msrb.mxu2 %v2448_v47  ;;  %v2002_v34 = vld [vmem:[#allocation5 + $0x48] sm:$0xf]  ;;  %v2166_v35 = vld [vmem:[#allocation5 + $0x54] sm:$0xf0]  ;;  %v2504_v36 = vor.u32 %v2168_v28, %v2020_v29  ;;  %v2507_v38 = vor.u32 %v2163_v30, %v1996_v31  ;;  %v1978_v40 = vld [vmem:[#allocation5 + $0x20] sm:$0xf] }
  0x31   :  { %686 = vmatpush.bf16.msrb.mxu3 %v2453_v51  ;;  %v2510_v39 = vor.u32 %v2166_v35, %v2002_v34  ;;  %v2161_v42 = vld [vmem:[#allocation5 + $0x2c] sm:$0xf0]  ;;  %v2159_v43 = vld [vmem:[#allocation5 + $0x24] sm:$0xf]  ;;  %v1980_v45 = vld [vmem:[#allocation5 + $0x30] sm:$0xf0]  ;;  %2193 = vset.pattern.permute.xlu0 %v3027_v18 }
  0x32   :  { %648 = vmatpush.bf16.msrb.mxu0 %v2451_v48  ;;  %v2514_v44 = vor.u32 %v2161_v42, %v1978_v40  ;;  %v1986_v46 = vld [vmem:[#allocation5 + $0x28] sm:$0xf]  ;;  %v2162_v49 = vld [vmem:[#allocation5 + $0x34] sm:$0xf0]  ;;  %v2517_v50 = vor.u32 %v2159_v43, %v1980_v45  ;;  %v2164_v52 = vld [vmem:[#allocation5 + $0x4c] sm:$0xf]  ;;  %2194 = vset.pattern.permute.xlu1 %v3027_v18 }
  0x33   :  { %661 = vmatpush.bf16.msrb.mxu1 %v2456_v53  ;;  %v2004_v54 = vld [vmem:[#allocation5 + $0x58] sm:$0xf0]  ;;  %v1962_v55 = vld [vmem:[#allocation5] sm:$0xf]  ;;  %v2157_v57 = vld [vmem:[#allocation5 + $0xc] sm:$0xf0]  ;;  %v2522_v62 = vor.u32 %v2162_v49, %v1986_v46  ;;  %2195 = vset.pattern.permute.xlu2 %v3027_v18 }
  0x34   :  { %674 = vmatpush.bf16.msrb.mxu2 %v2459_v59  ;;  %v2519_v56 = vor.u32 %v2164_v52, %v2004_v54  ;;  %v2155_v58 = vld [vmem:[#allocation5 + $0x4] sm:$0xf]  ;;  %v1964_v61 = vld [vmem:[#allocation5 + $0x10] sm:$0xf0]  ;;  %v2160_v0 = vld [vmem:[#allocation5 + $0x2c] sm:$0xf]  ;;  %v2526_v3 = vor.u32 %v2157_v57, %v1962_v55 }
  0x35   :  { %687 = vmatpush.bf16.msrb.mxu3 %v2465_v63  ;;  %v1988_v2 = vld [vmem:[#allocation5 + $0x38] sm:$0xf0]  ;;  %v1970_v5 = vld [vmem:[#allocation5 + $0x8] sm:$0xf]  ;;  %v2158_v6 = vld [vmem:[#allocation5 + $0x14] sm:$0xf0]  ;;  %v2531_v9 = vor.u32 %v2155_v58, %v1964_v61 }
  0x36   :  { %649 = vmatpush.bf16.msrb.mxu0 %v2463_v60  ;;  %v2528_v4 = vor.u32 %v2160_v0, %v1988_v2  ;;  %v2156_v10 = vld [vmem:[#allocation5 + $0xc] sm:$0xf]  ;;  %v1972_v12 = vld [vmem:[#allocation5 + $0x18] sm:$0xf0]  ;;  %v2534_v14 = vor.u32 %v2158_v6, %v1970_v5  ;;  %v2121_v16 = vld [vmem:[%s3020_s1 + $0x10] sm:$0xff]  ;;  %v2394_v27 = vmov 0.0|0.0  }
  0x37   :  { %662 = vmatpush.bf16.msrb.mxu1 %v2468_v1  ;;  %v2538_v15 = vor.u32 %v2156_v10, %v1972_v12  ;;  %v2553_v17 = vld [vmem:[%s3019_s0] sm:$0xff]  ;;  %v2122_v23 = vld [vmem:[%s3020_s1 + $0x18] sm:$0xff] }
  0x38   :  { %675 = vmatpush.bf16.msrb.mxu2 %v2471_v7  ;;  %vm767_vm0 = vcmp.gt.s32.totalorder %v2553_v17, 0  ;;  %vm911_vm1 = vcmp.gt.s32.totalorder %v2553_v17, 1  ;;  %vm1636_vm2 = vcmp.gt.s32.totalorder %v2553_v17, 6  ;;  %v102_v30 = vld [vmem:[%s3023_s4] sm:$0xf] }
  0x39   :  { %688 = vmatpush.bf16.msrb.mxu3 %v2477_v11  ;;  %v912_v22 = vsel %vm911_vm1, 1, %v3027_v18  ;;  %v1637_v25 = vsel %vm1636_vm2, 1, %v3027_v18  ;;  %v104_v31 = vperm.slane %v102_v30, 0  ;;  %v105_v35 = vperm.slane %v102_v30, 1 }
  0x3a   :  { %650 = vmatpush.bf16.msrb.mxu0 %v2475_v8  ;;  %v2638_v49 = vperm.slane %v102_v30, 3  ;;  %v106_v52 = vperm.slane %v102_v30, 2  ;;  %vm1056_vm1 = vcmp.gt.s32.totalorder %v2553_v17, 2  ;;  %vm1201_vm2 = vcmp.gt.s32.totalorder %v2553_v17, 3 }
  0x3b   :  { %663 = vmatpush.bf16.msrb.mxu1 %v2480_v13 }
  0x3c   :  { %676 = vmatpush.bf16.msrb.mxu2 %v2486_v20 }
  0x3d   :  { %689 = vmatpush.bf16.msrb.mxu3 %v2492_v24  ;;  %309 = vmatmul.bf16.gmra.mxu0 %v2120_v19 }
  0x3e   :  { %651 = vmatpush.bf16.msrb.mxu0 %v2490_v21  ;;  %338 = vmatmul.bf16.gmra.mxu1 %v2120_v19 }
  0x3f   :  { %664 = vmatpush.bf16.msrb.mxu1 %v2495_v26  ;;  %367 = vmatmul.bf16.gmra.mxu2 %v2120_v19 }
  0x40   :  { %396 = vmatmul.bf16.gmra.mxu3 %v2120_v19  ;;  %677 = vmatpush.bf16.msrb.mxu2 %v2498_v32  ;;  %v768_v19 = vsel %vm767_vm0, 1, %v3027_v18 }
  0x41   :  { %690 = vmatpush.bf16.msrb.mxu3 %v2504_v36  ;;  %770 = vperm.xlu0 %2193, %v768_v19  }
  0x42   :  { %652 = vmatpush.bf16.msrb.mxu0 %v2502_v33 }
  0x43   :  { %665 = vmatpush.bf16.msrb.mxu1 %v2507_v38 }
  0x44   :  { %678 = vmatpush.bf16.msrb.mxu2 %v2510_v39 }
  0x45   :  { %691 = vmatpush.bf16.msrb.mxu3 %v2519_v56 }
  0x46   :  { %653 = vmatpush.bf16.msrb.mxu0 %v2514_v44 }
  0x47   :  { %666 = vmatpush.bf16.msrb.mxu1 %v2517_v50 }
  0x48   :  { %679 = vmatpush.bf16.msrb.mxu2 %v2522_v62 }
  0x49   :  { %692 = vmatpush.bf16.msrb.mxu3 %v2528_v4  ;;  %914 = vperm.xlu0 %2193, %v912_v22  }
  0x4a   :  { %654 = vmatpush.bf16.msrb.mxu0 %v2526_v3 }
  0x4b   :  { %667 = vmatpush.bf16.msrb.mxu1 %v2531_v9 }
  0x4c   :  { %680 = vmatpush.bf16.msrb.mxu2 %v2534_v14 }
  0x4d   :  { %693 = vmatpush.bf16.msrb.mxu3 %v2538_v15  ;;  %314 = vmatmul.bf16.gmra.mxu0 %v2121_v16 }
  0x4e   :  { %790 = vmatpush.bf16.msra.mxu0 %v2444_v37  ;;  %343 = vmatmul.bf16.gmra.mxu1 %v2121_v16 }
  0x4f   :  { %803 = vmatpush.bf16.msra.mxu1 %v2446_v41  ;;  %372 = vmatmul.bf16.gmra.mxu2 %v2121_v16 }
  0x50   :  { %816 = vmatpush.bf16.msra.mxu2 %v2448_v47  ;;  %401 = vmatmul.bf16.gmra.mxu3 %v2121_v16 }
  0x51   :  { %829 = vmatpush.bf16.msra.mxu3 %v2453_v51  ;;  %1639 = vperm.xlu0 %2193, %v1637_v25  }
  0x52   :  { %791 = vmatpush.bf16.msra.mxu0 %v2451_v48 }
  0x53   :  { %804 = vmatpush.bf16.msra.mxu1 %v2456_v53 }
  0x54   :  { %817 = vmatpush.bf16.msra.mxu2 %v2459_v59 }
  0x55   :  { %830 = vmatpush.bf16.msra.mxu3 %v2465_v63 }
  0x56   :  { %792 = vmatpush.bf16.msra.mxu0 %v2463_v60 }
  0x57   :  { %805 = vmatpush.bf16.msra.mxu1 %v2468_v1 }
  0x58   :  { %818 = vmatpush.bf16.msra.mxu2 %v2471_v7 }
  0x59   :  { %831 = vmatpush.bf16.msra.mxu3 %v2477_v11 }
  0x5a   :  { %793 = vmatpush.bf16.msra.mxu0 %v2475_v8 }
  0x5b   :  { %806 = vmatpush.bf16.msra.mxu1 %v2480_v13 }
  0x5c   :  { %819 = vmatpush.bf16.msra.mxu2 %v2486_v20 }
  0x5d   :  { %832 = vmatpush.bf16.msra.mxu3 %v2492_v24  ;;  %319 = vmatmul.bf16.gmra.mxu0 %v2122_v23 }
  0x5e   :  { %794 = vmatpush.bf16.msra.mxu0 %v2490_v21  ;;  %348 = vmatmul.bf16.gmra.mxu1 %v2122_v23 }
  0x5f   :  { %807 = vmatpush.bf16.msra.mxu1 %v2495_v26  ;;  %377 = vmatmul.bf16.gmra.mxu2 %v2122_v23 }
  0x60   :  { %820 = vmatpush.bf16.msra.mxu2 %v2498_v32  ;;  %406 = vmatmul.bf16.gmra.mxu3 %v2122_v23 }
  0x61   :  { %833 = vmatpush.bf16.msra.mxu3 %v2504_v36 }
  0x62   :  { %795 = vmatpush.bf16.msra.mxu0 %v2502_v33 }
  0x63   :  { %808 = vmatpush.bf16.msra.mxu1 %v2507_v38 }
  0x64   :  { %821 = vmatpush.bf16.msra.mxu2 %v2510_v39 }
  0x65   :  { %834 = vmatpush.bf16.msra.mxu3 %v2519_v56 }
  0x66   :  { %796 = vmatpush.bf16.msra.mxu0 %v2514_v44 }
  0x67   :  { %809 = vmatpush.bf16.msra.mxu1 %v2517_v50 }
  0x68   :  { %822 = vmatpush.bf16.msra.mxu2 %v2522_v62 }
  0x69   :  { %835 = vmatpush.bf16.msra.mxu3 %v2528_v4 }
  0x6a   :  { %797 = vmatpush.bf16.msra.mxu0 %v2526_v3 }
  0x6b   :  { %810 = vmatpush.bf16.msra.mxu1 %v2531_v9 }
  0x6c   :  { %823 = vmatpush.bf16.msra.mxu2 %v2534_v14 }
  0x6d   :  { %836 = vmatpush.bf16.msra.mxu3 %v2538_v15  ;;  %655 = vmatmul.bf16.vlgmr.msrb.gmra.mxu0 %v2394_v27 }
  0x6e   :  { %668 = vmatmul.bf16.vlgmr.msrb.gmra.mxu1 %v2394_v27  ;;  %935 = vmatpush.bf16.msrb.mxu0 %v2444_v37 }
  0x6f   :  { %681 = vmatmul.bf16.vlgmr.msrb.gmra.mxu2 %v2394_v27  ;;  %948 = vmatpush.bf16.msrb.mxu1 %v2446_v41 }
  0x70   :  { %694 = vmatmul.bf16.vlgmr.msrb.gmra.mxu3 %v2394_v27  ;;  %961 = vmatpush.bf16.msrb.mxu2 %v2448_v47 }
  0x71   :  { %974 = vmatpush.bf16.msrb.mxu3 %v2453_v51 }
  0x72   :  { %936 = vmatpush.bf16.msrb.mxu0 %v2451_v48 }
  0x73   :  { %949 = vmatpush.bf16.msrb.mxu1 %v2456_v53 }
  0x74   :  { %962 = vmatpush.bf16.msrb.mxu2 %v2459_v59 }
  0x75   :  { %975 = vmatpush.bf16.msrb.mxu3 %v2465_v63 }
  0x76   :  { %937 = vmatpush.bf16.msrb.mxu0 %v2463_v60 }
  0x77   :  { %950 = vmatpush.bf16.msrb.mxu1 %v2468_v1 }
  0x78   :  { %963 = vmatpush.bf16.msrb.mxu2 %v2471_v7 }
  0x79   :  { %976 = vmatpush.bf16.msrb.mxu3 %v2477_v11 }
  0x7a   :  { %938 = vmatpush.bf16.msrb.mxu0 %v2475_v8 }
  0x7b   :  { %951 = vmatpush.bf16.msrb.mxu1 %v2480_v13 }
  0x7c   :  { %964 = vmatpush.bf16.msrb.mxu2 %v2486_v20 }
  0x7d   :  { %977 = vmatpush.bf16.msrb.mxu3 %v2492_v24 }
  0x7e   :  { %939 = vmatpush.bf16.msrb.mxu0 %v2490_v21 }
  0x7f   :  { %952 = vmatpush.bf16.msrb.mxu1 %v2495_v26 }
  0x80   :  { %965 = vmatpush.bf16.msrb.mxu2 %v2498_v32 }
  0x81   :  { %978 = vmatpush.bf16.msrb.mxu3 %v2504_v36 }
  0x82   :  { %940 = vmatpush.bf16.msrb.mxu0 %v2502_v33 }
  0x83   :  { %953 = vmatpush.bf16.msrb.mxu1 %v2507_v38 }
  0x84   :  { %966 = vmatpush.bf16.msrb.mxu2 %v2510_v39 }
  0x85   :  { %979 = vmatpush.bf16.msrb.mxu3 %v2519_v56 }
  0x86   :  { %941 = vmatpush.bf16.msrb.mxu0 %v2514_v44 }
  0x87   :  { %954 = vmatpush.bf16.msrb.mxu1 %v2517_v50 }
  0x88   :  { %967 = vmatpush.bf16.msrb.mxu2 %v2522_v62 }
  0x89   :  { %980 = vmatpush.bf16.msrb.mxu3 %v2528_v4 }
  0x8a   :  { %942 = vmatpush.bf16.msrb.mxu0 %v2526_v3 }
  0x8b   :  { %955 = vmatpush.bf16.msrb.mxu1 %v2531_v9 }
  0x8c   :  { %968 = vmatpush.bf16.msrb.mxu2 %v2534_v14 }
  0x8d   :  { %981 = vmatpush.bf16.msrb.mxu3 %v2538_v15 }
  0xaa   :  { %v305_v28 = vpop.f32.mrf.mxu0 }
  0xab   :  { %v334_v29 = vpop.f32.mrf.mxu1 }
  0xb2   :  { %v2630_v34 = vpop.f32.mrf.mxu2  ;;  %v307_v42 = vpop.f32.mrf.mxu0 }
  0xb3   :  { %v2632_v40 = vpop.f32.mrf.mxu3  ;;  %v2634_v43 = vadd.f32 %v307_v42, %v104_v31  ;;  %v336_v45 = vpop.f32.mrf.mxu1 }
  0xb4   :  { %v2636_v46 = vadd.f32 %v336_v45, %v105_v35 }
  0xba   :  { %v365_v54 = vpop.f32.mrf.mxu2  ;;  %v310_v58 = vpop.f32.mrf.mxu0 }
  0xbb   :  { %v2640_v55 = vadd.f32 %v365_v54, %v106_v52  ;;  %v394_v57 = vpop.f32.mrf.mxu3  ;;  %v2645_v0 = vadd.f32 %v310_v58, %v104_v31  ;;  %v339_v2 = vpop.f32.mrf.mxu1 }
  0xbc   :  { %v2643_v61 = vadd.f32 %v394_v57, %v2638_v49  ;;  %v2647_v5 = vadd.f32 %v339_v2, %v105_v35 }
  0xbd   :  { %3029 = vst [vmem:[#allocation9_spill] sm:$0xff] %v2645_v0 }
  0xbe   :  { %3030 = vst [vmem:[#allocation10_spill] sm:$0xff] %v2647_v5 }
  0xc2   :  { %v368_v6 = vpop.f32.mrf.mxu2  ;;  %v312_v16 = vpop.f32.mrf.mxu0 }
  0xc3   :  { %v2649_v10 = vadd.f32 %v368_v6, %v106_v52  ;;  %v397_v12 = vpop.f32.mrf.mxu3  ;;  %v2654_v22 = vadd.f32 %v312_v16, %v104_v31  ;;  %v341_v23 = vpop.f32.mrf.mxu1 }
  0xc4   :  { %v2652_v19 = vadd.f32 %v397_v12, %v2638_v49  ;;  %v2656_v25 = vadd.f32 %v341_v23, %v105_v35 }
  0xc5   :  { %3031 = vst [vmem:[#allocation11_spill] sm:$0xff] %v2649_v10  ;;  %v771_v10 = vpop.permute.xlu0 %770 }
  0xc6   :  { %3032 = vst [vmem:[#allocation12_spill] sm:$0xff] %v2652_v19  ;;  %vm772_vm11 = vcmp.eq.s32.totalorder %v771_v10, 1 }
  0xc7   :  { %3033 = vst [vmem:[#allocation13_spill] sm:$0xff] %v2654_v22  ;;  %vm2325_vm0 = vmpackc.low %vm772_vm11, %vm772_vm11 }
  0xc8   :  { %3034 = vst [vmem:[#allocation14_spill] sm:$0xff] %v2656_v25 }
  0xca   :  { %v370_v27 = vpop.f32.mrf.mxu2  ;;  %v315_v45 = vpop.f32.mrf.mxu0 }
  0xcb   :  { %v2658_v30 = vadd.f32 %v370_v27, %v106_v52  ;;  %v399_v42 = vpop.f32.mrf.mxu3  ;;  %v2663_v57 = vadd.f32 %v315_v45, %v104_v31  ;;  %v344_v58 = vpop.f32.mrf.mxu1 }
  0xcc   :  { %v2661_v54 = vadd.f32 %v399_v42, %v2638_v49  ;;  %v2665_v2 = vadd.f32 %v344_v58, %v105_v35 }
  0xcd   :  { %3035 = vst [vmem:[#allocation15_spill] sm:$0xff] %v2658_v30 }
  0xce   :  { %3036 = vst [vmem:[#allocation16_spill] sm:$0xff] %v2661_v54 }
  0xcf   :  { %3037 = vst [vmem:[#allocation17_spill] sm:$0xff] %v2663_v57 }
  0xd0   :  { %3038 = vst [vmem:[#allocation18_spill] sm:$0xff] %v2665_v2 }
  0xd2   :  { %v373_v6 = vpop.f32.mrf.mxu2  ;;  %v317_v18 = vpop.f32.mrf.mxu0 }
  0xd3   :  { %v2667_v12 = vadd.f32 %v373_v6, %v106_v52  ;;  %v402_v16 = vpop.f32.mrf.mxu3  ;;  %v2672_v27 = vadd.f32 %v317_v18, %v104_v31  ;;  %v346_v30 = vpop.f32.mrf.mxu1 }
  0xd4   :  { %v2670_v23 = vadd.f32 %v402_v16, %v2638_v49  ;;  %v2674_v25 = vadd.f32 %v346_v30, %v105_v35 }
  0xd5   :  { %3039 = vst [vmem:[#allocation19_spill] sm:$0xff] %v2667_v12 }
  0xd6   :  { %3040 = vst [vmem:[#allocation20_spill] sm:$0xff] %v2670_v23 }
  0xd7   :  { %3041 = vst [vmem:[#allocation21_spill] sm:$0xff] %v2672_v27 }
  0xd8   :  { %3042 = vst [vmem:[#allocation22_spill] sm:$0xff] %v2674_v25 }
  0xda   :  { %v375_v42 = vpop.f32.mrf.mxu2  ;;  %v320_v57 = vpop.f32.mrf.mxu0 }
  0xdb   :  { %v2676_v54 = vadd.f32 %v375_v42, %v106_v52  ;;  %v404_v45 = vpop.f32.mrf.mxu3  ;;  %v2681_v6 = vadd.f32 %v320_v57, %v104_v31  ;;  %v349_v12 = vpop.f32.mrf.mxu1  ;;  %v335_v57 = vadd.f32 %v334_v29, %v105_v35 }
  0xdc   :  { %v2679_v58 = vadd.f32 %v404_v45, %v2638_v49  ;;  %v2683_v2 = vadd.f32 %v349_v12, %v105_v35  ;;  %v306_v45 = vadd.f32 %v305_v28, %v104_v31 }
  0xdd   :  { %3043 = vst [vmem:[#allocation23_spill] sm:$0xff] %v2676_v54 }
  0xde   :  { %3044 = vst [vmem:[#allocation24_spill] sm:$0xff] %v2679_v58 }
  0xdf   :  { %3045 = vst [vmem:[#allocation25_spill] sm:$0xff] %v2681_v6 }
  0xe0   :  { %3046 = vst [vmem:[#allocation26_spill] sm:$0xff] %v2683_v2 }
  0xe2   :  { %v378_v16 = vpop.f32.mrf.mxu2  ;;  %v322_v27 = vpop.f32.mrf.mxu0 }
  0xe3   :  { %v2685_v23 = vadd.f32 %v378_v16, %v106_v52  ;;  %v407_v18 = vpop.f32.mrf.mxu3  ;;  %v2690_v42 = vadd.f32 %v322_v27, %v104_v31  ;;  %v351_v54 = vpop.f32.mrf.mxu1  ;;  %v364_v27 = vadd.f32 %v2630_v34, %v106_v52  ;;  %v393_v34 = vadd.f32 %v2632_v40, %v2638_v49 }
  0xe4   :  { %v2688_v30 = vadd.f32 %v407_v18, %v2638_v49  ;;  %v2692_v25 = vadd.f32 %v351_v54, %v105_v35 }
  0xe5   :  { %3047 = vst [vmem:[#allocation27_spill] sm:$0xff] %v2685_v23 }
  0xe6   :  { %3048 = vst [vmem:[#allocation28_spill] sm:$0xff] %v2688_v30 }
  0xe7   :  { %3049 = vst [vmem:[#allocation29_spill] sm:$0xff] %v2690_v42 }
  0xe8   :  { %3050 = vst [vmem:[#allocation30_spill] sm:$0xff] %v2692_v25 }
  0xea   :  { %v380_v58 = vpop.f32.mrf.mxu2  ;;  %v656_v2 = vpop.f32.mrf.mxu0 }
  0xeb   :  { %v2694_v6 = vadd.f32 %v380_v58, %v106_v52  ;;  %v409_v12 = vpop.f32.mrf.mxu3  ;;  %v699_v23 = vadd.f32 %v656_v2, %v306_v45  ;;  %v669_v22 = vpop.f32.mrf.mxu1 }
  0xec   :  { %v2697_v16 = vadd.f32 %v409_v12, %v2638_v49  ;;  %v700_v19 = vadd.f32 %v669_v22, %v335_v57 }
  0xed   :  { %3051 = vst [vmem:[#allocation31_spill] sm:$0xff] %v2694_v6  ;;  %v2088_v18 = vmul.f32 -1.442695, %v699_v23 }
  0xee   :  { %3052 = vst [vmem:[#allocation32_spill] sm:$0xff] %v2697_v16  ;;  %v2089_v30 = vmul.f32 -1.442695, %v700_v19 }
  0xef   :  { %2196 = vpow2.f32 %v2088_v18 }
  0xf0   :  { %2198 = vpow2.f32 %v2089_v30 }
  0xf2   :  { %v682_v54 = vpop.f32.mrf.mxu2  ;;  %v658_v29 = vpop.f32.mrf.mxu0 }
  0xf3   :  { %v701_v28 = vadd.f32 %v682_v54, %v364_v27  ;;  %v695_v31 = vpop.f32.mrf.mxu3  ;;  %v671_v35 = vpop.f32.mrf.mxu1 }
  0xf4   :  { %v702_v30 = vadd.f32 %v695_v31, %v393_v34 }
  0xf5   :  { %v2090_v58 = vmul.f32 -1.442695, %v701_v28  ;;  %v2197_v6 = vpop.eup %2196 }
  0xf6   :  { %v2199_v25 = vpop.eup %2198  ;;  %v712_v42 = vadd.f32 1.0, %v2197_v6 }
  0xf7   :  { %2200 = vpow2.f32 %v2090_v58  ;;  %v713_v12 = vadd.f32 1.0, %v2199_v25 }
  0xf8   :  { %2202 = vrcp.f32 %v712_v42  ;;  %v726_v6 = vand.u32 2147483648, %v712_v42  ;;  %v724_v28 = vand.u32 2147483647, %v712_v42  ;;  %vm720_vm5 = vweird.f32 %v712_v42 }
  0xf9   :  { %2204 = vrcp.f32 %v713_v12  ;;  %v741_v29 = vand.u32 2147483648, %v713_v12  ;;  %v739_v58 = vand.u32 2147483647, %v713_v12  ;;  %vm735_vm7 = vweird.f32 %v713_v12 }
  0xfa   :  { %v684_v22 = vpop.f32.mrf.mxu2  ;;  %v727_v31 = vor.u32 1.1754944e-38, %v726_v6  ;;  %vm725_vm8 = vcmp.eq.f32.partialorder %v724_v28, 8.507059e+37 }
  0xfb   :  { %v697_v2 = vpop.f32.mrf.mxu3  ;;  %v742_v34 = vor.u32 1.1754944e-38, %v741_v29  ;;  %vm740_vm10 = vcmp.eq.f32.partialorder %v739_v58, 8.507059e+37 }
  0xfd   :  { %v2201_v19 = vpop.eup %2200 }
  0xfe   :  { %v714_v52 = vadd.f32 1.0, %v2201_v19  ;;  %v2203_v23 = vpop.eup %2202 }
  0xff   :  { %v2205_v45 = vpop.eup %2204  ;;  %v716_v57 = vmul.f32 %v2203_v23, %v712_v42  ;;  %vm721_vm3 = vweird.f32 %v2203_v23 }
 0x100   :  { %2206 = vrcp.f32 %v714_v52  ;;  %v731_v18 = vmul.f32 %v2205_v45, %v713_v12  ;;  %vm736_vm4 = vweird.f32 %v2205_v45  ;;  %vm722_vm6 = vmor %vm720_vm5, %vm721_vm3  ;;  %v756_v6 = vand.u32 2147483648, %v714_v52 }
 0x101   :  { %v717_v27 = vsub.f32 1.0, %v716_v57  ;;  %2208 = vtanh.f32 %v702_v30  ;;  %vm737_vm9 = vmor %vm735_vm7, %vm736_vm4  ;;  %vm750_vm13 = vweird.f32 %v714_v52 }
 0x102   :  { %v732_v54 = vsub.f32 1.0, %v731_v18 }
 0x103   :  { %v718_v25 = vmul.f32 %v2203_v23, %v717_v27 }
 0x104   :  { %v733_v35 = vmul.f32 %v2205_v45, %v732_v54 }
 0x105   :  { %v719_v40 = vadd.f32 %v2203_v23, %v718_v25 }
 0x106   :  { %v2207_v22 = vpop.eup %2206  ;;  %v734_v2 = vadd.f32 %v2205_v45, %v733_v35 }
 0x107   :  { %v746_v49 = vmul.f32 %v2207_v22, %v714_v52  ;;  %v723_v19 = vsel %vm722_vm6, %v2203_v23, %v719_v40  ;;  %v2209_v30 = vpop.eup %2208  ;;  %vm751_vm12 = vweird.f32 %v2207_v22  ;;  %v754_v23 = vand.u32 2147483647, %v714_v52 }
 0x108   :  { %v728_v18 = vsel %vm725_vm8, %v727_v31, %v723_v19  ;;  %v738_v27 = vsel %vm737_vm9, %v2205_v45, %v734_v2  ;;  %vm752_vm14 = vmor %vm750_vm13, %vm751_vm12  ;;  %v757_v45 = vor.u32 1.1754944e-38, %v756_v6 }
 0x109   :  { %v747_v57 = vsub.f32 1.0, %v746_v49  ;;  %v762_v54 = vmul.f32 %v2209_v30, %v728_v18  ;;  %v743_v16 = vsel %vm740_vm10, %v742_v34, %v738_v27  ;;  %vm755_vm15 = vcmp.eq.f32.partialorder %v754_v23, 8.507059e+37 }
 0x10a   :  { %v761_v25 = vmul.f32 0.0, %v743_v16  ;;  %v3053_v23 = vmov 0   ;;  %vm1781_vm10 = vcmp.gt.s32.totalorder %v2553_v17, 7 }
 0x10b   :  { %v748_v5 = vmul.f32 %v2207_v22, %v747_v57 }
 0x10c   :  { %v763_v42 = vadd.f32 %v762_v54, %v761_v25 }
 0x10d   :  { %v749_v0 = vadd.f32 %v2207_v22, %v748_v5 }
 0x10e   :  { %2210 = vtanh.f32 %v763_v42  ;;  %v2703_v12 = vsel %vm772_vm11, %v763_v42, 0.0 }
 0x10f   :  { %v753_v28 = vsel %vm752_vm14, %v2207_v22, %v749_v0 }
 0x110   :  { %v758_v35 = vsel %vm755_vm15, %v757_v45, %v753_v28  ;;  %v1057_v28 = vsel %vm1056_vm1, 1, %v3053_v23 }
 0x111   :  { %1059 = vperm.xlu1 %2194, %v1057_v28  }
 0x114   :  { %v2211_v29 = vpop.eup %2210 }
 0x115   :  { %v765_v58 = vmul.f32 %v2211_v29, %v758_v35 }
 0x117   :  { %v2706_v16 = vsel %vm772_vm11, %v765_v58, 0.0  ;;  %v2326_v52 = vpack.c.bf16 %v765_v58, %v765_v58 }
 0x118   :  { %v778_v5 = vpack.c.bf16 %v2706_v16, %v2706_v16 }
 0x119   :  { %2327 = vmatmul.msk.bf16.vlgmr.msra.gmra.mxu0 %vm2325_vm0, %v2326_v52  ;;  %2330 = vmatmul.msk.bf16.vlgmr.msra.gmra.mxu1 %vm2325_vm0, %v2326_v52 }
 0x11a   :  { %779 = vst [vmem:[%s3024_s5] sm:$0xf] %v778_v5  ;;  %2333 = vmatmul.msk.bf16.vlgmr.msra.gmra.mxu2 %vm2325_vm0, %v2326_v52  ;;  %2336 = vmatmul.msk.bf16.vlgmr.msra.gmra.mxu3 %vm2325_vm0, %v2326_v52 }
 0x11b   :  { %1080 = vmatpush.bf16.msra.mxu0 %v2444_v37  ;;  %1093 = vmatpush.bf16.msra.mxu1 %v2446_v41 }
 0x11c   :  { %1106 = vmatpush.bf16.msra.mxu2 %v2448_v47  ;;  %1119 = vmatpush.bf16.msra.mxu3 %v2453_v51 }
 0x11f   :  { %1081 = vmatpush.bf16.msra.mxu0 %v2451_v48  ;;  %1094 = vmatpush.bf16.msra.mxu1 %v2456_v53 }
 0x120   :  { %1107 = vmatpush.bf16.msra.mxu2 %v2459_v59  ;;  %1120 = vmatpush.bf16.msra.mxu3 %v2465_v63 }
 0x123   :  { %1082 = vmatpush.bf16.msra.mxu0 %v2463_v60  ;;  %1095 = vmatpush.bf16.msra.mxu1 %v2468_v1 }
 0x124   :  { %1108 = vmatpush.bf16.msra.mxu2 %v2471_v7  ;;  %1121 = vmatpush.bf16.msra.mxu3 %v2477_v11 }
 0x127   :  { %1083 = vmatpush.bf16.msra.mxu0 %v2475_v8  ;;  %1096 = vmatpush.bf16.msra.mxu1 %v2480_v13 }
 0x128   :  { %1109 = vmatpush.bf16.msra.mxu2 %v2486_v20  ;;  %1122 = vmatpush.bf16.msra.mxu3 %v2492_v24 }
 0x12b   :  { %1084 = vmatpush.bf16.msra.mxu0 %v2490_v21  ;;  %1097 = vmatpush.bf16.msra.mxu1 %v2495_v26 }
 0x12c   :  { %1110 = vmatpush.bf16.msra.mxu2 %v2498_v32  ;;  %1123 = vmatpush.bf16.msra.mxu3 %v2504_v36 }
 0x12f   :  { %1085 = vmatpush.bf16.msra.mxu0 %v2502_v33  ;;  %1098 = vmatpush.bf16.msra.mxu1 %v2507_v38 }
 0x130   :  { %1111 = vmatpush.bf16.msra.mxu2 %v2510_v39  ;;  %1124 = vmatpush.bf16.msra.mxu3 %v2519_v56 }
 0x133   :  { %1086 = vmatpush.bf16.msra.mxu0 %v2514_v44  ;;  %1099 = vmatpush.bf16.msra.mxu1 %v2517_v50 }
 0x134   :  { %1112 = vmatpush.bf16.msra.mxu2 %v2522_v62  ;;  %1125 = vmatpush.bf16.msra.mxu3 %v2528_v4 }
 0x137   :  { %1087 = vmatpush.bf16.msra.mxu0 %v2526_v3  ;;  %1100 = vmatpush.bf16.msra.mxu1 %v2531_v9 }
 0x138   :  { %1113 = vmatpush.bf16.msra.mxu2 %v2534_v14  ;;  %1126 = vmatpush.bf16.msra.mxu3 %v2538_v15 }
 0x196   :  { %v799_v0 = vpop.f32.mrf.mxu0  ;;  %v812_v10 = vpop.f32.mrf.mxu1 }
 0x197   :  { %v842_v22 = vadd.f32 %v799_v0, %v2634_v43  ;;  %v843_v40 = vadd.f32 %v812_v10, %v2636_v46 }
 0x199   :  { %v2091_v49 = vmul.f32 -1.442695, %v842_v22  ;;  %v2092_v31 = vmul.f32 -1.442695, %v843_v40  ;;  %v1202_v22 = vsel %vm1201_vm2, 1, %v3053_v23 }
 0x19a   :  { %1204 = vperm.xlu1 %2194, %v1202_v22  }
 0x19b   :  { %2212 = vpow2.f32 %v2091_v49 }
 0x19c   :  { %2214 = vpow2.f32 %v2092_v31 }
 0x19d   :  { %v825_v2 = vpop.f32.mrf.mxu2  ;;  %v838_v19 = vpop.f32.mrf.mxu3 }
 0x19e   :  { %v844_v34 = vadd.f32 %v825_v2, %v2640_v55  ;;  %v801_v30 = vpop.f32.mrf.mxu0  ;;  %v814_v57 = vpop.f32.mrf.mxu1  ;;  %v845_v29 = vadd.f32 %v838_v19, %v2643_v61 }
 0x1a0   :  { %v2093_v18 = vmul.f32 -1.442695, %v844_v34 }
 0x1a1   :  { %v2213_v27 = vpop.eup %2212 }
 0x1a2   :  { %v2215_v54 = vpop.eup %2214  ;;  %v855_v25 = vadd.f32 1.0, %v2213_v27  ;;  %2216 = vpow2.f32 %v2093_v18 }
 0x1a3   :  { %v856_v42 = vadd.f32 1.0, %v2215_v54 }
 0x1a4   :  { %2218 = vrcp.f32 %v855_v25  ;;  %v869_v10 = vand.u32 2147483648, %v855_v25  ;;  %v867_v31 = vand.u32 2147483647, %v855_v25  ;;  %vm863_vm5 = vweird.f32 %v855_v25 }
 0x1a5   :  { %2220 = vrcp.f32 %v856_v42  ;;  %v827_v43 = vpop.f32.mrf.mxu2  ;;  %v840_v46 = vpop.f32.mrf.mxu3  ;;  %v884_v40 = vand.u32 2147483648, %v856_v42  ;;  %v882_v34 = vand.u32 2147483647, %v856_v42  ;;  %vm878_vm6 = vweird.f32 %v856_v42 }
 0x1a6   :  { %v870_v57 = vor.u32 1.1754944e-38, %v869_v10  ;;  %vm868_vm9 = vcmp.eq.f32.partialorder %v867_v31, 8.507059e+37 }
 0x1a7   :  { %v885_v27 = vor.u32 1.1754944e-38, %v884_v40  ;;  %vm883_vm11 = vcmp.eq.f32.partialorder %v882_v34, 8.507059e+37 }
 0x1a8   :  { %v2217_v6 = vpop.eup %2216 }
 0x1a9   :  { %v857_v45 = vadd.f32 1.0, %v2217_v6 }
 0x1aa   :  { %v2219_v55 = vpop.eup %2218 }
 0x1ab   :  { %v2221_v35 = vpop.eup %2220  ;;  %v859_v58 = vmul.f32 %v2219_v55, %v855_v25  ;;  %2222 = vrcp.f32 %v857_v45  ;;  %vm864_vm3 = vweird.f32 %v2219_v55  ;;  %vm893_vm14 = vweird.f32 %v857_v45 }
 0x1ac   :  { %v874_v5 = vmul.f32 %v2221_v35, %v856_v42  ;;  %2224 = vtanh.f32 %v845_v29  ;;  %vm879_vm4 = vweird.f32 %v2221_v35  ;;  %vm865_vm7 = vmor %vm863_vm5, %vm864_vm3 }
 0x1ad   :  { %v860_v52 = vsub.f32 1.0, %v859_v58  ;;  %vm880_vm8 = vmor %vm878_vm6, %vm879_vm4 }
 0x1ae   :  { %v875_v0 = vsub.f32 1.0, %v874_v5  ;;  %v1782_v5 = vsel %vm1781_vm10, 1, %v3053_v23 }
 0x1af   :  { %v861_v49 = vmul.f32 %v2219_v55, %v860_v52  ;;  %v915_v52 = vpop.permute.xlu0 %914  ;;  %1784 = vperm.xlu1 %2194, %v1782_v5  }
 0x1b0   :  { %v876_v2 = vmul.f32 %v2221_v35, %v875_v0  ;;  %vm916_vm12 = vcmp.eq.s32.totalorder %v915_v52, 1 }
 0x1b1   :  { %v2223_v61 = vpop.eup %2222  ;;  %v862_v19 = vadd.f32 %v2219_v55, %v861_v49 }
 0x1b2   :  { %v889_v30 = vmul.f32 %v2223_v61, %v857_v45  ;;  %v877_v18 = vadd.f32 %v2221_v35, %v876_v2  ;;  %v2225_v43 = vpop.eup %2224  ;;  %vm894_vm13 = vweird.f32 %v2223_v61 }
 0x1b3   :  { %v866_v54 = vsel %vm865_vm7, %v2219_v55, %v862_v19  ;;  %v899_v55 = vand.u32 2147483648, %v857_v45  ;;  %vm895_vm15 = vmor %vm893_vm14, %vm894_vm13 }
 0x1b4   :  { %v890_v46 = vsub.f32 1.0, %v889_v30  ;;  %v871_v6 = vsel %vm868_vm9, %v870_v57, %v866_v54  ;;  %v881_v28 = vsel %vm880_vm8, %v2221_v35, %v877_v18  ;;  %v897_v35 = vand.u32 2147483647, %v857_v45  ;;  %v3055_v18 = vld [vmem:[#allocation10_spill] sm:$0xff] }
 0x1b5   :  { %v886_v29 = vsel %vm883_vm11, %v885_v27, %v881_v28  ;;  %v905_v58 = vmul.f32 %v2225_v43, %v871_v6  ;;  %v900_v40 = vor.u32 1.1754944e-38, %v899_v55  ;;  %v3056_v28 = vld [vmem:[#allocation11_spill] sm:$0xff] }
 0x1b6   :  { %v891_v25 = vmul.f32 %v2223_v61, %v890_v46  ;;  %v904_v42 = vmul.f32 %v886_v29, %v2703_v12  ;;  %vm898_vm0 = vcmp.eq.f32.partialorder %v897_v35, 8.507059e+37 }
 0x1b8   :  { %v906_v0 = vadd.f32 %v905_v58, %v904_v42  ;;  %v892_v10 = vadd.f32 %v2223_v61, %v891_v25 }
 0x1ba   :  { %2226 = vtanh.f32 %v906_v0  ;;  %v2760_v17 = vsel %vm916_vm12, %v906_v0, %v2703_v12  ;;  %v896_v22 = vsel %vm895_vm15, %v2223_v61, %v892_v10  ;;  %v3054_v61 = vld [vmem:[#allocation9_spill] sm:$0xff] }
 0x1bb   :  { %v901_v31 = vsel %vm898_vm0, %v900_v40, %v896_v22 }
 0x1c0   :  { %v2227_v49 = vpop.eup %2226 }
 0x1c1   :  { %v908_v2 = vmul.f32 %v2227_v49, %v901_v31  ;;  %v3057_v31 = vld [vmem:[#allocation12_spill] sm:$0xff] }
 0x1c3   :  { %v2764_v34 = vsel %vm916_vm12, %v908_v2, %v2706_v16  ;;  %v921_v19 = vsel %vm916_vm12, %v908_v2, 0.0 }
 0x1c4   :  { %v922_v30 = vpack.c.bf16 %v921_v19, %v921_v19  ;;  %v934_v12 = vpack.c.bf16 %v2764_v34, %v2764_v34 }
 0x1c6   :  { %2094 = vst [vmem:[%s3024_s5 + $0x4] sm:$0xf] %v922_v30  ;;  %943 = vmatmul.bf16.vlgmr.msrb.gmra.mxu0 %v934_v12  ;;  %956 = vmatmul.bf16.vlgmr.msrb.gmra.mxu1 %v934_v12 }
 0x1c7   :  { %969 = vmatmul.bf16.vlgmr.msrb.gmra.mxu2 %v934_v12  ;;  %982 = vmatmul.bf16.vlgmr.msrb.gmra.mxu3 %v934_v12 }
 0x1c8   :  { %1225 = vmatpush.bf16.msrb.mxu0 %v2444_v37  ;;  %1238 = vmatpush.bf16.msrb.mxu1 %v2446_v41 }
 0x1c9   :  { %1251 = vmatpush.bf16.msrb.mxu2 %v2448_v47  ;;  %1264 = vmatpush.bf16.msrb.mxu3 %v2453_v51 }
 0x1cc   :  { %1226 = vmatpush.bf16.msrb.mxu0 %v2451_v48  ;;  %1239 = vmatpush.bf16.msrb.mxu1 %v2456_v53 }
 0x1cd   :  { %1252 = vmatpush.bf16.msrb.mxu2 %v2459_v59  ;;  %1265 = vmatpush.bf16.msrb.mxu3 %v2465_v63 }
 0x1d0   :  { %1227 = vmatpush.bf16.msrb.mxu0 %v2463_v60  ;;  %1240 = vmatpush.bf16.msrb.mxu1 %v2468_v1 }
 0x1d1   :  { %1253 = vmatpush.bf16.msrb.mxu2 %v2471_v7  ;;  %1266 = vmatpush.bf16.msrb.mxu3 %v2477_v11 }
 0x1d4   :  { %1228 = vmatpush.bf16.msrb.mxu0 %v2475_v8  ;;  %1241 = vmatpush.bf16.msrb.mxu1 %v2480_v13 }
 0x1d5   :  { %1254 = vmatpush.bf16.msrb.mxu2 %v2486_v20  ;;  %1267 = vmatpush.bf16.msrb.mxu3 %v2492_v24 }
 0x1d8   :  { %1229 = vmatpush.bf16.msrb.mxu0 %v2490_v21  ;;  %1242 = vmatpush.bf16.msrb.mxu1 %v2495_v26 }
 0x1d9   :  { %1255 = vmatpush.bf16.msrb.mxu2 %v2498_v32  ;;  %1268 = vmatpush.bf16.msrb.mxu3 %v2504_v36 }
 0x1dc   :  { %1230 = vmatpush.bf16.msrb.mxu0 %v2502_v33  ;;  %1243 = vmatpush.bf16.msrb.mxu1 %v2507_v38 }
 0x1dd   :  { %1256 = vmatpush.bf16.msrb.mxu2 %v2510_v39  ;;  %1269 = vmatpush.bf16.msrb.mxu3 %v2519_v56 }
 0x1e0   :  { %1231 = vmatpush.bf16.msrb.mxu0 %v2514_v44  ;;  %1244 = vmatpush.bf16.msrb.mxu1 %v2517_v50 }
 0x1e1   :  { %1257 = vmatpush.bf16.msrb.mxu2 %v2522_v62  ;;  %1270 = vmatpush.bf16.msrb.mxu3 %v2528_v4 }
 0x1e4   :  { %1232 = vmatpush.bf16.msrb.mxu0 %v2526_v3  ;;  %1245 = vmatpush.bf16.msrb.mxu1 %v2531_v9 }
 0x1e5   :  { %1258 = vmatpush.bf16.msrb.mxu2 %v2534_v14  ;;  %1271 = vmatpush.bf16.msrb.mxu3 %v2538_v15 }
 0x243   :  { %v944_v16 = vpop.f32.mrf.mxu0  ;;  %v957_v45 = vpop.f32.mrf.mxu1 }
 0x244   :  { %v987_v57 = vadd.f32 %v944_v16, %v3054_v61  ;;  %v988_v27 = vadd.f32 %v957_v45, %v3055_v18 }
 0x246   :  { %v2095_v54 = vmul.f32 -1.442695, %v987_v57  ;;  %v2096_v43 = vmul.f32 -1.442695, %v988_v27 }
 0x248   :  { %2228 = vpow2.f32 %v2095_v54 }
 0x249   :  { %2230 = vpow2.f32 %v2096_v43 }
 0x24a   :  { %v970_v46 = vpop.f32.mrf.mxu2  ;;  %v983_v6 = vpop.f32.mrf.mxu3 }
 0x24b   :  { %v989_v29 = vadd.f32 %v970_v46, %v3056_v28  ;;  %v946_v58 = vpop.f32.mrf.mxu0  ;;  %v959_v25 = vpop.f32.mrf.mxu1  ;;  %v990_v2 = vadd.f32 %v983_v6, %v3057_v31 }
 0x24d   :  { %v2097_v42 = vmul.f32 -1.442695, %v989_v29 }
 0x24e   :  { %v2229_v5 = vpop.eup %2228 }
 0x24f   :  { %v2231_v52 = vpop.eup %2230  ;;  %v1000_v0 = vadd.f32 1.0, %v2229_v5  ;;  %2232 = vpow2.f32 %v2097_v42 }
 0x250   :  { %v1001_v10 = vadd.f32 1.0, %v2231_v52 }
 0x251   :  { %2234 = vrcp.f32 %v1000_v0  ;;  %v1014_v61 = vand.u32 2147483648, %v1000_v0  ;;  %v1012_v18 = vand.u32 2147483647, %v1000_v0  ;;  %vm1008_vm3 = vweird.f32 %v1000_v0 }
 0x252   :  { %2236 = vrcp.f32 %v1001_v10  ;;  %v972_v55 = vpop.f32.mrf.mxu2  ;;  %v985_v35 = vpop.f32.mrf.mxu3  ;;  %v1029_v27 = vand.u32 2147483648, %v1001_v10  ;;  %v1027_v43 = vand.u32 2147483647, %v1001_v10  ;;  %vm1023_vm5 = vweird.f32 %v1001_v10 }
 0x253   :  { %v1015_v6 = vor.u32 1.1754944e-38, %v1014_v61  ;;  %vm1013_vm6 = vcmp.eq.f32.partialorder %v1012_v18, 8.507059e+37 }
 0x254   :  { %v1030_v42 = vor.u32 1.1754944e-38, %v1029_v27  ;;  %vm1028_vm8 = vcmp.eq.f32.partialorder %v1027_v43, 8.507059e+37 }
 0x255   :  { %v2233_v22 = vpop.eup %2232 }
 0x256   :  { %v1002_v40 = vadd.f32 1.0, %v2233_v22 }
 0x257   :  { %v2235_v49 = vpop.eup %2234 }
 0x258   :  { %v2237_v19 = vpop.eup %2236  ;;  %v1004_v30 = vmul.f32 %v2235_v49, %v1000_v0  ;;  %2238 = vrcp.f32 %v1002_v40  ;;  %vm1009_vm1 = vweird.f32 %v2235_v49  ;;  %vm1038_vm11 = vweird.f32 %v1002_v40 }
 0x259   :  { %v1019_v12 = vmul.f32 %v2237_v19, %v1001_v10  ;;  %2240 = vtanh.f32 %v990_v2  ;;  %vm1024_vm2 = vweird.f32 %v2237_v19  ;;  %vm1010_vm4 = vmor %vm1008_vm3, %vm1009_vm1  ;;  %v1060_v2 = vpop.permute.xlu1 %1059  ;;  %v1044_v10 = vand.u32 2147483648, %v1002_v40 }
 0x25a   :  { %v1005_v16 = vsub.f32 1.0, %v1004_v30  ;;  %vm1025_vm7 = vmor %vm1023_vm5, %vm1024_vm2  ;;  %vm1061_vm9 = vcmp.eq.s32.totalorder %v1060_v2, 1 }
 0x25b   :  { %v1020_v45 = vsub.f32 1.0, %v1019_v12  ;;  %v1045_v61 = vor.u32 1.1754944e-38, %v1044_v10 }
 0x25c   :  { %v1006_v57 = vmul.f32 %v2235_v49, %v1005_v16 }
 0x25d   :  { %v1021_v54 = vmul.f32 %v2237_v19, %v1020_v45  ;;  %v1042_v45 = vand.u32 2147483647, %v1002_v40 }
 0x25e   :  { %v2239_v46 = vpop.eup %2238  ;;  %v1007_v28 = vadd.f32 %v2235_v49, %v1006_v57 }
 0x25f   :  { %v1034_v29 = vmul.f32 %v2239_v46, %v1002_v40  ;;  %v1022_v58 = vadd.f32 %v2237_v19, %v1021_v54  ;;  %v2241_v5 = vpop.eup %2240  ;;  %vm1039_vm10 = vweird.f32 %v2239_v46  ;;  %vm1043_vm13 = vcmp.eq.f32.partialorder %v1042_v45, 8.507059e+37 }
 0x260   :  { %v1011_v25 = vsel %vm1010_vm4, %v2235_v49, %v1007_v28  ;;  %vm1040_vm12 = vmor %vm1038_vm11, %vm1039_vm10 }
 0x261   :  { %v1035_v52 = vsub.f32 1.0, %v1034_v29  ;;  %v1016_v55 = vsel %vm1013_vm6, %v1015_v6, %v1011_v25  ;;  %v1026_v35 = vsel %vm1025_vm7, %v2237_v19, %v1022_v58  ;;  %v3059_v6 = vld [vmem:[#allocation14_spill] sm:$0xff] }
 0x262   :  { %v1050_v22 = vmul.f32 %v2241_v5, %v1016_v55  ;;  %v1031_v31 = vsel %vm1028_vm8, %v1030_v42, %v1026_v35  ;;  %v3060_v55 = vld [vmem:[#allocation15_spill] sm:$0xff] }
 0x263   :  { %v1036_v30 = vmul.f32 %v2239_v46, %v1035_v52  ;;  %v1049_v0 = vmul.f32 %v1031_v31, %v2760_v17 }
 0x265   :  { %v1051_v12 = vadd.f32 %v1050_v22, %v1049_v0  ;;  %v1037_v16 = vadd.f32 %v2239_v46, %v1036_v30 }
 0x267   :  { %2242 = vtanh.f32 %v1051_v12  ;;  %v2811_v49 = vsel %vm1061_vm9, %v1051_v12, %v2760_v17  ;;  %v1041_v19 = vsel %vm1040_vm12, %v2239_v46, %v1037_v16  ;;  %v3058_v46 = vld [vmem:[#allocation13_spill] sm:$0xff] }
 0x268   :  { %v1046_v18 = vsel %vm1043_vm13, %v1045_v61, %v1041_v19  ;;  %v2324_v19 = vld [vmem:[%s3019_s0] sm:$0xff] }
 0x269   :  { %vm1346_vm14 = vcmp.gt.s32.totalorder %v2324_v19, 4  ;;  %vm1491_vm15 = vcmp.gt.s32.totalorder %v2324_v19, 5 }
 0x26d   :  { %v2243_v57 = vpop.eup %2242 }
 0x26e   :  { %v1053_v27 = vmul.f32 %v2243_v57, %v1046_v18  ;;  %v1347_v57 = vsel %vm1346_vm14, 1, %v3053_v23 }
 0x26f   :  { %1349 = vperm.xlu2 %2195, %v1347_v57  }
 0x270   :  { %v2815_v54 = vsel %vm1061_vm9, %v1053_v27, %v2764_v34  ;;  %v1066_v43 = vsel %vm1061_vm9, %v1053_v27, 0.0 }
 0x271   :  { %v1067_v28 = vpack.c.bf16 %v1066_v43, %v1066_v43  ;;  %v1079_v17 = vpack.c.bf16 %v2815_v54, %v2815_v54  ;;  %v3061_v43 = vld [vmem:[#allocation16_spill] sm:$0xff] }
 0x273   :  { %2098 = vst [vmem:[%s3024_s5 + $0x8] sm:$0xf] %v1067_v28  ;;  %1088 = vmatmul.bf16.vlgmr.msra.gmra.mxu0 %v1079_v17  ;;  %1101 = vmatmul.bf16.vlgmr.msra.gmra.mxu1 %v1079_v17 }
 0x274   :  { %1114 = vmatmul.bf16.vlgmr.msra.gmra.mxu2 %v1079_v17  ;;  %1127 = vmatmul.bf16.vlgmr.msra.gmra.mxu3 %v1079_v17 }
 0x275   :  { %1370 = vmatpush.bf16.msra.mxu0 %v2444_v37  ;;  %1383 = vmatpush.bf16.msra.mxu1 %v2446_v41 }
 0x276   :  { %1396 = vmatpush.bf16.msra.mxu2 %v2448_v47  ;;  %1409 = vmatpush.bf16.msra.mxu3 %v2453_v51 }
 0x279   :  { %1371 = vmatpush.bf16.msra.mxu0 %v2451_v48  ;;  %1384 = vmatpush.bf16.msra.mxu1 %v2456_v53 }
 0x27a   :  { %1397 = vmatpush.bf16.msra.mxu2 %v2459_v59  ;;  %1410 = vmatpush.bf16.msra.mxu3 %v2465_v63 }
 0x27d   :  { %1372 = vmatpush.bf16.msra.mxu0 %v2463_v60  ;;  %1385 = vmatpush.bf16.msra.mxu1 %v2468_v1 }
 0x27e   :  { %1398 = vmatpush.bf16.msra.mxu2 %v2471_v7  ;;  %1411 = vmatpush.bf16.msra.mxu3 %v2477_v11 }
 0x281   :  { %1373 = vmatpush.bf16.msra.mxu0 %v2475_v8  ;;  %1386 = vmatpush.bf16.msra.mxu1 %v2480_v13 }
 0x282   :  { %1399 = vmatpush.bf16.msra.mxu2 %v2486_v20  ;;  %1412 = vmatpush.bf16.msra.mxu3 %v2492_v24 }
 0x285   :  { %1374 = vmatpush.bf16.msra.mxu0 %v2490_v21  ;;  %1387 = vmatpush.bf16.msra.mxu1 %v2495_v26 }
 0x286   :  { %1400 = vmatpush.bf16.msra.mxu2 %v2498_v32  ;;  %1413 = vmatpush.bf16.msra.mxu3 %v2504_v36 }
 0x289   :  { %1375 = vmatpush.bf16.msra.mxu0 %v2502_v33  ;;  %1388 = vmatpush.bf16.msra.mxu1 %v2507_v38 }
 0x28a   :  { %1401 = vmatpush.bf16.msra.mxu2 %v2510_v39  ;;  %1414 = vmatpush.bf16.msra.mxu3 %v2519_v56 }
 0x28d   :  { %1376 = vmatpush.bf16.msra.mxu0 %v2514_v44  ;;  %1389 = vmatpush.bf16.msra.mxu1 %v2517_v50 }
 0x28e   :  { %1402 = vmatpush.bf16.msra.mxu2 %v2522_v62  ;;  %1415 = vmatpush.bf16.msra.mxu3 %v2528_v4 }
 0x291   :  { %1377 = vmatpush.bf16.msra.mxu0 %v2526_v3  ;;  %1390 = vmatpush.bf16.msra.mxu1 %v2531_v9 }
 0x292   :  { %1403 = vmatpush.bf16.msra.mxu2 %v2534_v14  ;;  %1416 = vmatpush.bf16.msra.mxu3 %v2538_v15 }
 0x2f0   :  { %v1089_v34 = vpop.f32.mrf.mxu0  ;;  %v1102_v40 = vpop.f32.mrf.mxu1 }
 0x2f1   :  { %v1132_v29 = vadd.f32 %v1089_v34, %v3058_v46  ;;  %v1133_v58 = vadd.f32 %v1102_v40, %v3059_v6 }
 0x2f3   :  { %v2099_v25 = vmul.f32 -1.442695, %v1132_v29  ;;  %v2100_v42 = vmul.f32 -1.442695, %v1133_v58  ;;  %v1492_v58 = vsel %vm1491_vm15, 1, %v3053_v23 }
 0x2f4   :  { %1494 = vperm.xlu2 %2195, %v1492_v58  }
 0x2f5   :  { %2244 = vpow2.f32 %v2099_v25 }
 0x2f6   :  { %2246 = vpow2.f32 %v2100_v42 }
 0x2f7   :  { %v1115_v5 = vpop.f32.mrf.mxu2  ;;  %v1128_v52 = vpop.f32.mrf.mxu3 }
 0x2f8   :  { %v1134_v35 = vadd.f32 %v1115_v5, %v3060_v55  ;;  %v1091_v22 = vpop.f32.mrf.mxu0  ;;  %v1104_v31 = vpop.f32.mrf.mxu1  ;;  %v1135_v28 = vadd.f32 %v1128_v52, %v3061_v43 }
 0x2fa   :  { %v2101_v2 = vmul.f32 -1.442695, %v1134_v35 }
 0x2fb   :  { %v2245_v30 = vpop.eup %2244 }
 0x2fc   :  { %v2247_v0 = vpop.eup %2246  ;;  %v1145_v12 = vadd.f32 1.0, %v2245_v30  ;;  %2248 = vpow2.f32 %v2101_v2 }
 0x2fd   :  { %v1146_v16 = vadd.f32 1.0, %v2247_v0 }
 0x2fe   :  { %2250 = vrcp.f32 %v1145_v12  ;;  %v1159_v6 = vand.u32 2147483648, %v1145_v12  ;;  %v1157_v5 = vand.u32 2147483647, %v1145_v12  ;;  %vm1153_vm2 = vweird.f32 %v1145_v12 }
 0x2ff   :  { %2252 = vrcp.f32 %v1146_v16  ;;  %v1117_v10 = vpop.f32.mrf.mxu2  ;;  %v1130_v45 = vpop.f32.mrf.mxu3  ;;  %v1174_v25 = vand.u32 2147483648, %v1146_v16  ;;  %v1172_v35 = vand.u32 2147483647, %v1146_v16  ;;  %vm1168_vm3 = vweird.f32 %v1146_v16 }
 0x300   :  { %v1160_v2 = vor.u32 1.1754944e-38, %v1159_v6  ;;  %vm1158_vm6 = vcmp.eq.f32.partialorder %v1157_v5, 8.507059e+37 }
 0x301   :  { %v1175_v0 = vor.u32 1.1754944e-38, %v1174_v25  ;;  %vm1173_vm7 = vcmp.eq.f32.partialorder %v1172_v35, 8.507059e+37 }
 0x302   :  { %v2249_v61 = vpop.eup %2248 }
 0x303   :  { %v1147_v18 = vadd.f32 1.0, %v2249_v61 }
 0x304   :  { %v2251_v27 = vpop.eup %2250 }
 0x305   :  { %v2253_v17 = vpop.eup %2252  ;;  %v1149_v34 = vmul.f32 %v2251_v27, %v1145_v12  ;;  %2254 = vrcp.f32 %v1147_v18  ;;  %vm1154_vm0 = vweird.f32 %v2251_v27  ;;  %vm1183_vm10 = vweird.f32 %v1147_v18 }
 0x306   :  { %v1164_v40 = vmul.f32 %v2253_v17, %v1146_v16  ;;  %2256 = vtanh.f32 %v1135_v28  ;;  %vm1169_vm1 = vweird.f32 %v2253_v17  ;;  %vm1155_vm4 = vmor %vm1153_vm2, %vm1154_vm0 }
 0x307   :  { %v1150_v46 = vsub.f32 1.0, %v1149_v34  ;;  %vm1170_vm5 = vmor %vm1168_vm3, %vm1169_vm1  ;;  %v1205_v34 = vpop.permute.xlu1 %1204 }
 0x308   :  { %v1165_v29 = vsub.f32 1.0, %v1164_v40  ;;  %vm1206_vm8 = vcmp.eq.s32.totalorder %v1205_v34, 1 }
 0x309   :  { %v1151_v42 = vmul.f32 %v2251_v27, %v1150_v46  ;;  %v1189_v46 = vand.u32 2147483648, %v1147_v18 }
 0x30a   :  { %v1166_v55 = vmul.f32 %v2253_v17, %v1165_v29  ;;  %v1187_v29 = vand.u32 2147483647, %v1147_v18 }
 0x30b   :  { %v2255_v22 = vpop.eup %2254  ;;  %v1152_v52 = vadd.f32 %v2251_v27, %v1151_v42  ;;  %v1190_v6 = vor.u32 1.1754944e-38, %v1189_v46 }
 0x30c   :  { %v1179_v31 = vmul.f32 %v2255_v22, %v1147_v18  ;;  %v1167_v30 = vadd.f32 %v2253_v17, %v1166_v55  ;;  %v2257_v23 = vpop.eup %2256  ;;  %vm1184_vm9 = vweird.f32 %v2255_v22  ;;  %vm1188_vm12 = vcmp.eq.f32.partialorder %v1187_v29, 8.507059e+37 }
 0x30d   :  { %v1156_v10 = vsel %vm1155_vm4, %v2251_v27, %v1152_v52  ;;  %vm1185_vm11 = vmor %vm1183_vm10, %vm1184_vm9 }
 0x30e   :  { %v1180_v45 = vsub.f32 1.0, %v1179_v31  ;;  %v1161_v19 = vsel %vm1158_vm6, %v1160_v2, %v1156_v10  ;;  %v1171_v61 = vsel %vm1170_vm5, %v2253_v17, %v1167_v30  ;;  %v3063_v31 = vld [vmem:[#allocation18_spill] sm:$0xff] }
 0x30f   :  { %v1176_v57 = vsel %vm1173_vm7, %v1175_v0, %v1171_v61  ;;  %v1195_v43 = vmul.f32 %v2257_v23, %v1161_v19 }
 0x310   :  { %v1181_v28 = vmul.f32 %v2255_v22, %v1180_v45  ;;  %v1194_v12 = vmul.f32 %v1176_v57, %v2811_v49  ;;  %v3064_v45 = vld [vmem:[#allocation19_spill] sm:$0xff] }
 0x312   :  { %v1196_v16 = vadd.f32 %v1195_v43, %v1194_v12  ;;  %v1182_v40 = vadd.f32 %v2255_v22, %v1181_v28 }
 0x314   :  { %2258 = vtanh.f32 %v1196_v16  ;;  %v2867_v27 = vsel %vm1206_vm8, %v1196_v16, %v2811_v49  ;;  %v1186_v17 = vsel %vm1185_vm11, %v2255_v22, %v1182_v40  ;;  %v3062_v22 = vld [vmem:[#allocation17_spill] sm:$0xff] }
 0x315   :  { %v1191_v25 = vsel %vm1188_vm12, %v1190_v6, %v1186_v17 }
 0x31a   :  { %v2259_v58 = vpop.eup %2258 }
 0x31b   :  { %v1198_v42 = vmul.f32 %v2259_v58, %v1191_v25  ;;  %v3065_v58 = vld [vmem:[#allocation20_spill] sm:$0xff] }
 0x31d   :  { %v2871_v5 = vsel %vm1206_vm8, %v1198_v42, %v2815_v54  ;;  %v1211_v55 = vsel %vm1206_vm8, %v1198_v42, 0.0 }
 0x31e   :  { %v1212_v35 = vpack.c.bf16 %v1211_v55, %v1211_v55  ;;  %v1224_v49 = vpack.c.bf16 %v2871_v5, %v2871_v5 }
 0x320   :  { %2102 = vst [vmem:[%s3024_s5 + $0xc] sm:$0xf] %v1212_v35  ;;  %1233 = vmatmul.bf16.vlgmr.msrb.gmra.mxu0 %v1224_v49  ;;  %1246 = vmatmul.bf16.vlgmr.msrb.gmra.mxu1 %v1224_v49 }
 0x321   :  { %1259 = vmatmul.bf16.vlgmr.msrb.gmra.mxu2 %v1224_v49  ;;  %1272 = vmatmul.bf16.vlgmr.msrb.gmra.mxu3 %v1224_v49 }
 0x322   :  { %1515 = vmatpush.bf16.msrb.mxu0 %v2444_v37  ;;  %1528 = vmatpush.bf16.msrb.mxu1 %v2446_v41 }
 0x323   :  { %1541 = vmatpush.bf16.msrb.mxu2 %v2448_v47  ;;  %1554 = vmatpush.bf16.msrb.mxu3 %v2453_v51 }
 0x326   :  { %1516 = vmatpush.bf16.msrb.mxu0 %v2451_v48  ;;  %1529 = vmatpush.bf16.msrb.mxu1 %v2456_v53 }
 0x327   :  { %1542 = vmatpush.bf16.msrb.mxu2 %v2459_v59  ;;  %1555 = vmatpush.bf16.msrb.mxu3 %v2465_v63 }
 0x32a   :  { %1517 = vmatpush.bf16.msrb.mxu0 %v2463_v60  ;;  %1530 = vmatpush.bf16.msrb.mxu1 %v2468_v1 }
 0x32b   :  { %1543 = vmatpush.bf16.msrb.mxu2 %v2471_v7  ;;  %1556 = vmatpush.bf16.msrb.mxu3 %v2477_v11 }
 0x32e   :  { %1518 = vmatpush.bf16.msrb.mxu0 %v2475_v8  ;;  %1531 = vmatpush.bf16.msrb.mxu1 %v2480_v13 }
 0x32f   :  { %1544 = vmatpush.bf16.msrb.mxu2 %v2486_v20  ;;  %1557 = vmatpush.bf16.msrb.mxu3 %v2492_v24 }
 0x332   :  { %1519 = vmatpush.bf16.msrb.mxu0 %v2490_v21  ;;  %1532 = vmatpush.bf16.msrb.mxu1 %v2495_v26 }
 0x333   :  { %1545 = vmatpush.bf16.msrb.mxu2 %v2498_v32  ;;  %1558 = vmatpush.bf16.msrb.mxu3 %v2504_v36 }
 0x336   :  { %1520 = vmatpush.bf16.msrb.mxu0 %v2502_v33  ;;  %1533 = vmatpush.bf16.msrb.mxu1 %v2507_v38 }
 0x337   :  { %1546 = vmatpush.bf16.msrb.mxu2 %v2510_v39  ;;  %1559 = vmatpush.bf16.msrb.mxu3 %v2519_v56 }
 0x33a   :  { %1521 = vmatpush.bf16.msrb.mxu0 %v2514_v44  ;;  %1534 = vmatpush.bf16.msrb.mxu1 %v2517_v50 }
 0x33b   :  { %1547 = vmatpush.bf16.msrb.mxu2 %v2522_v62  ;;  %1560 = vmatpush.bf16.msrb.mxu3 %v2528_v4 }
 0x33e   :  { %1522 = vmatpush.bf16.msrb.mxu0 %v2526_v3  ;;  %1535 = vmatpush.bf16.msrb.mxu1 %v2531_v9 }
 0x33f   :  { %1548 = vmatpush.bf16.msrb.mxu2 %v2534_v14  ;;  %1561 = vmatpush.bf16.msrb.mxu3 %v2538_v15 }
 0x39d   :  { %v1234_v54 = vpop.f32.mrf.mxu0  ;;  %v1247_v18 = vpop.f32.mrf.mxu1 }
 0x39e   :  { %v1277_v52 = vadd.f32 %v1234_v54, %v3062_v22  ;;  %v1278_v2 = vadd.f32 %v1247_v18, %v3063_v31 }
 0x3a0   :  { %v2103_v30 = vmul.f32 -1.442695, %v1277_v52  ;;  %v2104_v0 = vmul.f32 -1.442695, %v1278_v2 }
 0x3a2   :  { %2260 = vpow2.f32 %v2103_v30 }
 0x3a3   :  { %2262 = vpow2.f32 %v2104_v0 }
 0x3a4   :  { %v1260_v10 = vpop.f32.mrf.mxu2  ;;  %v1273_v23 = vpop.f32.mrf.mxu3 }
 0x3a5   :  { %v1279_v19 = vadd.f32 %v1260_v10, %v3064_v45  ;;  %v1236_v61 = vpop.f32.mrf.mxu0  ;;  %v1249_v57 = vpop.f32.mrf.mxu1  ;;  %v1280_v25 = vadd.f32 %v1273_v23, %v3065_v58 }
 0x3a7   :  { %v2105_v43 = vmul.f32 -1.442695, %v1279_v19 }
 0x3a8   :  { %v2261_v28 = vpop.eup %2260 }
 0x3a9   :  { %v2263_v12 = vpop.eup %2262  ;;  %v1290_v34 = vadd.f32 1.0, %v2261_v28  ;;  %2264 = vpow2.f32 %v2105_v43 }
 0x3aa   :  { %v1291_v16 = vadd.f32 1.0, %v2263_v12 }
 0x3ab   :  { %2266 = vrcp.f32 %v1290_v34  ;;  %v1304_v18 = vand.u32 2147483648, %v1290_v34  ;;  %v1302_v52 = vand.u32 2147483647, %v1290_v34  ;;  %vm1298_vm15 = vweird.f32 %v1290_v34 }
 0x3ac   :  { %2268 = vrcp.f32 %v1291_v16  ;;  %v1262_v40 = vpop.f32.mrf.mxu2  ;;  %v1275_v46 = vpop.f32.mrf.mxu3  ;;  %v1319_v31 = vand.u32 2147483648, %v1291_v16  ;;  %v1317_v30 = vand.u32 2147483647, %v1291_v16  ;;  %vm1313_vm1 = vweird.f32 %v1291_v16 }
 0x3ad   :  { %v1305_v23 = vor.u32 1.1754944e-38, %v1304_v18  ;;  %vm1303_vm2 = vcmp.eq.f32.partialorder %v1302_v52, 8.507059e+37  ;;  %v1350_v40 = vpop.permute.xlu2 %1349 }
 0x3ae   :  { %v1320_v57 = vor.u32 1.1754944e-38, %v1319_v31  ;;  %vm1318_vm4 = vcmp.eq.f32.partialorder %v1317_v30, 8.507059e+37  ;;  %vm1351_vm5 = vcmp.eq.s32.totalorder %v1350_v40, 1 }
 0x3af   :  { %v2265_v29 = vpop.eup %2264 }
 0x3b0   :  { %v1292_v17 = vadd.f32 1.0, %v2265_v29 }
 0x3b1   :  { %v2267_v6 = vpop.eup %2266 }
 0x3b2   :  { %v2269_v42 = vpop.eup %2268  ;;  %v1294_v55 = vmul.f32 %v2267_v6, %v1290_v34  ;;  %2270 = vrcp.f32 %v1292_v17  ;;  %vm1299_vm13 = vweird.f32 %v2267_v6  ;;  %vm1328_vm7 = vweird.f32 %v1292_v17 }
 0x3b3   :  { %v1309_v35 = vmul.f32 %v2269_v42, %v1291_v16  ;;  %2272 = vtanh.f32 %v1280_v25  ;;  %vm1314_vm14 = vweird.f32 %v2269_v42  ;;  %vm1300_vm0 = vmor %vm1298_vm15, %vm1299_vm13  ;;  %v1334_v16 = vand.u32 2147483648, %v1292_v17 }
 0x3b4   :  { %v1295_v49 = vsub.f32 1.0, %v1294_v55  ;;  %vm1315_vm3 = vmor %vm1313_vm1, %vm1314_vm14 }
 0x3b5   :  { %v1310_v54 = vsub.f32 1.0, %v1309_v35 }
 0x3b6   :  { %v1296_v22 = vmul.f32 %v2267_v6, %v1295_v49  ;;  %v1332_v49 = vand.u32 2147483647, %v1292_v17 }
 0x3b7   :  { %v1311_v2 = vmul.f32 %v2269_v42, %v1310_v54  ;;  %v1335_v54 = vor.u32 1.1754944e-38, %v1334_v16 }
 0x3b8   :  { %v2271_v0 = vpop.eup %2270  ;;  %v1297_v10 = vadd.f32 %v2267_v6, %v1296_v22  ;;  %vm1333_vm9 = vcmp.eq.f32.partialorder %v1332_v49, 8.507059e+37 }
 0x3b9   :  { %v1324_v45 = vmul.f32 %v2271_v0, %v1292_v17  ;;  %v1312_v19 = vadd.f32 %v2269_v42, %v1311_v2  ;;  %v2273_v43 = vpop.eup %2272  ;;  %vm1329_vm6 = vweird.f32 %v2271_v0 }
 0x3ba   :  { %v1301_v61 = vsel %vm1300_vm0, %v2267_v6, %v1297_v10  ;;  %vm1330_vm8 = vmor %vm1328_vm7, %vm1329_vm6 }
 0x3bb   :  { %v1325_v28 = vsub.f32 1.0, %v1324_v45  ;;  %v1306_v12 = vsel %vm1303_vm2, %v1305_v23, %v1301_v61  ;;  %v1316_v46 = vsel %vm1315_vm3, %v2269_v42, %v1312_v19 }
 0x3bc   :  { %v1340_v29 = vmul.f32 %v2273_v43, %v1306_v12  ;;  %v1321_v58 = vsel %vm1318_vm4, %v1320_v57, %v1316_v46 }
 0x3bd   :  { %v1326_v25 = vmul.f32 %v2271_v0, %v1325_v28  ;;  %v1339_v34 = vmul.f32 %v1321_v58, %v2867_v27 }
 0x3bf   :  { %v1341_v55 = vadd.f32 %v1340_v29, %v1339_v34  ;;  %v1327_v35 = vadd.f32 %v2271_v0, %v1326_v25 }
 0x3c1   :  { %2274 = vtanh.f32 %v1341_v55  ;;  %v2918_v6 = vsel %vm1351_vm5, %v1341_v55, %v2867_v27  ;;  %v1331_v42 = vsel %vm1330_vm8, %v2271_v0, %v1327_v35  ;;  %v1495_v55 = vpop.permute.xlu2 %1494 }
 0x3c2   :  { %v1336_v22 = vsel %vm1333_vm9, %v1335_v54, %v1331_v42  ;;  %vm1496_vm2 = vcmp.eq.s32.totalorder %v1495_v55, 1 }
 0x3c7   :  { %v2275_v18 = vpop.eup %2274 }
 0x3c8   :  { %v1343_v52 = vmul.f32 %v2275_v18, %v1336_v22 }
 0x3ca   :  { %v2922_v31 = vsel %vm1351_vm5, %v1343_v52, %v2871_v5  ;;  %v1356_v2 = vsel %vm1351_vm5, %v1343_v52, 0.0 }
 0x3cb   :  { %v1357_v30 = vpack.c.bf16 %v1356_v2, %v1356_v2  ;;  %v1369_v27 = vpack.c.bf16 %v2922_v31, %v2922_v31 }
 0x3cd   :  { %2106 = vst [vmem:[%s3024_s5 + $0x10] sm:$0xf] %v1357_v30  ;;  %1378 = vmatmul.bf16.vlgmr.msra.gmra.mxu0 %v1369_v27  ;;  %1391 = vmatmul.bf16.vlgmr.msra.gmra.mxu1 %v1369_v27 }
 0x3ce   :  { %1404 = vmatmul.bf16.vlgmr.msra.gmra.mxu2 %v1369_v27  ;;  %1417 = vmatmul.bf16.vlgmr.msra.gmra.mxu3 %v1369_v27 }
 0x3cf   :  { %1660 = vmatpush.bf16.msra.mxu0 %v2444_v37  ;;  %1673 = vmatpush.bf16.msra.mxu1 %v2446_v41 }
 0x3d0   :  { %1686 = vmatpush.bf16.msra.mxu2 %v2448_v47  ;;  %1699 = vmatpush.bf16.msra.mxu3 %v2453_v51  ;;  %v3066_v47 = vld [vmem:[#allocation21_spill] sm:$0xff]  ;;  %v3067_v51 = vld [vmem:[#allocation22_spill] sm:$0xff] }
 0x3d3   :  { %1661 = vmatpush.bf16.msra.mxu0 %v2451_v48  ;;  %1674 = vmatpush.bf16.msra.mxu1 %v2456_v53 }
 0x3d4   :  { %1687 = vmatpush.bf16.msra.mxu2 %v2459_v59  ;;  %1700 = vmatpush.bf16.msra.mxu3 %v2465_v63 }
 0x3d7   :  { %1662 = vmatpush.bf16.msra.mxu0 %v2463_v60  ;;  %1675 = vmatpush.bf16.msra.mxu1 %v2468_v1 }
 0x3d8   :  { %1688 = vmatpush.bf16.msra.mxu2 %v2471_v7  ;;  %1701 = vmatpush.bf16.msra.mxu3 %v2477_v11  ;;  %v3068_v7 = vld [vmem:[#allocation23_spill] sm:$0xff] }
 0x3db   :  { %1663 = vmatpush.bf16.msra.mxu0 %v2475_v8  ;;  %1676 = vmatpush.bf16.msra.mxu1 %v2480_v13 }
 0x3dc   :  { %1689 = vmatpush.bf16.msra.mxu2 %v2486_v20  ;;  %1702 = vmatpush.bf16.msra.mxu3 %v2492_v24 }
 0x3df   :  { %1664 = vmatpush.bf16.msra.mxu0 %v2490_v21  ;;  %1677 = vmatpush.bf16.msra.mxu1 %v2495_v26 }
 0x3e0   :  { %1690 = vmatpush.bf16.msra.mxu2 %v2498_v32  ;;  %1703 = vmatpush.bf16.msra.mxu3 %v2504_v36 }
 0x3e3   :  { %1665 = vmatpush.bf16.msra.mxu0 %v2502_v33  ;;  %1678 = vmatpush.bf16.msra.mxu1 %v2507_v38 }
 0x3e4   :  { %1691 = vmatpush.bf16.msra.mxu2 %v2510_v39  ;;  %1704 = vmatpush.bf16.msra.mxu3 %v2519_v56 }
 0x3e7   :  { %1666 = vmatpush.bf16.msra.mxu0 %v2514_v44  ;;  %1679 = vmatpush.bf16.msra.mxu1 %v2517_v50  ;;  %v3069_v50 = vld [vmem:[#allocation24_spill] sm:$0xff] }
 0x3e8   :  { %1692 = vmatpush.bf16.msra.mxu2 %v2522_v62  ;;  %1705 = vmatpush.bf16.msra.mxu3 %v2528_v4 }
 0x3eb   :  { %1667 = vmatpush.bf16.msra.mxu0 %v2526_v3  ;;  %1680 = vmatpush.bf16.msra.mxu1 %v2531_v9 }
 0x3ec   :  { %1693 = vmatpush.bf16.msra.mxu2 %v2534_v14  ;;  %1706 = vmatpush.bf16.msra.mxu3 %v2538_v15 }
 0x44a   :  { %v1379_v37 = vpop.f32.mrf.mxu0  ;;  %v1392_v41 = vpop.f32.mrf.mxu1 }
 0x44b   :  { %v1422_v48 = vadd.f32 %v1379_v37, %v3066_v47  ;;  %v1423_v53 = vadd.f32 %v1392_v41, %v3067_v51 }
 0x44d   :  { %v2107_v59 = vmul.f32 -1.442695, %v1422_v48  ;;  %v2108_v60 = vmul.f32 -1.442695, %v1423_v53 }
 0x44f   :  { %2276 = vpow2.f32 %v2107_v59  ;;  %v3070_v59 = vld [vmem:[#allocation25_spill] sm:$0xff] }
 0x450   :  { %2278 = vpow2.f32 %v2108_v60 }
 0x451   :  { %v1405_v63 = vpop.f32.mrf.mxu2  ;;  %v1418_v1 = vpop.f32.mrf.mxu3 }
 0x452   :  { %v1424_v8 = vadd.f32 %v1405_v63, %v3068_v7  ;;  %v1381_v11 = vpop.f32.mrf.mxu0  ;;  %v1394_v13 = vpop.f32.mrf.mxu1  ;;  %v1425_v56 = vadd.f32 %v1418_v1, %v3069_v50 }
 0x453   :  { %v3072_v13 = vld [vmem:[#allocation27_spill] sm:$0xff] }
 0x454   :  { %v2109_v20 = vmul.f32 -1.442695, %v1424_v8 }
 0x455   :  { %v2277_v21 = vpop.eup %2276 }
 0x456   :  { %v2279_v24 = vpop.eup %2278  ;;  %v1435_v26 = vadd.f32 1.0, %v2277_v21  ;;  %2280 = vpow2.f32 %v2109_v20 }
 0x457   :  { %v1436_v32 = vadd.f32 1.0, %v2279_v24 }
 0x458   :  { %2282 = vrcp.f32 %v1435_v26  ;;  %v1449_v15 = vand.u32 2147483648, %v1435_v26  ;;  %v1447_v0 = vand.u32 2147483647, %v1435_v26  ;;  %vm1443_vm12 = vweird.f32 %v1435_v26 }
 0x459   :  { %2284 = vrcp.f32 %v1436_v32  ;;  %v1407_v33 = vpop.f32.mrf.mxu2  ;;  %v1420_v36 = vpop.f32.mrf.mxu3  ;;  %v1464_v5 = vand.u32 2147483648, %v1436_v32  ;;  %v1462_v45 = vand.u32 2147483647, %v1436_v32  ;;  %vm1458_vm13 = vweird.f32 %v1436_v32 }
 0x45a   :  { %v1450_v57 = vor.u32 1.1754944e-38, %v1449_v15  ;;  %vm1448_vm0 = vcmp.eq.f32.partialorder %v1447_v0, 8.507059e+37 }
 0x45b   :  { %v1465_v28 = vor.u32 1.1754944e-38, %v1464_v5  ;;  %vm1463_vm1 = vcmp.eq.f32.partialorder %v1462_v45, 8.507059e+37 }
 0x45c   :  { %v2281_v38 = vpop.eup %2280 }
 0x45d   :  { %v1437_v39 = vadd.f32 1.0, %v2281_v38 }
 0x45e   :  { %v2283_v44 = vpop.eup %2282 }
 0x45f   :  { %v2285_v62 = vpop.eup %2284  ;;  %v1439_v3 = vmul.f32 %v2283_v44, %v1435_v26  ;;  %2286 = vrcp.f32 %v1437_v39  ;;  %vm1444_vm10 = vweird.f32 %v2283_v44  ;;  %v1479_v54 = vand.u32 2147483648, %v1437_v39 }
 0x460   :  { %v1454_v4 = vmul.f32 %v2285_v62, %v1436_v32  ;;  %2288 = vtanh.f32 %v1425_v56  ;;  %vm1459_vm11 = vweird.f32 %v2285_v62  ;;  %vm1445_vm14 = vmor %vm1443_vm12, %vm1444_vm10  ;;  %vm1473_vm4 = vweird.f32 %v1437_v39 }
 0x461   :  { %v1440_v9 = vsub.f32 1.0, %v1439_v3  ;;  %vm1460_vm15 = vmor %vm1458_vm13, %vm1459_vm11  ;;  %v1477_v22 = vand.u32 2147483647, %v1437_v39  ;;  %v1480_v2 = vor.u32 1.1754944e-38, %v1479_v54  ;;  %v3073_v3 = vld [vmem:[#allocation28_spill] sm:$0xff] }
 0x462   :  { %v1455_v14 = vsub.f32 1.0, %v1454_v4 }
 0x463   :  { %v1441_v17 = vmul.f32 %v2283_v44, %v1440_v9  ;;  %vm1478_vm6 = vcmp.eq.f32.partialorder %v1477_v22, 8.507059e+37 }
 0x464   :  { %v1456_v10 = vmul.f32 %v2285_v62, %v1455_v14 }
 0x465   :  { %v2287_v23 = vpop.eup %2286  ;;  %v1442_v19 = vadd.f32 %v2283_v44, %v1441_v17 }
 0x466   :  { %v1469_v61 = vmul.f32 %v2287_v23, %v1437_v39  ;;  %v1457_v43 = vadd.f32 %v2285_v62, %v1456_v10  ;;  %v2289_v40 = vpop.eup %2288  ;;  %vm1474_vm3 = vweird.f32 %v2287_v23 }
 0x467   :  { %v1446_v12 = vsel %vm1445_vm14, %v2283_v44, %v1442_v19  ;;  %vm1475_vm5 = vmor %vm1473_vm4, %vm1474_vm3 }
 0x468   :  { %v1470_v46 = vsub.f32 1.0, %v1469_v61  ;;  %v1451_v29 = vsel %vm1448_vm0, %v1450_v57, %v1446_v12  ;;  %v1461_v58 = vsel %vm1460_vm15, %v2285_v62, %v1457_v43 }
 0x469   :  { %v1466_v25 = vsel %vm1463_vm1, %v1465_v28, %v1461_v58  ;;  %v1485_v34 = vmul.f32 %v2289_v40, %v1451_v29 }
 0x46a   :  { %v1471_v35 = vmul.f32 %v2287_v23, %v1470_v46  ;;  %v1484_v16 = vmul.f32 %v1466_v25, %v2918_v6 }
 0x46c   :  { %v1486_v49 = vadd.f32 %v1485_v34, %v1484_v16  ;;  %v1472_v42 = vadd.f32 %v2287_v23, %v1471_v35 }
 0x46e   :  { %2290 = vtanh.f32 %v1486_v49  ;;  %v2969_v18 = vsel %vm1496_vm2, %v1486_v49, %v2918_v6  ;;  %v1476_v52 = vsel %vm1475_vm5, %v2287_v23, %v1472_v42  ;;  %v1640_v49 = vpop.permute.xlu0 %1639 }
 0x46f   :  { %v1481_v27 = vsel %vm1478_vm6, %v1480_v2, %v1476_v52  ;;  %vm1641_vm15 = vcmp.eq.s32.totalorder %v1640_v49, 1 }
 0x474   :  { %v2291_v30 = vpop.eup %2290 }
 0x475   :  { %v1488_v37 = vmul.f32 %v2291_v30, %v1481_v27 }
 0x477   :  { %v2973_v41 = vsel %vm1496_vm2, %v1488_v37, %v2922_v31  ;;  %v1501_v47 = vsel %vm1496_vm2, %v1488_v37, 0.0  ;;  %v3071_v31 = vld [vmem:[#allocation26_spill] sm:$0xff] }
 0x478   :  { %v1502_v48 = vpack.c.bf16 %v1501_v47, %v1501_v47  ;;  %v1514_v6 = vpack.c.bf16 %v2973_v41, %v2973_v41 }
 0x47a   :  { %2110 = vst [vmem:[%s3024_s5 + $0x14] sm:$0xf] %v1502_v48  ;;  %1523 = vmatmul.bf16.vlgmr.msrb.gmra.mxu0 %v1514_v6  ;;  %1536 = vmatmul.bf16.vlgmr.msrb.gmra.mxu1 %v1514_v6 }
 0x47b   :  { %1549 = vmatmul.bf16.vlgmr.msrb.gmra.mxu2 %v1514_v6  ;;  %1562 = vmatmul.bf16.vlgmr.msrb.gmra.mxu3 %v1514_v6 }
 0x4f7   :  { %v1524_v51 = vpop.f32.mrf.mxu0  ;;  %v1537_v53 = vpop.f32.mrf.mxu1 }
 0x4f8   :  { %v1567_v60 = vadd.f32 %v1524_v51, %v3070_v59  ;;  %v1568_v63 = vadd.f32 %v1537_v53, %v3071_v31 }
 0x4fa   :  { %v2111_v1 = vmul.f32 -1.442695, %v1567_v60  ;;  %v2112_v7 = vmul.f32 -1.442695, %v1568_v63 }
 0x4fc   :  { %2292 = vpow2.f32 %v2111_v1  ;;  %v3074_v1 = vld [vmem:[#allocation29_spill] sm:$0xff] }
 0x4fd   :  { %2294 = vpow2.f32 %v2112_v7 }
 0x4fe   :  { %v1550_v8 = vpop.f32.mrf.mxu2  ;;  %v1563_v11 = vpop.f32.mrf.mxu3 }
 0x4ff   :  { %v1569_v20 = vadd.f32 %v1550_v8, %v3072_v13  ;;  %v1526_v21 = vpop.f32.mrf.mxu0  ;;  %v1539_v24 = vpop.f32.mrf.mxu1  ;;  %v1570_v4 = vadd.f32 %v1563_v11, %v3073_v3 }
 0x500   :  { %v3076_v24 = vld [vmem:[#allocation31_spill] sm:$0xff] }
 0x501   :  { %v2113_v26 = vmul.f32 -1.442695, %v1569_v20 }
 0x502   :  { %v2293_v32 = vpop.eup %2292 }
 0x503   :  { %v2295_v33 = vpop.eup %2294  ;;  %v1580_v36 = vadd.f32 1.0, %v2293_v32  ;;  %2296 = vpow2.f32 %v2113_v26 }
 0x504   :  { %v1581_v38 = vadd.f32 1.0, %v2295_v33 }
 0x505   :  { %2298 = vrcp.f32 %v1580_v36  ;;  %v1594_v0 = vand.u32 2147483648, %v1580_v36  ;;  %v1592_v23 = vand.u32 2147483647, %v1580_v36  ;;  %vm1588_vm9 = vweird.f32 %v1580_v36 }
 0x506   :  { %2300 = vrcp.f32 %v1581_v38  ;;  %v1552_v39 = vpop.f32.mrf.mxu2  ;;  %v1565_v44 = vpop.f32.mrf.mxu3  ;;  %v1609_v10 = vand.u32 2147483648, %v1581_v38  ;;  %v1607_v61 = vand.u32 2147483647, %v1581_v38  ;;  %vm1603_vm10 = vweird.f32 %v1581_v38 }
 0x507   :  { %v1595_v12 = vor.u32 1.1754944e-38, %v1594_v0  ;;  %vm1593_vm13 = vcmp.eq.f32.partialorder %v1592_v23, 8.507059e+37 }
 0x508   :  { %v1610_v46 = vor.u32 1.1754944e-38, %v1609_v10  ;;  %vm1608_vm14 = vcmp.eq.f32.partialorder %v1607_v61, 8.507059e+37 }
 0x509   :  { %v2297_v50 = vpop.eup %2296 }
 0x50a   :  { %v1582_v56 = vadd.f32 1.0, %v2297_v50 }
 0x50b   :  { %v2299_v62 = vpop.eup %2298 }
 0x50c   :  { %v2301_v9 = vpop.eup %2300  ;;  %v1584_v14 = vmul.f32 %v2299_v62, %v1580_v36  ;;  %2302 = vrcp.f32 %v1582_v56  ;;  %vm1589_vm7 = vweird.f32 %v2299_v62  ;;  %v1624_v2 = vand.u32 2147483648, %v1582_v56 }
 0x50d   :  { %v1599_v15 = vmul.f32 %v2301_v9, %v1581_v38  ;;  %2304 = vtanh.f32 %v1570_v4  ;;  %vm1604_vm8 = vweird.f32 %v2301_v9  ;;  %vm1590_vm11 = vmor %vm1588_vm9, %vm1589_vm7  ;;  %vm1618_vm1 = vweird.f32 %v1582_v56 }
 0x50e   :  { %v1585_v5 = vsub.f32 1.0, %v1584_v14  ;;  %vm1605_vm12 = vmor %vm1603_vm10, %vm1604_vm8  ;;  %v1622_v27 = vand.u32 2147483647, %v1582_v56  ;;  %v1625_v47 = vor.u32 1.1754944e-38, %v1624_v2  ;;  %v3077_v14 = vld [vmem:[#allocation32_spill] sm:$0xff] }
 0x50f   :  { %v1600_v17 = vsub.f32 1.0, %v1599_v15 }
 0x510   :  { %v1586_v45 = vmul.f32 %v2299_v62, %v1585_v5  ;;  %vm1623_vm3 = vcmp.eq.f32.partialorder %v1622_v27, 8.507059e+37 }
 0x511   :  { %v1601_v19 = vmul.f32 %v2301_v9, %v1600_v17 }
 0x512   :  { %v2303_v57 = vpop.eup %2302  ;;  %v1587_v43 = vadd.f32 %v2299_v62, %v1586_v45 }
 0x513   :  { %v1614_v28 = vmul.f32 %v2303_v57, %v1582_v56  ;;  %v1602_v40 = vadd.f32 %v2301_v9, %v1601_v19  ;;  %v2305_v58 = vpop.eup %2304  ;;  %vm1619_vm0 = vweird.f32 %v2303_v57 }
 0x514   :  { %v1591_v29 = vsel %vm1590_vm11, %v2299_v62, %v1587_v43  ;;  %vm1620_vm2 = vmor %vm1618_vm1, %vm1619_vm0 }
 0x515   :  { %v1615_v25 = vsub.f32 1.0, %v1614_v28  ;;  %v1596_v34 = vsel %vm1593_vm13, %v1595_v12, %v1591_v29  ;;  %v1606_v55 = vsel %vm1605_vm12, %v2301_v9, %v1602_v40 }
 0x516   :  { %v1611_v35 = vsel %vm1608_vm14, %v1610_v46, %v1606_v55  ;;  %v1630_v16 = vmul.f32 %v2305_v58, %v1596_v34 }
 0x517   :  { %v1616_v42 = vmul.f32 %v2303_v57, %v1615_v25  ;;  %v1629_v54 = vmul.f32 %v1611_v35, %v2969_v18 }
 0x519   :  { %v1631_v22 = vadd.f32 %v1630_v16, %v1629_v54  ;;  %v1617_v52 = vadd.f32 %v2303_v57, %v1616_v42 }
 0x51b   :  { %2306 = vtanh.f32 %v1631_v22  ;;  %v2988_v30 = vsel %vm1641_vm15, %v1631_v22, %v2969_v18  ;;  %v1621_v37 = vsel %vm1620_vm2, %v2303_v57, %v1617_v52  ;;  %v1785_v22 = vpop.permute.xlu1 %1784 }
 0x51c   :  { %v1626_v6 = vsel %vm1623_vm3, %v1625_v47, %v1621_v37  ;;  %vm1786_vm12 = vcmp.eq.s32.totalorder %v1785_v22, 1 }
 0x521   :  { %v2307_v48 = vpop.eup %2306 }
 0x522   :  { %v1633_v51 = vmul.f32 %v2307_v48, %v1626_v6 }
 0x524   :  { %v2992_v53 = vsel %vm1641_vm15, %v1633_v51, %v2973_v41  ;;  %v1646_v59 = vsel %vm1641_vm15, %v1633_v51, 0.0  ;;  %v3075_v41 = vld [vmem:[#allocation30_spill] sm:$0xff] }
 0x525   :  { %v1647_v60 = vpack.c.bf16 %v1646_v59, %v1646_v59  ;;  %v1659_v18 = vpack.c.bf16 %v2992_v53, %v2992_v53 }
 0x527   :  { %2114 = vst [vmem:[%s3024_s5 + $0x18] sm:$0xf] %v1647_v60  ;;  %1668 = vmatmul.bf16.vlgmr.msra.gmra.mxu0 %v1659_v18  ;;  %1681 = vmatmul.bf16.vlgmr.msra.gmra.mxu1 %v1659_v18 }
 0x528   :  { %1694 = vmatmul.bf16.vlgmr.msra.gmra.mxu2 %v1659_v18  ;;  %1707 = vmatmul.bf16.vlgmr.msra.gmra.mxu3 %v1659_v18 }
 0x5a4   :  { %v1669_v31 = vpop.f32.mrf.mxu0  ;;  %v1682_v63 = vpop.f32.mrf.mxu1 }
 0x5a5   :  { %v1712_v7 = vadd.f32 %v1669_v31, %v3074_v1  ;;  %v1713_v8 = vadd.f32 %v1682_v63, %v3075_v41 }
 0x5a7   :  { %v2115_v11 = vmul.f32 -1.442695, %v1712_v7  ;;  %v2116_v13 = vmul.f32 -1.442695, %v1713_v8 }
 0x5a9   :  { %2308 = vpow2.f32 %v2115_v11 }
 0x5aa   :  { %2310 = vpow2.f32 %v2116_v13 }
 0x5ab   :  { %v1695_v20 = vpop.f32.mrf.mxu2  ;;  %v1708_v21 = vpop.f32.mrf.mxu3 }
 0x5ac   :  { %v1714_v26 = vadd.f32 %v1695_v20, %v3076_v24  ;;  %v1671_v32 = vpop.f32.mrf.mxu0  ;;  %v1684_v33 = vpop.f32.mrf.mxu1  ;;  %v1715_v15 = vadd.f32 %v1708_v21, %v3077_v14 }
 0x5ae   :  { %v2117_v36 = vmul.f32 -1.442695, %v1714_v26 }
 0x5af   :  { %v2309_v38 = vpop.eup %2308 }
 0x5b0   :  { %v2311_v39 = vpop.eup %2310  ;;  %v1725_v44 = vadd.f32 1.0, %v2309_v38  ;;  %2312 = vpow2.f32 %v2117_v36 }
 0x5b1   :  { %v1726_v50 = vadd.f32 1.0, %v2311_v39 }
 0x5b2   :  { %2314 = vrcp.f32 %v1725_v44  ;;  %v1739_v23 = vand.u32 2147483648, %v1725_v44  ;;  %v1737_v57 = vand.u32 2147483647, %v1725_v44  ;;  %vm1733_vm6 = vweird.f32 %v1725_v44 }
 0x5b3   :  { %2316 = vrcp.f32 %v1726_v50  ;;  %v1697_v56 = vpop.f32.mrf.mxu2  ;;  %v1710_v62 = vpop.f32.mrf.mxu3  ;;  %v1754_v19 = vand.u32 2147483648, %v1726_v50  ;;  %v1752_v28 = vand.u32 2147483647, %v1726_v50  ;;  %vm1748_vm7 = vweird.f32 %v1726_v50 }
 0x5b4   :  { %v1740_v29 = vor.u32 1.1754944e-38, %v1739_v23  ;;  %vm1738_vm10 = vcmp.eq.f32.partialorder %v1737_v57, 8.507059e+37 }
 0x5b5   :  { %v1755_v25 = vor.u32 1.1754944e-38, %v1754_v19  ;;  %vm1753_vm11 = vcmp.eq.f32.partialorder %v1752_v28, 8.507059e+37 }
 0x5b6   :  { %v2313_v3 = vpop.eup %2312 }
 0x5b7   :  { %v1727_v4 = vadd.f32 1.0, %v2313_v3 }
 0x5b8   :  { %v2315_v9 = vpop.eup %2314 }
 0x5b9   :  { %v2317_v5 = vpop.eup %2316  ;;  %v1729_v17 = vmul.f32 %v2315_v9, %v1725_v44  ;;  %2318 = vrcp.f32 %v1727_v4  ;;  %vm1734_vm4 = vweird.f32 %v2315_v9  ;;  %v1769_v47 = vand.u32 2147483648, %v1727_v4 }
 0x5ba   :  { %v1744_v0 = vmul.f32 %v2317_v5, %v1726_v50  ;;  %2320 = vtanh.f32 %v1715_v15  ;;  %vm1749_vm5 = vweird.f32 %v2317_v5  ;;  %vm1735_vm8 = vmor %vm1733_vm6, %vm1734_vm4  ;;  %vm1763_vm14 = vweird.f32 %v1727_v4 }
 0x5bb   :  { %v1730_v10 = vsub.f32 1.0, %v1729_v17  ;;  %vm1750_vm9 = vmor %vm1748_vm7, %vm1749_vm5  ;;  %v1767_v6 = vand.u32 2147483647, %v1727_v4  ;;  %v1770_v59 = vor.u32 1.1754944e-38, %v1769_v47 }
 0x5bc   :  { %v1745_v45 = vsub.f32 1.0, %v1744_v0 }
 0x5bd   :  { %v1731_v61 = vmul.f32 %v2315_v9, %v1730_v10  ;;  %vm1768_vm0 = vcmp.eq.f32.partialorder %v1767_v6, 8.507059e+37 }
 0x5be   :  { %v1746_v43 = vmul.f32 %v2317_v5, %v1745_v45 }
 0x5bf   :  { %v2319_v12 = vpop.eup %2318  ;;  %v1732_v40 = vadd.f32 %v2315_v9, %v1731_v61 }
 0x5c0   :  { %v1759_v46 = vmul.f32 %v2319_v12, %v1727_v4  ;;  %v1747_v58 = vadd.f32 %v2317_v5, %v1746_v43  ;;  %v2321_v55 = vpop.eup %2320  ;;  %vm1764_vm13 = vweird.f32 %v2319_v12 }
 0x5c1   :  { %v1736_v34 = vsel %vm1735_vm8, %v2315_v9, %v1732_v40  ;;  %vm1765_vm15 = vmor %vm1763_vm14, %vm1764_vm13 }
 0x5c2   :  { %v1760_v35 = vsub.f32 1.0, %v1759_v46  ;;  %v1741_v16 = vsel %vm1738_vm10, %v1740_v29, %v1736_v34  ;;  %v1751_v49 = vsel %vm1750_vm9, %v2317_v5, %v1747_v58 }
 0x5c3   :  { %v1756_v42 = vsel %vm1753_vm11, %v1755_v25, %v1751_v49  ;;  %v1775_v54 = vmul.f32 %v2321_v55, %v1741_v16 }
 0x5c4   :  { %v1761_v52 = vmul.f32 %v2319_v12, %v1760_v35  ;;  %v1774_v2 = vmul.f32 %v1756_v42, %v2988_v30 }
 0x5c6   :  { %v1776_v27 = vadd.f32 %v1775_v54, %v1774_v2  ;;  %v1762_v37 = vadd.f32 %v2319_v12, %v1761_v52 }
 0x5c8   :  { %2322 = vtanh.f32 %v1776_v27  ;;  %v1789_v48 = vsel %vm1786_vm12, %v1776_v27, %v2988_v30  ;;  %v1766_v51 = vsel %vm1765_vm15, %v2319_v12, %v1762_v37 }
 0x5c9   :  { %1790 = vst [vmem:[%s3026_s7] sm:$0xff] %v1789_v48  ;;  %v1771_v18 = vsel %vm1768_vm0, %v1770_v59, %v1766_v51 }
 0x5ce   :  { %v2323_v60 = vpop.eup %2322 }
 0x5cf   :  { %v1778_v31 = vmul.f32 %v2323_v60, %v1771_v18 }
 0x5d1   :  { %v1787_v63 = vsel %vm1786_vm12, %v1778_v31, %v2992_v53  ;;  %v1791_v1 = vsel %vm1786_vm12, %v1778_v31, 0.0 }
 0x5d2   :  { %1788 = vst [vmem:[%s3025_s6] sm:$0xff] %v1787_v63  ;;  %v1792_v30 = vpack.c.bf16 %v1791_v1, %v1791_v1 }
 0x5d4   :  { %2118 = vst [vmem:[%s3024_s5 + $0x1c] sm:$0xf] %v1792_v30 }
 0x5d5   :  { %1807 = vsyncpa [#allocation4], 1 }
 0x5d6   :  { %1808 = vsyncpa [#allocation6], 1 }

</bundles_post_ra>
